<compile_context>
chip_gen: v6e
topology: v6e:2x2x1
jax: 0.10.0
libtpu: 0.0.40
codegen_flags: <defaults>
</compile_context>

<pallas_src>
import functools
import numpy as np
import jax
import jax.numpy as jnp
from jax.experimental import pallas as pl
from jax.experimental.pallas import tpu as pltpu

# ----------------------------- small config ---------------------------------
IMG = 16          # image_size
PATCH = 4         # patch_size
EMB = 32          # emb_dim
ENC_LAYERS = 2    # encoder_layer
DEC_LAYERS = 1    # decoder_layer
MASK_RATIO = 0.75
BATCH = 2
# encoder_head = decoder_head = 1 (MAE_ViT constructor defaults) -> single head.

LN_EPS = 1e-5

_BLOCK_KEYS = ('g1', 'b1', 'qkvw', 'qkvb', 'projw', 'projb',
               'g2', 'b2', 'fc1w', 'fc1b', 'fc2w', 'fc2b')


def _round_up(n, m):
    return ((n + m - 1) // m) * m


def _full_spec(shape):
    n = len(shape)
    return pl.BlockSpec(shape, lambda i, n=n: (0,) * n)


# ----------------------------- kernel helpers --------------------------------
def _ln(x, g, b):
    mu = jnp.mean(x, axis=-1, keepdims=True)
    var = jnp.mean((x - mu) ** 2, axis=-1, keepdims=True)
    return (x - mu) * jax.lax.rsqrt(var + LN_EPS) * g + b


def _block_fwd(x, blk, l, attn_bias):
    """One timm-style ViT Block on a (B*t_pad, C) f32 slab, batch folded into
    the attention matmuls via the precomputed block-diagonal additive bias."""
    g1, b1, qkvw, qkvb, pjw, pjb, g2, b2, f1w, f1b, f2w, f2b = (r[l] for r in blk)
    C = x.shape[-1]
    bf16, f32 = jnp.bfloat16, jnp.float32

    # --- LayerNorm 1 + single-head self attention (fused QKV, scale folded) ---
    xn = _ln(x, g1, b1)
    qkv = jnp.dot(xn.astype(bf16), qkvw, preferred_element_type=f32) + qkvb
    q, k, v = qkv[:, :C], qkv[:, C:2 * C], qkv[:, 2 * C:]

    scores = jax.lax.dot_general(
        q.astype(bf16), k.astype(bf16), (((1,), (1,)), ((), ())),
        preferred_element_type=f32) + attn_bias
    scores = scores - jnp.max(scores, axis=-1, keepdims=True)
    p = jnp.exp(scores)
    attn = p * pl.reciprocal(jnp.sum(p, axis=-1, keepdims=True), approx=False)
    av = jnp.dot(attn.astype(bf16), v.astype(bf16), preferred_element_type=f32)

    x1 = x + jnp.dot(av.astype(bf16), pjw, preferred_element_type=f32) + pjb

    # --- LayerNorm 2 + MLP ---
    xn2 = _ln(x1, g2, b2)
    h = jnp.dot(xn2.astype(bf16), f1w, preferred_element_type=f32) + f1b
    # TODO(synk): torch nn.GELU defaults to the exact erf form; tanh approximation used here.
    h = jax.nn.gelu(h, approximate=True)
    y = jnp.dot(h.astype(bf16), f2w, preferred_element_type=f32) + f2b
    return x1 + y


# ----------------------------- fused Pallas kernel ---------------------------
def _mae_kernel(*refs, batch, n_patch, t_pad_enc, t_pad_dec,
                enc_layers, dec_layers):
    it = iter(refs)
    patches_ref, kidx_ref, gidx_ref = next(it), next(it), next(it)
    pw_ref, embadd_ref, clsadd_ref, encbias_ref = next(it), next(it), next(it), next(it)
    enc_blk = tuple(next(it) for _ in range(len(_BLOCK_KEYS)))
    lng_ref, lnb_ref = next(it), next(it)
    masktok_ref, decadd_ref, decbias_ref = next(it), next(it), next(it)
    dec_blk = tuple(next(it) for _ in range(len(_BLOCK_KEYS)))
    hw_ref, hb_ref, o_ref = next(it), next(it), next(it)

    f32, bf16 = jnp.float32, jnp.bfloat16

    # ---- patch embedding of ALL patches (conv bias + pos emb fused into add) ----
    emb_all = jnp.dot(patches_ref[...].astype(bf16), pw_ref[...],
                      preferred_element_type=f32) + embadd_ref[...]        # (B*T, C)

    # ---- encoder input assembly: one-hot gather of kept tokens, cls on row 0 ----
    kidx = kidx_ref[...]                                                   # (B*tpe, 1)
    src = jax.lax.broadcasted_iota(jnp.int32,
                                   (batch * t_pad_enc, batch * n_patch), 1)
    gk = jnp.where(src == kidx, 1.0, 0.0).astype(bf16)
    x = jnp.dot(gk, emb_all.astype(bf16),
                preferred_element_type=f32) + clsadd_ref[...]              # (B*tpe, C)

    enc_bias = encbias_ref[...]          # block-diag + key-pad bias, hoisted
    for l in range(enc_layers):          # tiny layer count -> unrolled, VMEM-resident
        x = _block_fwd(x, enc_blk, l, enc_bias)
    feat = _ln(x, lng_ref[...], lnb_ref[...])                              # (B*tpe, C)

    # ---- decoder input assembly: un-shuffle gather + mask-token + pos emb ----
    gidx = gidx_ref[...]                                                   # (B*tpd, 1)
    src_d = jax.lax.broadcasted_iota(jnp.int32,
                                     (batch * t_pad_dec, batch * t_pad_enc), 1)
    gd = jnp.where(src_d == gidx, 1.0, 0.0).astype(bf16)
    mask_flag = jnp.where(gidx == -1, 1.0, 0.0)                            # (B*tpd, 1)
    y = (jnp.dot(gd, feat.astype(bf16), preferred_element_type=f32)
         + mask_flag * masktok_ref[...] + decadd_ref[...])                 # (B*tpd, C)

    dec_bias = decbias_ref[...]
    for l in range(dec_layers):
        y = _block_fwd(y, dec_blk, l, dec_bias)

    # ---- reconstruction head (weight zero-padded to 128 lanes -> dense store) ----
    o_ref[...] = (jnp.dot(y.astype(bf16), hw_ref[...], preferred_element_type=f32)
                  + hb_ref[...])


def mae_fused(patches, kidx, gidx, kp, *, batch):
    T = (IMG // PATCH) ** 2
    remain_T = int(T * (1 - MASK_RATIO))
    t_pad_enc = _round_up(remain_T + 1, 8)
    t_pad_dec = _round_up(T + 1, 8)
    enc_layers = kp['enc_blocks']['qkvw'].shape[0]
    dec_layers = kp['dec_blocks']['qkvw'].shape[0]

    args = (patches, kidx, gidx,
            kp['patch_w'], kp['embed_add'], kp['cls_add'], kp['enc_attn_bias'],
            *[kp['enc_blocks'][k] for k in _BLOCK_KEYS],
            kp['enc_ln_g'], kp['enc_ln_b'],
            kp['mask_token'], kp['dec_add'], kp['dec_attn_bias'],
            *[kp['dec_blocks'][k] for k in _BLOCK_KEYS],
            kp['head_w'], kp['head_b'])

    kernel = functools.partial(
        _mae_kernel, batch=batch, n_patch=T,
        t_pad_enc=t_pad_enc, t_pad_dec=t_pad_dec,
        enc_layers=enc_layers, dec_layers=dec_layers)

    return pl.pallas_call(
        kernel,
        out_shape=jax.ShapeDtypeStruct((batch * t_pad_dec, 128), jnp.float32),
        grid=(1,),
        in_specs=[_full_spec(a.shape) for a in args],
        out_specs=_full_spec((batch * t_pad_dec, 128)),
        compiler_params=pltpu.CompilerParams(dimension_semantics=("arbitrary",)),
    )(*args)


# ----------------------------- JAX glue --------------------------------------
def take_indexes(sequences, indexes):
    # sequences: (T, B, C); indexes: (T', B) int32 -> gather along dim 0 per column
    idx = jnp.broadcast_to(indexes[:, :, None],
                           indexes.shape + (sequences.shape[-1],))
    return jnp.take_along_axis(sequences, idx, axis=0)


def patch2img(patches, hp, p):
    # '(h w) b (c p1 p2) -> b c (h p1) (w p2)'  with c = 1
    T, B, _ = patches.shape
    x = patches.reshape(hp, hp, B, 1, p, p)          # (h, w, b, c, p1, p2)
    x = x.transpose(2, 3, 0, 4, 1, 5)                # (b, c, h, p1, w, p2)
    return x.reshape(B, 1, hp * p, hp * p)


def _make_attn_bias(batch, t_pad, t_real):
    # Block-diagonal (same-batch) + key-validity additive bias; compile-time constant.
    n = batch * t_pad
    r = np.arange(n)[:, None] // t_pad
    c = np.arange(n)[None, :]
    ok = (r == (c // t_pad)) & ((c % t_pad) < t_real)
    return jnp.asarray(np.where(ok, 0.0, -1e30), dtype=jnp.float32)


def init_params(key):
    C, p = EMB, PATCH
    T = (IMG // PATCH) ** 2
    ks = iter(jax.random.split(key, 256))

    def w(shape):
        return (0.02 * jax.random.normal(next(ks), shape)).astype(jnp.float32)

    def block_params():
        # Fused QKV Linear (C, 3C), as in timm's Block.
        return dict(g1=jnp.ones((1, C), jnp.float32), b1=jnp.zeros((1, C), jnp.float32),
                    qkvw=w((C, 3 * C)), qkvb=jnp.zeros((1, 3 * C), jnp.float32),
                    projw=w((C, C)), projb=jnp.zeros((1, C), jnp.float32),
                    g2=jnp.ones((1, C), jnp.float32), b2=jnp.zeros((1, C), jnp.float32),
                    fc1w=w((C, 4 * C)), fc1b=jnp.zeros((1, 4 * C), jnp.float32),
                    fc2w=w((4 * C, C)), fc2b=jnp.zeros((1, C), jnp.float32))

    return dict(
        patch_w=w((p * p, C)),                 # Conv2d(1, C, p, p) weight, reshaped
        patch_b=jnp.zeros((1, C), jnp.float32),
        enc_pos=w((T, 1, C)),
        cls_token=w((1, 1, C)),
        enc_blocks=[block_params() for _ in range(ENC_LAYERS)],
        enc_ln_g=jnp.ones((1, C), jnp.float32),
        enc_ln_b=jnp.zeros((1, C), jnp.float32),
        mask_token=w((1, 1, C)),
        dec_pos=w((T + 1, 1, C)),
        dec_blocks=[block_params() for _ in range(DEC_LAYERS)],
        head_w=w((C, p * p)),
        head_b=jnp.zeros((1, p * p), jnp.float32),
    )


def prepare_params(raw, batch):
    """One-time parameter prep: fold softmax scale into q, cast matmul weights
    to bf16, stack per-layer weights, precompute static add / bias tensors."""
    C, p = EMB, PATCH
    T = (IMG // PATCH) ** 2
    remain_T = int(T * (1 - MASK_RATIO))
    t_enc = remain_T + 1
    t_pad_enc = _round_up(t_enc, 8)
    t_dec = T + 1
    t_pad_dec = _round_up(t_dec, 8)
    scale = C ** -0.5       # num_heads == 1 -> head_dim == C

    def prep_block(blk):
        qkvw = blk['qkvw'].at[:, :C].multiply(scale)
        qkvb = blk['qkvb'].at[:, :C].multiply(scale)
        return dict(g1=blk['g1'], b1=blk['b1'],
                    qkvw=qkvw.astype(jnp.bfloat16), qkvb=qkvb,
                    projw=blk['projw'].astype(jnp.bfloat16), projb=blk['projb'],
                    g2=blk['g2'], b2=blk['b2'],
                    fc1w=blk['fc1w'].astype(jnp.bfloat16), fc1b=blk['fc1b'],
                    fc2w=blk['fc2w'].astype(jnp.bfloat16), fc2b=blk['fc2b'])

    def stack(blks):
        blks = [prep_block(b) for b in blks]
        return {k: jnp.stack([b[k] for b in blks], axis=0) for k in _BLOCK_KEYS}

    embed_add = jnp.tile(raw['enc_pos'][:, 0, :], (batch, 1)) + raw['patch_b']   # (B*T, C)

    cls_add = jnp.zeros((batch * t_pad_enc, C), jnp.float32)
    cls_add = cls_add.at[jnp.arange(batch) * t_pad_enc, :].set(
        jnp.broadcast_to(raw['cls_token'][0], (batch, C)))

    dec_add = jnp.zeros((batch, t_pad_dec, C), jnp.float32)
    dec_add = dec_add.at[:, :t_dec, :].set(
        jnp.broadcast_to(raw['dec_pos'][:, 0, :], (batch, t_dec, C)))
    dec_add = dec_add.reshape(batch * t_pad_dec, C)

    head_w = jnp.zeros((C, 128), jnp.float32).at[:, :p * p].set(raw['head_w'])
    head_b = jnp.zeros((1, 128), jnp.float32).at[:, :p * p].set(raw['head_b'])

    return dict(
        patch_w=raw['patch_w'].astype(jnp.bfloat16),
        embed_add=embed_add,
        cls_add=cls_add,
        enc_attn_bias=_make_attn_bias(batch, t_pad_enc, t_enc),
        enc_blocks=stack(raw['enc_blocks']),
        enc_ln_g=raw['enc_ln_g'], enc_ln_b=raw['enc_ln_b'],
        mask_token=raw['mask_token'][0],                     # (1, C)
        dec_add=dec_add,
        dec_attn_bias=_make_attn_bias(batch, t_pad_dec, t_dec),
        dec_blocks=stack(raw['dec_blocks']),
        head_w=head_w.astype(jnp.bfloat16),
        head_b=head_b,
    )


def mae_vit_forward(img, kparams, shuffle_key):
    B = img.shape[0]
    p = PATCH
    hp = IMG // p
    T = hp * hp
    pp = p * p
    remain_T = int(T * (1 - MASK_RATIO))
    t_enc = remain_T + 1                       # cls + kept tokens (5)
    t_pad_enc = _round_up(t_enc, 8)            # 8
    t_dec = T + 1                              # 17
    t_pad_dec = _round_up(t_dec, 8)            # 24

    # Patch extraction (pure layout); Conv2d(1, C, p, stride=p) runs in-kernel.
    patches = img.reshape(B, 1, hp, p, hp, p).transpose(0, 2, 4, 1, 3, 5)
    patches = patches.reshape(B * T, pp)                                   # (B*T, pp)

    # PatchShuffle: per-batch random permutation (host numpy RNG in torch).
    fwd_list = [jax.random.permutation(jax.random.fold_in(shuffle_key, b), T)
                for b in range(B)]
    forward_indexes = jnp.stack(fwd_list, axis=-1).astype(jnp.int32)       # (T, B)
    backward_indexes = jnp.argsort(forward_indexes, axis=0).astype(jnp.int32)

    # Encoder gather index: -1 -> cls / pad row, else flat index into (B*T) patches.
    keep = forward_indexes[:remain_T].T                                    # (B, remain_T)
    kidx = jnp.full((B, t_pad_enc), -1, jnp.int32)
    kidx = kidx.at[:, 1:1 + remain_T].set(keep + jnp.arange(B)[:, None] * T)
    kidx = kidx.reshape(B * t_pad_enc, 1)

    # Decoder un-shuffle index: flat index into encoder rows,
    # -1 -> mask-token row, -2 -> pad row.
    bwd_cat = jnp.concatenate([jnp.zeros((1, B), jnp.int32), backward_indexes + 1],
                              axis=0)                                      # (t_dec, B)
    bw = bwd_cat.T                                                         # (B, t_dec)
    gvalid = jnp.where(bw < t_enc, bw + jnp.arange(B)[:, None] * t_pad_enc, -1)
    gidx = jnp.full((B, t_pad_dec), -2, jnp.int32)
    gidx = gidx.at[:, :t_dec].set(gvalid)
    gidx = gidx.reshape(B * t_pad_dec, 1)

    # ------------- single fused encoder+decoder kernel -------------
    dec_out = mae_fused(patches, kidx, gidx, kparams, batch=B)             # (B*tpd, 128)
    dec_out = dec_out[:, :pp].reshape(B, t_pad_dec, pp)
    patches_out = dec_out[:, 1:t_dec, :].transpose(1, 0, 2)                # (T, B, pp)

    mask = jnp.where(jnp.arange(T)[:, None, None] >= remain_T, 1.0, 0.0)
    mask = jnp.broadcast_to(mask, (T, B, pp)).astype(patches_out.dtype)
    mask = take_indexes(mask, backward_indexes)

    pred_img = patch2img(patches_out, hp, p)                               # (B, 1, H, W)
    mask_img = patch2img(mask, hp, p)                                      # (B, 1, H, W)
    return pred_img, mask_img


if __name__ == "__main__":
    key = jax.random.PRNGKey(0)
    pkey, ikey, skey = jax.random.split(key, 3)
    raw_params = init_params(pkey)
    kparams = prepare_params(raw_params, BATCH)
    img = jax.random.normal(ikey, (BATCH, 1, IMG, IMG), dtype=jnp.float32)

    fwd_fn = jax.jit(mae_vit_forward)
    pred_img, mask_img = fwd_fn(img, kparams, skey)
    jax.block_until_ready((pred_img, mask_img))

    assert pred_img.shape == (BATCH, 1, IMG, IMG)
    assert mask_img.shape == (BATCH, 1, IMG, IMG)
    assert bool(jnp.all(jnp.isfinite(pred_img)))
    assert bool(jnp.all(jnp.isfinite(mask_img)))
    print("KERNEL_OK")
</pallas_src>

<mosaic_0001>
module attributes {stable_mosaic.version = 11 : i64} {
  func.func @_mae_kernel(%arg0: i32, %arg1: memref<32x16xf32, #tpu.memory_space<vmem>>, %arg2: memref<16x1xi32, #tpu.memory_space<vmem>>, %arg3: memref<48x1xi32, #tpu.memory_space<vmem>>, %arg4: memref<16x32xbf16, #tpu.memory_space<vmem>>, %arg5: memref<32x32xf32, #tpu.memory_space<vmem>>, %arg6: memref<16x32xf32, #tpu.memory_space<vmem>>, %arg7: memref<16x16xf32, #tpu.memory_space<vmem>>, %arg8: memref<2x1x32xf32, #tpu.memory_space<vmem>>, %arg9: memref<2x1x32xf32, #tpu.memory_space<vmem>>, %arg10: memref<2x32x96xbf16, #tpu.memory_space<vmem>>, %arg11: memref<2x1x96xf32, #tpu.memory_space<vmem>>, %arg12: memref<2x32x32xbf16, #tpu.memory_space<vmem>>, %arg13: memref<2x1x32xf32, #tpu.memory_space<vmem>>, %arg14: memref<2x1x32xf32, #tpu.memory_space<vmem>>, %arg15: memref<2x1x32xf32, #tpu.memory_space<vmem>>, %arg16: memref<2x32x128xbf16, #tpu.memory_space<vmem>>, %arg17: memref<2x1x128xf32, #tpu.memory_space<vmem>>, %arg18: memref<2x128x32xbf16, #tpu.memory_space<vmem>>, %arg19: memref<2x1x32xf32, #tpu.memory_space<vmem>>, %arg20: memref<1x32xf32, #tpu.memory_space<vmem>>, %arg21: memref<1x32xf32, #tpu.memory_space<vmem>>, %arg22: memref<1x32xf32, #tpu.memory_space<vmem>>, %arg23: memref<48x32xf32, #tpu.memory_space<vmem>>, %arg24: memref<48x48xf32, #tpu.memory_space<vmem>>, %arg25: memref<1x1x32xf32, #tpu.memory_space<vmem>>, %arg26: memref<1x1x32xf32, #tpu.memory_space<vmem>>, %arg27: memref<1x32x96xbf16, #tpu.memory_space<vmem>>, %arg28: memref<1x1x96xf32, #tpu.memory_space<vmem>>, %arg29: memref<1x32x32xbf16, #tpu.memory_space<vmem>>, %arg30: memref<1x1x32xf32, #tpu.memory_space<vmem>>, %arg31: memref<1x1x32xf32, #tpu.memory_space<vmem>>, %arg32: memref<1x1x32xf32, #tpu.memory_space<vmem>>, %arg33: memref<1x32x128xbf16, #tpu.memory_space<vmem>>, %arg34: memref<1x1x128xf32, #tpu.memory_space<vmem>>, %arg35: memref<1x128x32xbf16, #tpu.memory_space<vmem>>, %arg36: memref<1x1x32xf32, #tpu.memory_space<vmem>>, %arg37: memref<32x128xbf16, #tpu.memory_space<vmem>>, %arg38: memref<1x128xf32, #tpu.memory_space<vmem>>, %arg39: memref<48x128xf32, #tpu.memory_space<vmem>>) attributes {dimension_semantics = [#tpu.dimension_semantics<arbitrary>], iteration_bounds = array<i64: 1>, scalar_prefetch = 0 : i64, scratch_operands = 0 : i64, tpu.core_type = #tpu.core_type<tc>, window_params = [{pipeline_mode = #tpu.pipeline_mode<synchronous>, transform_indices = @transform_0, window_bounds = array<i64: 32, 16>}, {pipeline_mode = #tpu.pipeline_mode<synchronous>, transform_indices = @transform_1, window_bounds = array<i64: 16, 1>}, {pipeline_mode = #tpu.pipeline_mode<synchronous>, transform_indices = @transform_2, window_bounds = array<i64: 48, 1>}, {pipeline_mode = #tpu.pipeline_mode<synchronous>, transform_indices = @transform_3, window_bounds = array<i64: 16, 32>}, {pipeline_mode = #tpu.pipeline_mode<synchronous>, transform_indices = @transform_4, window_bounds = array<i64: 32, 32>}, {pipeline_mode = #tpu.pipeline_mode<synchronous>, transform_indices = @transform_5, window_bounds = array<i64: 16, 32>}, {pipeline_mode = #tpu.pipeline_mode<synchronous>, transform_indices = @transform_6, window_bounds = array<i64: 16, 16>}, {pipeline_mode = #tpu.pipeline_mode<synchronous>, transform_indices = @transform_7, window_bounds = array<i64: 2, 1, 32>}, {pipeline_mode = #tpu.pipeline_mode<synchronous>, transform_indices = @transform_8, window_bounds = array<i64: 2, 1, 32>}, {pipeline_mode = #tpu.pipeline_mode<synchronous>, transform_indices = @transform_9, window_bounds = array<i64: 2, 32, 96>}, {pipeline_mode = #tpu.pipeline_mode<synchronous>, transform_indices = @transform_10, window_bounds = array<i64: 2, 1, 96>}, {pipeline_mode = #tpu.pipeline_mode<synchronous>, transform_indices = @transform_11, window_bounds = array<i64: 2, 32, 32>}, {pipeline_mode = #tpu.pipeline_mode<synchronous>, transform_indices = @transform_12, window_bounds = array<i64: 2, 1, 32>}, {pipeline_mode = #tpu.pipeline_mode<synchronous>, transform_indices = @transform_13, window_bounds = array<i64: 2, 1, 32>}, {pipeline_mode = #tpu.pipeline_mode<synchronous>, transform_indices = @transform_14, window_bounds = array<i64: 2, 1, 32>}, {pipeline_mode = #tpu.pipeline_mode<synchronous>, transform_indices = @transform_15, window_bounds = array<i64: 2, 32, 128>}, {pipeline_mode = #tpu.pipeline_mode<synchronous>, transform_indices = @transform_16, window_bounds = array<i64: 2, 1, 128>}, {pipeline_mode = #tpu.pipeline_mode<synchronous>, transform_indices = @transform_17, window_bounds = array<i64: 2, 128, 32>}, {pipeline_mode = #tpu.pipeline_mode<synchronous>, transform_indices = @transform_18, window_bounds = array<i64: 2, 1, 32>}, {pipeline_mode = #tpu.pipeline_mode<synchronous>, transform_indices = @transform_19, window_bounds = array<i64: 1, 32>}, {pipeline_mode = #tpu.pipeline_mode<synchronous>, transform_indices = @transform_20, window_bounds = array<i64: 1, 32>}, {pipeline_mode = #tpu.pipeline_mode<synchronous>, transform_indices = @transform_21, window_bounds = array<i64: 1, 32>}, {pipeline_mode = #tpu.pipeline_mode<synchronous>, transform_indices = @transform_22, window_bounds = array<i64: 48, 32>}, {pipeline_mode = #tpu.pipeline_mode<synchronous>, transform_indices = @transform_23, window_bounds = array<i64: 48, 48>}, {pipeline_mode = #tpu.pipeline_mode<synchronous>, transform_indices = @transform_24, window_bounds = array<i64: 1, 1, 32>}, {pipeline_mode = #tpu.pipeline_mode<synchronous>, transform_indices = @transform_25, window_bounds = array<i64: 1, 1, 32>}, {pipeline_mode = #tpu.pipeline_mode<synchronous>, transform_indices = @transform_26, window_bounds = array<i64: 1, 32, 96>}, {pipeline_mode = #tpu.pipeline_mode<synchronous>, transform_indices = @transform_27, window_bounds = array<i64: 1, 1, 96>}, {pipeline_mode = #tpu.pipeline_mode<synchronous>, transform_indices = @transform_28, window_bounds = array<i64: 1, 32, 32>}, {pipeline_mode = #tpu.pipeline_mode<synchronous>, transform_indices = @transform_29, window_bounds = array<i64: 1, 1, 32>}, {pipeline_mode = #tpu.pipeline_mode<synchronous>, transform_indices = @transform_30, window_bounds = array<i64: 1, 1, 32>}, {pipeline_mode = #tpu.pipeline_mode<synchronous>, transform_indices = @transform_31, window_bounds = array<i64: 1, 1, 32>}, {pipeline_mode = #tpu.pipeline_mode<synchronous>, transform_indices = @transform_32, window_bounds = array<i64: 1, 32, 128>}, {pipeline_mode = #tpu.pipeline_mode<synchronous>, transform_indices = @transform_33, window_bounds = array<i64: 1, 1, 128>}, {pipeline_mode = #tpu.pipeline_mode<synchronous>, transform_indices = @transform_34, window_bounds = array<i64: 1, 128, 32>}, {pipeline_mode = #tpu.pipeline_mode<synchronous>, transform_indices = @transform_35, window_bounds = array<i64: 1, 1, 32>}, {pipeline_mode = #tpu.pipeline_mode<synchronous>, transform_indices = @transform_36, window_bounds = array<i64: 32, 128>}, {pipeline_mode = #tpu.pipeline_mode<synchronous>, transform_indices = @transform_37, window_bounds = array<i64: 1, 128>}, {pipeline_mode = #tpu.pipeline_mode<synchronous>, transform_indices = @transform_38, window_bounds = array<i64: 48, 128>}]} {
    %c0 = arith.constant 0 : index
    %c0_0 = arith.constant 0 : index
    %0 = vector.load %arg1[%c0, %c0_0] : memref<32x16xf32, #tpu.memory_space<vmem>>, vector<32x16xf32>
    %1 = arith.truncf %0 : vector<32x16xf32> to vector<32x16xbf16>
    %c0_1 = arith.constant 0 : index
    %c0_2 = arith.constant 0 : index
    %2 = vector.load %arg4[%c0_1, %c0_2] : memref<16x32xbf16, #tpu.memory_space<vmem>>, vector<16x32xbf16>
    %cst = arith.constant dense<0.000000e+00> : vector<32x32xf32>
    %3 = tpu.matmul %1, %2, %cst {dimension_numbers = #tpu.dot_dimension_numbers<[1], [0], [0], [1], [0, 0, 1, 1], [], []>} : vector<32x16xbf16>, vector<16x32xbf16>, vector<32x32xf32> -> vector<32x32xf32>
    %c0_3 = arith.constant 0 : index
    %c0_4 = arith.constant 0 : index
    %4 = vector.load %arg5[%c0_3, %c0_4] : memref<32x32xf32, #tpu.memory_space<vmem>>, vector<32x32xf32>
    %5 = arith.addf %3, %4 : vector<32x32xf32>
    %c0_5 = arith.constant 0 : index
    %c0_6 = arith.constant 0 : index
    %6 = vector.load %arg2[%c0_5, %c0_6] : memref<16x1xi32, #tpu.memory_space<vmem>>, vector<16x1xi32>
    %7 = tpu.iota {dimensions = array<i32: 1>} : vector<16x32xi32>
    %8 = vector.broadcast %6 : vector<16x1xi32> to vector<16x32xi32>
    %9 = arith.cmpi eq, %7, %8 : vector<16x32xi32>
    %cst_7 = arith.constant 1.000000e+00 : f32
    %cst_8 = arith.constant 0.000000e+00 : f32
    %10 = vector.broadcast %cst_7 : f32 to vector<16x32xf32>
    %11 = vector.broadcast %cst_8 : f32 to vector<16x32xf32>
    %12 = arith.select %9, %10, %11 : vector<16x32xi1>, vector<16x32xf32>
    %13 = arith.truncf %12 : vector<16x32xf32> to vector<16x32xbf16>
    %14 = arith.truncf %5 : vector<32x32xf32> to vector<32x32xbf16>
    %cst_9 = arith.constant dense<0.000000e+00> : vector<16x32xf32>
    %15 = tpu.matmul %13, %14, %cst_9 {dimension_numbers = #tpu.dot_dimension_numbers<[1], [0], [0], [1], [0, 0, 1, 1], [], []>} : vector<16x32xbf16>, vector<32x32xbf16>, vector<16x32xf32> -> vector<16x32xf32>
    %c0_10 = arith.constant 0 : index
    %c0_11 = arith.constant 0 : index
    %16 = vector.load %arg6[%c0_10, %c0_11] : memref<16x32xf32, #tpu.memory_space<vmem>>, vector<16x32xf32>
    %17 = arith.addf %15, %16 : vector<16x32xf32>
    %c0_12 = arith.constant 0 : index
    %c0_13 = arith.constant 0 : index
    %18 = vector.load %arg7[%c0_12, %c0_13] : memref<16x16xf32, #tpu.memory_space<vmem>>, vector<16x16xf32>
    %c0_14 = arith.constant 0 : index
    %c0_15 = arith.constant 0 : index
    %c0_16 = arith.constant 0 : index
    %19 = vector.load %arg8[%c0_14, %c0_15, %c0_16] : memref<2x1x32xf32, #tpu.memory_space<vmem>>, vector<1x1x32xf32>
    %20 = vector.shape_cast %19 : vector<1x1x32xf32> to vector<1x32xf32>
    %c0_17 = arith.constant 0 : index
    %c0_18 = arith.constant 0 : index
    %c0_19 = arith.constant 0 : index
    %21 = vector.load %arg9[%c0_17, %c0_18, %c0_19] : memref<2x1x32xf32, #tpu.memory_space<vmem>>, vector<1x1x32xf32>
    %22 = vector.shape_cast %21 : vector<1x1x32xf32> to vector<1x32xf32>
    %c0_20 = arith.constant 0 : index
    %c0_21 = arith.constant 0 : index
    %c0_22 = arith.constant 0 : index
    %23 = vector.load %arg10[%c0_20, %c0_21, %c0_22] : memref<2x32x96xbf16, #tpu.memory_space<vmem>>, vector<1x32x96xbf16>
    %24 = vector.shape_cast %23 : vector<1x32x96xbf16> to vector<32x96xbf16>
    %c0_23 = arith.constant 0 : index
    %c0_24 = arith.constant 0 : index
    %c0_25 = arith.constant 0 : index
    %25 = vector.load %arg11[%c0_23, %c0_24, %c0_25] : memref<2x1x96xf32, #tpu.memory_space<vmem>>, vector<1x1x96xf32>
    %26 = vector.shape_cast %25 : vector<1x1x96xf32> to vector<1x96xf32>
    %c0_26 = arith.constant 0 : index
    %c0_27 = arith.constant 0 : index
    %c0_28 = arith.constant 0 : index
    %27 = vector.load %arg12[%c0_26, %c0_27, %c0_28] : memref<2x32x32xbf16, #tpu.memory_space<vmem>>, vector<1x32x32xbf16>
    %28 = vector.shape_cast %27 : vector<1x32x32xbf16> to vector<32x32xbf16>
    %c0_29 = arith.constant 0 : index
    %c0_30 = arith.constant 0 : index
    %c0_31 = arith.constant 0 : index
    %29 = vector.load %arg13[%c0_29, %c0_30, %c0_31] : memref<2x1x32xf32, #tpu.memory_space<vmem>>, vector<1x1x32xf32>
    %30 = vector.shape_cast %29 : vector<1x1x32xf32> to vector<1x32xf32>
    %c0_32 = arith.constant 0 : index
    %c0_33 = arith.constant 0 : index
    %c0_34 = arith.constant 0 : index
    %31 = vector.load %arg14[%c0_32, %c0_33, %c0_34] : memref<2x1x32xf32, #tpu.memory_space<vmem>>, vector<1x1x32xf32>
    %32 = vector.shape_cast %31 : vector<1x1x32xf32> to vector<1x32xf32>
    %c0_35 = arith.constant 0 : index
    %c0_36 = arith.constant 0 : index
    %c0_37 = arith.constant 0 : index
    %33 = vector.load %arg15[%c0_35, %c0_36, %c0_37] : memref<2x1x32xf32, #tpu.memory_space<vmem>>, vector<1x1x32xf32>
    %34 = vector.shape_cast %33 : vector<1x1x32xf32> to vector<1x32xf32>
    %c0_38 = arith.constant 0 : index
    %c0_39 = arith.constant 0 : index
    %c0_40 = arith.constant 0 : index
    %35 = vector.load %arg16[%c0_38, %c0_39, %c0_40] : memref<2x32x128xbf16, #tpu.memory_space<vmem>>, vector<1x32x128xbf16>
    %36 = vector.shape_cast %35 : vector<1x32x128xbf16> to vector<32x128xbf16>
    %c0_41 = arith.constant 0 : index
    %c0_42 = arith.constant 0 : index
    %c0_43 = arith.constant 0 : index
    %37 = vector.load %arg17[%c0_41, %c0_42, %c0_43] : memref<2x1x128xf32, #tpu.memory_space<vmem>>, vector<1x1x128xf32>
    %38 = vector.shape_cast %37 : vector<1x1x128xf32> to vector<1x128xf32>
    %c0_44 = arith.constant 0 : index
    %c0_45 = arith.constant 0 : index
    %c0_46 = arith.constant 0 : index
    %39 = vector.load %arg18[%c0_44, %c0_45, %c0_46] : memref<2x128x32xbf16, #tpu.memory_space<vmem>>, vector<1x128x32xbf16>
    %40 = vector.shape_cast %39 : vector<1x128x32xbf16> to vector<128x32xbf16>
    %c0_47 = arith.constant 0 : index
    %c0_48 = arith.constant 0 : index
    %c0_49 = arith.constant 0 : index
    %41 = vector.load %arg19[%c0_47, %c0_48, %c0_49] : memref<2x1x32xf32, #tpu.memory_space<vmem>>, vector<1x1x32xf32>
    %42 = vector.shape_cast %41 : vector<1x1x32xf32> to vector<1x32xf32>
    %cst_50 = arith.constant dense<0.000000e+00> : vector<16xf32>
    %43 = vector.multi_reduction <add>, %17, %cst_50 [1] : vector<16x32xf32> to vector<16xf32>
    %44 = vector.shape_cast %43 : vector<16xf32> to vector<16x1xf32>
    %cst_51 = arith.constant 3.200000e+01 : f32
    %45 = vector.broadcast %cst_51 : f32 to vector<16x1xf32>
    %46 = arith.divf %44, %45 : vector<16x1xf32>
    %47 = vector.broadcast %46 : vector<16x1xf32> to vector<16x32xf32>
    %48 = arith.subf %17, %47 : vector<16x32xf32>
    %49 = arith.mulf %48, %48 : vector<16x32xf32>
    %cst_52 = arith.constant dense<0.000000e+00> : vector<16xf32>
    %50 = vector.multi_reduction <add>, %49, %cst_52 [1] : vector<16x32xf32> to vector<16xf32>
    %51 = vector.shape_cast %50 : vector<16xf32> to vector<16x1xf32>
    %cst_53 = arith.constant 3.200000e+01 : f32
    %52 = vector.broadcast %cst_53 : f32 to vector<16x1xf32>
    %53 = arith.divf %51, %52 : vector<16x1xf32>
    %54 = vector.broadcast %46 : vector<16x1xf32> to vector<16x32xf32>
    %55 = arith.subf %17, %54 : vector<16x32xf32>
    %cst_54 = arith.constant 9.99999974E-6 : f32
    %56 = vector.broadcast %cst_54 : f32 to vector<16x1xf32>
    %57 = arith.addf %53, %56 : vector<16x1xf32>
    %58 = math.rsqrt %57 : vector<16x1xf32>
    %59 = vector.broadcast %58 : vector<16x1xf32> to vector<16x32xf32>
    %60 = arith.mulf %55, %59 : vector<16x32xf32>
    %61 = vector.broadcast %20 : vector<1x32xf32> to vector<16x32xf32>
    %62 = arith.mulf %60, %61 : vector<16x32xf32>
    %63 = vector.broadcast %22 : vector<1x32xf32> to vector<16x32xf32>
    %64 = arith.addf %62, %63 : vector<16x32xf32>
    %65 = arith.truncf %64 : vector<16x32xf32> to vector<16x32xbf16>
    %cst_55 = arith.constant dense<0.000000e+00> : vector<16x96xf32>
    %66 = tpu.matmul %65, %24, %cst_55 {dimension_numbers = #tpu.dot_dimension_numbers<[1], [0], [0], [1], [0, 0, 1, 1], [], []>} : vector<16x32xbf16>, vector<32x96xbf16>, vector<16x96xf32> -> vector<16x96xf32>
    %67 = vector.broadcast %26 : vector<1x96xf32> to vector<16x96xf32>
    %68 = arith.addf %66, %67 : vector<16x96xf32>
    %69 = vector.extract_strided_slice %68 {offsets = [0, 0], sizes = [16, 32], strides = [1, 1]} : vector<16x96xf32> to vector<16x32xf32>
    %70 = vector.extract_strided_slice %68 {offsets = [0, 32], sizes = [16, 32], strides = [1, 1]} : vector<16x96xf32> to vector<16x32xf32>
    %71 = vector.extract_strided_slice %68 {offsets = [0, 64], sizes = [16, 32], strides = [1, 1]} : vector<16x96xf32> to vector<16x32xf32>
    %72 = arith.truncf %69 : vector<16x32xf32> to vector<16x32xbf16>
    %73 = arith.truncf %70 : vector<16x32xf32> to vector<16x32xbf16>
    %cst_56 = arith.constant dense<0.000000e+00> : vector<16x16xf32>
    %74 = tpu.matmul %72, %73, %cst_56 {dimension_numbers = #tpu.dot_dimension_numbers<[1], [1], [0], [0], [0, 0, 1, 0], [], []>} : vector<16x32xbf16>, vector<16x32xbf16>, vector<16x16xf32> -> vector<16x16xf32>
    %75 = arith.addf %74, %18 : vector<16x16xf32>
    %cst_57 = arith.constant dense<0xFF800000> : vector<16xf32>
    %76 = vector.multi_reduction <maximumf>, %75, %cst_57 [1] : vector<16x16xf32> to vector<16xf32>
    %77 = vector.shape_cast %76 : vector<16xf32> to vector<16x1xf32>
    %78 = vector.broadcast %77 : vector<16x1xf32> to vector<16x16xf32>
    %79 = arith.subf %75, %78 : vector<16x16xf32>
    %80 = math.exp %79 : vector<16x16xf32>
    %cst_58 = arith.constant dense<0.000000e+00> : vector<16xf32>
    %81 = vector.multi_reduction <add>, %80, %cst_58 [1] : vector<16x16xf32> to vector<16xf32>
    %82 = vector.shape_cast %81 : vector<16xf32> to vector<16x1xf32>
    %83 = tpu.reciprocal %82 : vector<16x1xf32> -> vector<16x1xf32>
    %84 = vector.broadcast %83 : vector<16x1xf32> to vector<16x16xf32>
    %85 = arith.mulf %80, %84 : vector<16x16xf32>
    %86 = arith.truncf %85 : vector<16x16xf32> to vector<16x16xbf16>
    %87 = arith.truncf %71 : vector<16x32xf32> to vector<16x32xbf16>
    %cst_59 = arith.constant dense<0.000000e+00> : vector<16x32xf32>
    %88 = tpu.matmul %86, %87, %cst_59 {dimension_numbers = #tpu.dot_dimension_numbers<[1], [0], [0], [1], [0, 0, 1, 1], [], []>} : vector<16x16xbf16>, vector<16x32xbf16>, vector<16x32xf32> -> vector<16x32xf32>
    %89 = arith.truncf %88 : vector<16x32xf32> to vector<16x32xbf16>
    %cst_60 = arith.constant dense<0.000000e+00> : vector<16x32xf32>
    %90 = tpu.matmul %89, %28, %cst_60 {dimension_numbers = #tpu.dot_dimension_numbers<[1], [0], [0], [1], [0, 0, 1, 1], [], []>} : vector<16x32xbf16>, vector<32x32xbf16>, vector<16x32xf32> -> vector<16x32xf32>
    %91 = arith.addf %17, %90 : vector<16x32xf32>
    %92 = vector.broadcast %30 : vector<1x32xf32> to vector<16x32xf32>
    %93 = arith.addf %91, %92 : vector<16x32xf32>
    %cst_61 = arith.constant dense<0.000000e+00> : vector<16xf32>
    %94 = vector.multi_reduction <add>, %93, %cst_61 [1] : vector<16x32xf32> to vector<16xf32>
    %95 = vector.shape_cast %94 : vector<16xf32> to vector<16x1xf32>
    %cst_62 = arith.constant 3.200000e+01 : f32
    %96 = vector.broadcast %cst_62 : f32 to vector<16x1xf32>
    %97 = arith.divf %95, %96 : vector<16x1xf32>
    %98 = vector.broadcast %97 : vector<16x1xf32> to vector<16x32xf32>
    %99 = arith.subf %93, %98 : vector<16x32xf32>
    %100 = arith.mulf %99, %99 : vector<16x32xf32>
    %cst_63 = arith.constant dense<0.000000e+00> : vector<16xf32>
    %101 = vector.multi_reduction <add>, %100, %cst_63 [1] : vector<16x32xf32> to vector<16xf32>
    %102 = vector.shape_cast %101 : vector<16xf32> to vector<16x1xf32>
    %cst_64 = arith.constant 3.200000e+01 : f32
    %103 = vector.broadcast %cst_64 : f32 to vector<16x1xf32>
    %104 = arith.divf %102, %103 : vector<16x1xf32>
    %105 = vector.broadcast %97 : vector<16x1xf32> to vector<16x32xf32>
    %106 = arith.subf %93, %105 : vector<16x32xf32>
    %cst_65 = arith.constant 9.99999974E-6 : f32
    %107 = vector.broadcast %cst_65 : f32 to vector<16x1xf32>
    %108 = arith.addf %104, %107 : vector<16x1xf32>
    %109 = math.rsqrt %108 : vector<16x1xf32>
    %110 = vector.broadcast %109 : vector<16x1xf32> to vector<16x32xf32>
    %111 = arith.mulf %106, %110 : vector<16x32xf32>
    %112 = vector.broadcast %32 : vector<1x32xf32> to vector<16x32xf32>
    %113 = arith.mulf %111, %112 : vector<16x32xf32>
    %114 = vector.broadcast %34 : vector<1x32xf32> to vector<16x32xf32>
    %115 = arith.addf %113, %114 : vector<16x32xf32>
    %116 = arith.truncf %115 : vector<16x32xf32> to vector<16x32xbf16>
    %cst_66 = arith.constant dense<0.000000e+00> : vector<16x128xf32>
    %117 = tpu.matmul %116, %36, %cst_66 {dimension_numbers = #tpu.dot_dimension_numbers<[1], [0], [0], [1], [0, 0, 1, 1], [], []>} : vector<16x32xbf16>, vector<32x128xbf16>, vector<16x128xf32> -> vector<16x128xf32>
    %118 = vector.broadcast %38 : vector<1x128xf32> to vector<16x128xf32>
    %119 = arith.addf %117, %118 : vector<16x128xf32>
    %120 = arith.mulf %119, %119 : vector<16x128xf32>
    %121 = arith.mulf %119, %120 : vector<16x128xf32>
    %cst_67 = arith.constant 4.471500e-02 : f32
    %122 = vector.broadcast %cst_67 : f32 to vector<16x128xf32>
    %123 = arith.mulf %122, %121 : vector<16x128xf32>
    %124 = arith.addf %119, %123 : vector<16x128xf32>
    %cst_68 = arith.constant 0.797884583 : f32
    %125 = vector.broadcast %cst_68 : f32 to vector<16x128xf32>
    %126 = arith.mulf %125, %124 : vector<16x128xf32>
    %127 = math.tanh %126 : vector<16x128xf32>
    %cst_69 = arith.constant 1.000000e+00 : f32
    %128 = vector.broadcast %cst_69 : f32 to vector<16x128xf32>
    %129 = arith.addf %128, %127 : vector<16x128xf32>
    %cst_70 = arith.constant 5.000000e-01 : f32
    %130 = vector.broadcast %cst_70 : f32 to vector<16x128xf32>
    %131 = arith.mulf %130, %129 : vector<16x128xf32>
    %132 = arith.mulf %119, %131 : vector<16x128xf32>
    %133 = arith.truncf %132 : vector<16x128xf32> to vector<16x128xbf16>
    %cst_71 = arith.constant dense<0.000000e+00> : vector<16x32xf32>
    %134 = tpu.matmul %133, %40, %cst_71 {dimension_numbers = #tpu.dot_dimension_numbers<[1], [0], [0], [1], [0, 0, 1, 1], [], []>} : vector<16x128xbf16>, vector<128x32xbf16>, vector<16x32xf32> -> vector<16x32xf32>
    %135 = vector.broadcast %42 : vector<1x32xf32> to vector<16x32xf32>
    %136 = arith.addf %134, %135 : vector<16x32xf32>
    %137 = arith.addf %93, %136 : vector<16x32xf32>
    %c1 = arith.constant 1 : index
    %c0_72 = arith.constant 0 : index
    %c0_73 = arith.constant 0 : index
    %138 = vector.load %arg8[%c1, %c0_72, %c0_73] : memref<2x1x32xf32, #tpu.memory_space<vmem>>, vector<1x1x32xf32>
    %139 = vector.shape_cast %138 : vector<1x1x32xf32> to vector<1x32xf32>
    %c1_74 = arith.constant 1 : index
    %c0_75 = arith.constant 0 : index
    %c0_76 = arith.constant 0 : index
    %140 = vector.load %arg9[%c1_74, %c0_75, %c0_76] : memref<2x1x32xf32, #tpu.memory_space<vmem>>, vector<1x1x32xf32>
    %141 = vector.shape_cast %140 : vector<1x1x32xf32> to vector<1x32xf32>
    %c1_77 = arith.constant 1 : index
    %c0_78 = arith.constant 0 : index
    %c0_79 = arith.constant 0 : index
    %142 = vector.load %arg10[%c1_77, %c0_78, %c0_79] : memref<2x32x96xbf16, #tpu.memory_space<vmem>>, vector<1x32x96xbf16>
    %143 = vector.shape_cast %142 : vector<1x32x96xbf16> to vector<32x96xbf16>
    %c1_80 = arith.constant 1 : index
    %c0_81 = arith.constant 0 : index
    %c0_82 = arith.constant 0 : index
    %144 = vector.load %arg11[%c1_80, %c0_81, %c0_82] : memref<2x1x96xf32, #tpu.memory_space<vmem>>, vector<1x1x96xf32>
    %145 = vector.shape_cast %144 : vector<1x1x96xf32> to vector<1x96xf32>
    %c1_83 = arith.constant 1 : index
    %c0_84 = arith.constant 0 : index
    %c0_85 = arith.constant 0 : index
    %146 = vector.load %arg12[%c1_83, %c0_84, %c0_85] : memref<2x32x32xbf16, #tpu.memory_space<vmem>>, vector<1x32x32xbf16>
    %147 = vector.shape_cast %146 : vector<1x32x32xbf16> to vector<32x32xbf16>
    %c1_86 = arith.constant 1 : index
    %c0_87 = arith.constant 0 : index
    %c0_88 = arith.constant 0 : index
    %148 = vector.load %arg13[%c1_86, %c0_87, %c0_88] : memref<2x1x32xf32, #tpu.memory_space<vmem>>, vector<1x1x32xf32>
    %149 = vector.shape_cast %148 : vector<1x1x32xf32> to vector<1x32xf32>
    %c1_89 = arith.constant 1 : index
    %c0_90 = arith.constant 0 : index
    %c0_91 = arith.constant 0 : index
    %150 = vector.load %arg14[%c1_89, %c0_90, %c0_91] : memref<2x1x32xf32, #tpu.memory_space<vmem>>, vector<1x1x32xf32>
    %151 = vector.shape_cast %150 : vector<1x1x32xf32> to vector<1x32xf32>
    %c1_92 = arith.constant 1 : index
    %c0_93 = arith.constant 0 : index
    %c0_94 = arith.constant 0 : index
    %152 = vector.load %arg15[%c1_92, %c0_93, %c0_94] : memref<2x1x32xf32, #tpu.memory_space<vmem>>, vector<1x1x32xf32>
    %153 = vector.shape_cast %152 : vector<1x1x32xf32> to vector<1x32xf32>
    %c1_95 = arith.constant 1 : index
    %c0_96 = arith.constant 0 : index
    %c0_97 = arith.constant 0 : index
    %154 = vector.load %arg16[%c1_95, %c0_96, %c0_97] : memref<2x32x128xbf16, #tpu.memory_space<vmem>>, vector<1x32x128xbf16>
    %155 = vector.shape_cast %154 : vector<1x32x128xbf16> to vector<32x128xbf16>
    %c1_98 = arith.constant 1 : index
    %c0_99 = arith.constant 0 : index
    %c0_100 = arith.constant 0 : index
    %156 = vector.load %arg17[%c1_98, %c0_99, %c0_100] : memref<2x1x128xf32, #tpu.memory_space<vmem>>, vector<1x1x128xf32>
    %157 = vector.shape_cast %156 : vector<1x1x128xf32> to vector<1x128xf32>
    %c1_101 = arith.constant 1 : index
    %c0_102 = arith.constant 0 : index
    %c0_103 = arith.constant 0 : index
    %158 = vector.load %arg18[%c1_101, %c0_102, %c0_103] : memref<2x128x32xbf16, #tpu.memory_space<vmem>>, vector<1x128x32xbf16>
    %159 = vector.shape_cast %158 : vector<1x128x32xbf16> to vector<128x32xbf16>
    %c1_104 = arith.constant 1 : index
    %c0_105 = arith.constant 0 : index
    %c0_106 = arith.constant 0 : index
    %160 = vector.load %arg19[%c1_104, %c0_105, %c0_106] : memref<2x1x32xf32, #tpu.memory_space<vmem>>, vector<1x1x32xf32>
    %161 = vector.shape_cast %160 : vector<1x1x32xf32> to vector<1x32xf32>
    %cst_107 = arith.constant dense<0.000000e+00> : vector<16xf32>
    %162 = vector.multi_reduction <add>, %137, %cst_107 [1] : vector<16x32xf32> to vector<16xf32>
    %163 = vector.shape_cast %162 : vector<16xf32> to vector<16x1xf32>
    %cst_108 = arith.constant 3.200000e+01 : f32
    %164 = vector.broadcast %cst_108 : f32 to vector<16x1xf32>
    %165 = arith.divf %163, %164 : vector<16x1xf32>
    %166 = vector.broadcast %165 : vector<16x1xf32> to vector<16x32xf32>
    %167 = arith.subf %137, %166 : vector<16x32xf32>
    %168 = arith.mulf %167, %167 : vector<16x32xf32>
    %cst_109 = arith.constant dense<0.000000e+00> : vector<16xf32>
    %169 = vector.multi_reduction <add>, %168, %cst_109 [1] : vector<16x32xf32> to vector<16xf32>
    %170 = vector.shape_cast %169 : vector<16xf32> to vector<16x1xf32>
    %cst_110 = arith.constant 3.200000e+01 : f32
    %171 = vector.broadcast %cst_110 : f32 to vector<16x1xf32>
    %172 = arith.divf %170, %171 : vector<16x1xf32>
    %173 = vector.broadcast %165 : vector<16x1xf32> to vector<16x32xf32>
    %174 = arith.subf %137, %173 : vector<16x32xf32>
    %cst_111 = arith.constant 9.99999974E-6 : f32
    %175 = vector.broadcast %cst_111 : f32 to vector<16x1xf32>
    %176 = arith.addf %172, %175 : vector<16x1xf32>
    %177 = math.rsqrt %176 : vector<16x1xf32>
    %178 = vector.broadcast %177 : vector<16x1xf32> to vector<16x32xf32>
    %179 = arith.mulf %174, %178 : vector<16x32xf32>
    %180 = vector.broadcast %139 : vector<1x32xf32> to vector<16x32xf32>
    %181 = arith.mulf %179, %180 : vector<16x32xf32>
    %182 = vector.broadcast %141 : vector<1x32xf32> to vector<16x32xf32>
    %183 = arith.addf %181, %182 : vector<16x32xf32>
    %184 = arith.truncf %183 : vector<16x32xf32> to vector<16x32xbf16>
    %cst_112 = arith.constant dense<0.000000e+00> : vector<16x96xf32>
    %185 = tpu.matmul %184, %143, %cst_112 {dimension_numbers = #tpu.dot_dimension_numbers<[1], [0], [0], [1], [0, 0, 1, 1], [], []>} : vector<16x32xbf16>, vector<32x96xbf16>, vector<16x96xf32> -> vector<16x96xf32>
    %186 = vector.broadcast %145 : vector<1x96xf32> to vector<16x96xf32>
    %187 = arith.addf %185, %186 : vector<16x96xf32>
    %188 = vector.extract_strided_slice %187 {offsets = [0, 0], sizes = [16, 32], strides = [1, 1]} : vector<16x96xf32> to vector<16x32xf32>
    %189 = vector.extract_strided_slice %187 {offsets = [0, 32], sizes = [16, 32], strides = [1, 1]} : vector<16x96xf32> to vector<16x32xf32>
    %190 = vector.extract_strided_slice %187 {offsets = [0, 64], sizes = [16, 32], strides = [1, 1]} : vector<16x96xf32> to vector<16x32xf32>
    %191 = arith.truncf %188 : vector<16x32xf32> to vector<16x32xbf16>
    %192 = arith.truncf %189 : vector<16x32xf32> to vector<16x32xbf16>
    %cst_113 = arith.constant dense<0.000000e+00> : vector<16x16xf32>
    %193 = tpu.matmul %191, %192, %cst_113 {dimension_numbers = #tpu.dot_dimension_numbers<[1], [1], [0], [0], [0, 0, 1, 0], [], []>} : vector<16x32xbf16>, vector<16x32xbf16>, vector<16x16xf32> -> vector<16x16xf32>
    %194 = arith.addf %193, %18 : vector<16x16xf32>
    %cst_114 = arith.constant dense<0xFF800000> : vector<16xf32>
    %195 = vector.multi_reduction <maximumf>, %194, %cst_114 [1] : vector<16x16xf32> to vector<16xf32>
    %196 = vector.shape_cast %195 : vector<16xf32> to vector<16x1xf32>
    %197 = vector.broadcast %196 : vector<16x1xf32> to vector<16x16xf32>
    %198 = arith.subf %194, %197 : vector<16x16xf32>
    %199 = math.exp %198 : vector<16x16xf32>
    %cst_115 = arith.constant dense<0.000000e+00> : vector<16xf32>
    %200 = vector.multi_reduction <add>, %199, %cst_115 [1] : vector<16x16xf32> to vector<16xf32>
    %201 = vector.shape_cast %200 : vector<16xf32> to vector<16x1xf32>
    %202 = tpu.reciprocal %201 : vector<16x1xf32> -> vector<16x1xf32>
    %203 = vector.broadcast %202 : vector<16x1xf32> to vector<16x16xf32>
    %204 = arith.mulf %199, %203 : vector<16x16xf32>
    %205 = arith.truncf %204 : vector<16x16xf32> to vector<16x16xbf16>
    %206 = arith.truncf %190 : vector<16x32xf32> to vector<16x32xbf16>
    %cst_116 = arith.constant dense<0.000000e+00> : vector<16x32xf32>
    %207 = tpu.matmul %205, %206, %cst_116 {dimension_numbers = #tpu.dot_dimension_numbers<[1], [0], [0], [1], [0, 0, 1, 1], [], []>} : vector<16x16xbf16>, vector<16x32xbf16>, vector<16x32xf32> -> vector<16x32xf32>
    %208 = arith.truncf %207 : vector<16x32xf32> to vector<16x32xbf16>
    %cst_117 = arith.constant dense<0.000000e+00> : vector<16x32xf32>
    %209 = tpu.matmul %208, %147, %cst_117 {dimension_numbers = #tpu.dot_dimension_numbers<[1], [0], [0], [1], [0, 0, 1, 1], [], []>} : vector<16x32xbf16>, vector<32x32xbf16>, vector<16x32xf32> -> vector<16x32xf32>
    %210 = arith.addf %137, %209 : vector<16x32xf32>
    %211 = vector.broadcast %149 : vector<1x32xf32> to vector<16x32xf32>
    %212 = arith.addf %210, %211 : vector<16x32xf32>
    %cst_118 = arith.constant dense<0.000000e+00> : vector<16xf32>
    %213 = vector.multi_reduction <add>, %212, %cst_118 [1] : vector<16x32xf32> to vector<16xf32>
    %214 = vector.shape_cast %213 : vector<16xf32> to vector<16x1xf32>
    %cst_119 = arith.constant 3.200000e+01 : f32
    %215 = vector.broadcast %cst_119 : f32 to vector<16x1xf32>
    %216 = arith.divf %214, %215 : vector<16x1xf32>
    %217 = vector.broadcast %216 : vector<16x1xf32> to vector<16x32xf32>
    %218 = arith.subf %212, %217 : vector<16x32xf32>
    %219 = arith.mulf %218, %218 : vector<16x32xf32>
    %cst_120 = arith.constant dense<0.000000e+00> : vector<16xf32>
    %220 = vector.multi_reduction <add>, %219, %cst_120 [1] : vector<16x32xf32> to vector<16xf32>
    %221 = vector.shape_cast %220 : vector<16xf32> to vector<16x1xf32>
    %cst_121 = arith.constant 3.200000e+01 : f32
    %222 = vector.broadcast %cst_121 : f32 to vector<16x1xf32>
    %223 = arith.divf %221, %222 : vector<16x1xf32>
    %224 = vector.broadcast %216 : vector<16x1xf32> to vector<16x32xf32>
    %225 = arith.subf %212, %224 : vector<16x32xf32>
    %cst_122 = arith.constant 9.99999974E-6 : f32
    %226 = vector.broadcast %cst_122 : f32 to vector<16x1xf32>
    %227 = arith.addf %223, %226 : vector<16x1xf32>
    %228 = math.rsqrt %227 : vector<16x1xf32>
    %229 = vector.broadcast %228 : vector<16x1xf32> to vector<16x32xf32>
    %230 = arith.mulf %225, %229 : vector<16x32xf32>
    %231 = vector.broadcast %151 : vector<1x32xf32> to vector<16x32xf32>
    %232 = arith.mulf %230, %231 : vector<16x32xf32>
    %233 = vector.broadcast %153 : vector<1x32xf32> to vector<16x32xf32>
    %234 = arith.addf %232, %233 : vector<16x32xf32>
    %235 = arith.truncf %234 : vector<16x32xf32> to vector<16x32xbf16>
    %cst_123 = arith.constant dense<0.000000e+00> : vector<16x128xf32>
    %236 = tpu.matmul %235, %155, %cst_123 {dimension_numbers = #tpu.dot_dimension_numbers<[1], [0], [0], [1], [0, 0, 1, 1], [], []>} : vector<16x32xbf16>, vector<32x128xbf16>, vector<16x128xf32> -> vector<16x128xf32>
    %237 = vector.broadcast %157 : vector<1x128xf32> to vector<16x128xf32>
    %238 = arith.addf %236, %237 : vector<16x128xf32>
    %239 = arith.mulf %238, %238 : vector<16x128xf32>
    %240 = arith.mulf %238, %239 : vector<16x128xf32>
    %cst_124 = arith.constant 4.471500e-02 : f32
    %241 = vector.broadcast %cst_124 : f32 to vector<16x128xf32>
    %242 = arith.mulf %241, %240 : vector<16x128xf32>
    %243 = arith.addf %238, %242 : vector<16x128xf32>
    %cst_125 = arith.constant 0.797884583 : f32
    %244 = vector.broadcast %cst_125 : f32 to vector<16x128xf32>
    %245 = arith.mulf %244, %243 : vector<16x128xf32>
    %246 = math.tanh %245 : vector<16x128xf32>
    %cst_126 = arith.constant 1.000000e+00 : f32
    %247 = vector.broadcast %cst_126 : f32 to vector<16x128xf32>
    %248 = arith.addf %247, %246 : vector<16x128xf32>
    %cst_127 = arith.constant 5.000000e-01 : f32
    %249 = vector.broadcast %cst_127 : f32 to vector<16x128xf32>
    %250 = arith.mulf %249, %248 : vector<16x128xf32>
    %251 = arith.mulf %238, %250 : vector<16x128xf32>
    %252 = arith.truncf %251 : vector<16x128xf32> to vector<16x128xbf16>
    %cst_128 = arith.constant dense<0.000000e+00> : vector<16x32xf32>
    %253 = tpu.matmul %252, %159, %cst_128 {dimension_numbers = #tpu.dot_dimension_numbers<[1], [0], [0], [1], [0, 0, 1, 1], [], []>} : vector<16x128xbf16>, vector<128x32xbf16>, vector<16x32xf32> -> vector<16x32xf32>
    %254 = vector.broadcast %161 : vector<1x32xf32> to vector<16x32xf32>
    %255 = arith.addf %253, %254 : vector<16x32xf32>
    %256 = arith.addf %212, %255 : vector<16x32xf32>
    %c0_129 = arith.constant 0 : index
    %c0_130 = arith.constant 0 : index
    %257 = vector.load %arg20[%c0_129, %c0_130] : memref<1x32xf32, #tpu.memory_space<vmem>>, vector<1x32xf32>
    %c0_131 = arith.constant 0 : index
    %c0_132 = arith.constant 0 : index
    %258 = vector.load %arg21[%c0_131, %c0_132] : memref<1x32xf32, #tpu.memory_space<vmem>>, vector<1x32xf32>
    %cst_133 = arith.constant dense<0.000000e+00> : vector<16xf32>
    %259 = vector.multi_reduction <add>, %256, %cst_133 [1] : vector<16x32xf32> to vector<16xf32>
    %260 = vector.shape_cast %259 : vector<16xf32> to vector<16x1xf32>
    %cst_134 = arith.constant 3.200000e+01 : f32
    %261 = vector.broadcast %cst_134 : f32 to vector<16x1xf32>
    %262 = arith.divf %260, %261 : vector<16x1xf32>
    %263 = vector.broadcast %262 : vector<16x1xf32> to vector<16x32xf32>
    %264 = arith.subf %256, %263 : vector<16x32xf32>
    %265 = arith.mulf %264, %264 : vector<16x32xf32>
    %cst_135 = arith.constant dense<0.000000e+00> : vector<16xf32>
    %266 = vector.multi_reduction <add>, %265, %cst_135 [1] : vector<16x32xf32> to vector<16xf32>
    %267 = vector.shape_cast %266 : vector<16xf32> to vector<16x1xf32>
    %cst_136 = arith.constant 3.200000e+01 : f32
    %268 = vector.broadcast %cst_136 : f32 to vector<16x1xf32>
    %269 = arith.divf %267, %268 : vector<16x1xf32>
    %270 = vector.broadcast %262 : vector<16x1xf32> to vector<16x32xf32>
    %271 = arith.subf %256, %270 : vector<16x32xf32>
    %cst_137 = arith.constant 9.99999974E-6 : f32
    %272 = vector.broadcast %cst_137 : f32 to vector<16x1xf32>
    %273 = arith.addf %269, %272 : vector<16x1xf32>
    %274 = math.rsqrt %273 : vector<16x1xf32>
    %275 = vector.broadcast %274 : vector<16x1xf32> to vector<16x32xf32>
    %276 = arith.mulf %271, %275 : vector<16x32xf32>
    %277 = vector.broadcast %257 : vector<1x32xf32> to vector<16x32xf32>
    %278 = arith.mulf %276, %277 : vector<16x32xf32>
    %279 = vector.broadcast %258 : vector<1x32xf32> to vector<16x32xf32>
    %280 = arith.addf %278, %279 : vector<16x32xf32>
    %c0_138 = arith.constant 0 : index
    %c0_139 = arith.constant 0 : index
    %281 = vector.load %arg3[%c0_138, %c0_139] : memref<48x1xi32, #tpu.memory_space<vmem>>, vector<48x1xi32>
    %282 = tpu.iota {dimensions = array<i32: 1>} : vector<48x16xi32>
    %283 = vector.broadcast %281 : vector<48x1xi32> to vector<48x16xi32>
    %284 = arith.cmpi eq, %282, %283 : vector<48x16xi32>
    %cst_140 = arith.constant 1.000000e+00 : f32
    %cst_141 = arith.constant 0.000000e+00 : f32
    %285 = vector.broadcast %cst_140 : f32 to vector<48x16xf32>
    %286 = vector.broadcast %cst_141 : f32 to vector<48x16xf32>
    %287 = arith.select %284, %285, %286 : vector<48x16xi1>, vector<48x16xf32>
    %288 = arith.truncf %287 : vector<48x16xf32> to vector<48x16xbf16>
    %c-1_i32 = arith.constant -1 : i32
    %289 = vector.broadcast %c-1_i32 : i32 to vector<48x1xi32>
    %290 = arith.cmpi eq, %281, %289 : vector<48x1xi32>
    %cst_142 = arith.constant 1.000000e+00 : f32
    %cst_143 = arith.constant 0.000000e+00 : f32
    %291 = vector.broadcast %cst_142 : f32 to vector<48x1xf32>
    %292 = vector.broadcast %cst_143 : f32 to vector<48x1xf32>
    %293 = arith.select %290, %291, %292 : vector<48x1xi1>, vector<48x1xf32>
    %294 = arith.truncf %280 : vector<16x32xf32> to vector<16x32xbf16>
    %cst_144 = arith.constant dense<0.000000e+00> : vector<48x32xf32>
    %295 = tpu.matmul %288, %294, %cst_144 {dimension_numbers = #tpu.dot_dimension_numbers<[1], [0], [0], [1], [0, 0, 1, 1], [], []>} : vector<48x16xbf16>, vector<16x32xbf16>, vector<48x32xf32> -> vector<48x32xf32>
    %c0_145 = arith.constant 0 : index
    %c0_146 = arith.constant 0 : index
    %296 = vector.load %arg22[%c0_145, %c0_146] : memref<1x32xf32, #tpu.memory_space<vmem>>, vector<1x32xf32>
    %297 = vector.broadcast %293 : vector<48x1xf32> to vector<48x32xf32>
    %298 = vector.broadcast %296 : vector<1x32xf32> to vector<48x32xf32>
    %299 = arith.mulf %297, %298 : vector<48x32xf32>
    %300 = arith.addf %295, %299 : vector<48x32xf32>
    %c0_147 = arith.constant 0 : index
    %c0_148 = arith.constant 0 : index
    %301 = vector.load %arg23[%c0_147, %c0_148] : memref<48x32xf32, #tpu.memory_space<vmem>>, vector<48x32xf32>
    %302 = arith.addf %300, %301 : vector<48x32xf32>
    %c0_149 = arith.constant 0 : index
    %c0_150 = arith.constant 0 : index
    %303 = vector.load %arg24[%c0_149, %c0_150] : memref<48x48xf32, #tpu.memory_space<vmem>>, vector<48x48xf32>
    %c0_151 = arith.constant 0 : index
    %c0_152 = arith.constant 0 : index
    %c0_153 = arith.constant 0 : index
    %304 = vector.load %arg25[%c0_151, %c0_152, %c0_153] : memref<1x1x32xf32, #tpu.memory_space<vmem>>, vector<1x1x32xf32>
    %305 = vector.shape_cast %304 : vector<1x1x32xf32> to vector<1x32xf32>
    %c0_154 = arith.constant 0 : index
    %c0_155 = arith.constant 0 : index
    %c0_156 = arith.constant 0 : index
    %306 = vector.load %arg26[%c0_154, %c0_155, %c0_156] : memref<1x1x32xf32, #tpu.memory_space<vmem>>, vector<1x1x32xf32>
    %307 = vector.shape_cast %306 : vector<1x1x32xf32> to vector<1x32xf32>
    %c0_157 = arith.constant 0 : index
    %c0_158 = arith.constant 0 : index
    %c0_159 = arith.constant 0 : index
    %308 = vector.load %arg27[%c0_157, %c0_158, %c0_159] : memref<1x32x96xbf16, #tpu.memory_space<vmem>>, vector<1x32x96xbf16>
    %309 = vector.shape_cast %308 : vector<1x32x96xbf16> to vector<32x96xbf16>
    %c0_160 = arith.constant 0 : index
    %c0_161 = arith.constant 0 : index
    %c0_162 = arith.constant 0 : index
    %310 = vector.load %arg28[%c0_160, %c0_161, %c0_162] : memref<1x1x96xf32, #tpu.memory_space<vmem>>, vector<1x1x96xf32>
    %311 = vector.shape_cast %310 : vector<1x1x96xf32> to vector<1x96xf32>
    %c0_163 = arith.constant 0 : index
    %c0_164 = arith.constant 0 : index
    %c0_165 = arith.constant 0 : index
    %312 = vector.load %arg29[%c0_163, %c0_164, %c0_165] : memref<1x32x32xbf16, #tpu.memory_space<vmem>>, vector<1x32x32xbf16>
    %313 = vector.shape_cast %312 : vector<1x32x32xbf16> to vector<32x32xbf16>
    %c0_166 = arith.constant 0 : index
    %c0_167 = arith.constant 0 : index
    %c0_168 = arith.constant 0 : index
    %314 = vector.load %arg30[%c0_166, %c0_167, %c0_168] : memref<1x1x32xf32, #tpu.memory_space<vmem>>, vector<1x1x32xf32>
    %315 = vector.shape_cast %314 : vector<1x1x32xf32> to vector<1x32xf32>
    %c0_169 = arith.constant 0 : index
    %c0_170 = arith.constant 0 : index
    %c0_171 = arith.constant 0 : index
    %316 = vector.load %arg31[%c0_169, %c0_170, %c0_171] : memref<1x1x32xf32, #tpu.memory_space<vmem>>, vector<1x1x32xf32>
    %317 = vector.shape_cast %316 : vector<1x1x32xf32> to vector<1x32xf32>
    %c0_172 = arith.constant 0 : index
    %c0_173 = arith.constant 0 : index
    %c0_174 = arith.constant 0 : index
    %318 = vector.load %arg32[%c0_172, %c0_173, %c0_174] : memref<1x1x32xf32, #tpu.memory_space<vmem>>, vector<1x1x32xf32>
    %319 = vector.shape_cast %318 : vector<1x1x32xf32> to vector<1x32xf32>
    %c0_175 = arith.constant 0 : index
    %c0_176 = arith.constant 0 : index
    %c0_177 = arith.constant 0 : index
    %320 = vector.load %arg33[%c0_175, %c0_176, %c0_177] : memref<1x32x128xbf16, #tpu.memory_space<vmem>>, vector<1x32x128xbf16>
    %321 = vector.shape_cast %320 : vector<1x32x128xbf16> to vector<32x128xbf16>
    %c0_178 = arith.constant 0 : index
    %c0_179 = arith.constant 0 : index
    %c0_180 = arith.constant 0 : index
    %322 = vector.load %arg34[%c0_178, %c0_179, %c0_180] : memref<1x1x128xf32, #tpu.memory_space<vmem>>, vector<1x1x128xf32>
    %323 = vector.shape_cast %322 : vector<1x1x128xf32> to vector<1x128xf32>
    %c0_181 = arith.constant 0 : index
    %c0_182 = arith.constant 0 : index
    %c0_183 = arith.constant 0 : index
    %324 = vector.load %arg35[%c0_181, %c0_182, %c0_183] : memref<1x128x32xbf16, #tpu.memory_space<vmem>>, vector<1x128x32xbf16>
    %325 = vector.shape_cast %324 : vector<1x128x32xbf16> to vector<128x32xbf16>
    %c0_184 = arith.constant 0 : index
    %c0_185 = arith.constant 0 : index
    %c0_186 = arith.constant 0 : index
    %326 = vector.load %arg36[%c0_184, %c0_185, %c0_186] : memref<1x1x32xf32, #tpu.memory_space<vmem>>, vector<1x1x32xf32>
    %327 = vector.shape_cast %326 : vector<1x1x32xf32> to vector<1x32xf32>
    %cst_187 = arith.constant dense<0.000000e+00> : vector<48xf32>
    %328 = vector.multi_reduction <add>, %302, %cst_187 [1] : vector<48x32xf32> to vector<48xf32>
    %329 = vector.shape_cast %328 : vector<48xf32> to vector<48x1xf32>
    %cst_188 = arith.constant 3.200000e+01 : f32
    %330 = vector.broadcast %cst_188 : f32 to vector<48x1xf32>
    %331 = arith.divf %329, %330 : vector<48x1xf32>
    %332 = vector.broadcast %331 : vector<48x1xf32> to vector<48x32xf32>
    %333 = arith.subf %302, %332 : vector<48x32xf32>
    %334 = arith.mulf %333, %333 : vector<48x32xf32>
    %cst_189 = arith.constant dense<0.000000e+00> : vector<48xf32>
    %335 = vector.multi_reduction <add>, %334, %cst_189 [1] : vector<48x32xf32> to vector<48xf32>
    %336 = vector.shape_cast %335 : vector<48xf32> to vector<48x1xf32>
    %cst_190 = arith.constant 3.200000e+01 : f32
    %337 = vector.broadcast %cst_190 : f32 to vector<48x1xf32>
    %338 = arith.divf %336, %337 : vector<48x1xf32>
    %339 = vector.broadcast %331 : vector<48x1xf32> to vector<48x32xf32>
    %340 = arith.subf %302, %339 : vector<48x32xf32>
    %cst_191 = arith.constant 9.99999974E-6 : f32
    %341 = vector.broadcast %cst_191 : f32 to vector<48x1xf32>
    %342 = arith.addf %338, %341 : vector<48x1xf32>
    %343 = math.rsqrt %342 : vector<48x1xf32>
    %344 = vector.broadcast %343 : vector<48x1xf32> to vector<48x32xf32>
    %345 = arith.mulf %340, %344 : vector<48x32xf32>
    %346 = vector.broadcast %305 : vector<1x32xf32> to vector<48x32xf32>
    %347 = arith.mulf %345, %346 : vector<48x32xf32>
    %348 = vector.broadcast %307 : vector<1x32xf32> to vector<48x32xf32>
    %349 = arith.addf %347, %348 : vector<48x32xf32>
    %350 = arith.truncf %349 : vector<48x32xf32> to vector<48x32xbf16>
    %cst_192 = arith.constant dense<0.000000e+00> : vector<48x96xf32>
    %351 = tpu.matmul %350, %309, %cst_192 {dimension_numbers = #tpu.dot_dimension_numbers<[1], [0], [0], [1], [0, 0, 1, 1], [], []>} : vector<48x32xbf16>, vector<32x96xbf16>, vector<48x96xf32> -> vector<48x96xf32>
    %352 = vector.broadcast %311 : vector<1x96xf32> to vector<48x96xf32>
    %353 = arith.addf %351, %352 : vector<48x96xf32>
    %354 = vector.extract_strided_slice %353 {offsets = [0, 0], sizes = [48, 32], strides = [1, 1]} : vector<48x96xf32> to vector<48x32xf32>
    %355 = vector.extract_strided_slice %353 {offsets = [0, 32], sizes = [48, 32], strides = [1, 1]} : vector<48x96xf32> to vector<48x32xf32>
    %356 = vector.extract_strided_slice %353 {offsets = [0, 64], sizes = [48, 32], strides = [1, 1]} : vector<48x96xf32> to vector<48x32xf32>
    %357 = arith.truncf %354 : vector<48x32xf32> to vector<48x32xbf16>
    %358 = arith.truncf %355 : vector<48x32xf32> to vector<48x32xbf16>
    %cst_193 = arith.constant dense<0.000000e+00> : vector<48x48xf32>
    %359 = tpu.matmul %357, %358, %cst_193 {dimension_numbers = #tpu.dot_dimension_numbers<[1], [1], [0], [0], [0, 0, 1, 0], [], []>} : vector<48x32xbf16>, vector<48x32xbf16>, vector<48x48xf32> -> vector<48x48xf32>
    %360 = arith.addf %359, %303 : vector<48x48xf32>
    %cst_194 = arith.constant dense<0xFF800000> : vector<48xf32>
    %361 = vector.multi_reduction <maximumf>, %360, %cst_194 [1] : vector<48x48xf32> to vector<48xf32>
    %362 = vector.shape_cast %361 : vector<48xf32> to vector<48x1xf32>
    %363 = vector.broadcast %362 : vector<48x1xf32> to vector<48x48xf32>
    %364 = arith.subf %360, %363 : vector<48x48xf32>
    %365 = math.exp %364 : vector<48x48xf32>
    %cst_195 = arith.constant dense<0.000000e+00> : vector<48xf32>
    %366 = vector.multi_reduction <add>, %365, %cst_195 [1] : vector<48x48xf32> to vector<48xf32>
    %367 = vector.shape_cast %366 : vector<48xf32> to vector<48x1xf32>
    %368 = tpu.reciprocal %367 : vector<48x1xf32> -> vector<48x1xf32>
    %369 = vector.broadcast %368 : vector<48x1xf32> to vector<48x48xf32>
    %370 = arith.mulf %365, %369 : vector<48x48xf32>
    %371 = arith.truncf %370 : vector<48x48xf32> to vector<48x48xbf16>
    %372 = arith.truncf %356 : vector<48x32xf32> to vector<48x32xbf16>
    %cst_196 = arith.constant dense<0.000000e+00> : vector<48x32xf32>
    %373 = tpu.matmul %371, %372, %cst_196 {dimension_numbers = #tpu.dot_dimension_numbers<[1], [0], [0], [1], [0, 0, 1, 1], [], []>} : vector<48x48xbf16>, vector<48x32xbf16>, vector<48x32xf32> -> vector<48x32xf32>
    %374 = arith.truncf %373 : vector<48x32xf32> to vector<48x32xbf16>
    %cst_197 = arith.constant dense<0.000000e+00> : vector<48x32xf32>
    %375 = tpu.matmul %374, %313, %cst_197 {dimension_numbers = #tpu.dot_dimension_numbers<[1], [0], [0], [1], [0, 0, 1, 1], [], []>} : vector<48x32xbf16>, vector<32x32xbf16>, vector<48x32xf32> -> vector<48x32xf32>
    %376 = arith.addf %302, %375 : vector<48x32xf32>
    %377 = vector.broadcast %315 : vector<1x32xf32> to vector<48x32xf32>
    %378 = arith.addf %376, %377 : vector<48x32xf32>
    %cst_198 = arith.constant dense<0.000000e+00> : vector<48xf32>
    %379 = vector.multi_reduction <add>, %378, %cst_198 [1] : vector<48x32xf32> to vector<48xf32>
    %380 = vector.shape_cast %379 : vector<48xf32> to vector<48x1xf32>
    %cst_199 = arith.constant 3.200000e+01 : f32
    %381 = vector.broadcast %cst_199 : f32 to vector<48x1xf32>
    %382 = arith.divf %380, %381 : vector<48x1xf32>
    %383 = vector.broadcast %382 : vector<48x1xf32> to vector<48x32xf32>
    %384 = arith.subf %378, %383 : vector<48x32xf32>
    %385 = arith.mulf %384, %384 : vector<48x32xf32>
    %cst_200 = arith.constant dense<0.000000e+00> : vector<48xf32>
    %386 = vector.multi_reduction <add>, %385, %cst_200 [1] : vector<48x32xf32> to vector<48xf32>
    %387 = vector.shape_cast %386 : vector<48xf32> to vector<48x1xf32>
    %cst_201 = arith.constant 3.200000e+01 : f32
    %388 = vector.broadcast %cst_201 : f32 to vector<48x1xf32>
    %389 = arith.divf %387, %388 : vector<48x1xf32>
    %390 = vector.broadcast %382 : vector<48x1xf32> to vector<48x32xf32>
    %391 = arith.subf %378, %390 : vector<48x32xf32>
    %cst_202 = arith.constant 9.99999974E-6 : f32
    %392 = vector.broadcast %cst_202 : f32 to vector<48x1xf32>
    %393 = arith.addf %389, %392 : vector<48x1xf32>
    %394 = math.rsqrt %393 : vector<48x1xf32>
    %395 = vector.broadcast %394 : vector<48x1xf32> to vector<48x32xf32>
    %396 = arith.mulf %391, %395 : vector<48x32xf32>
    %397 = vector.broadcast %317 : vector<1x32xf32> to vector<48x32xf32>
    %398 = arith.mulf %396, %397 : vector<48x32xf32>
    %399 = vector.broadcast %319 : vector<1x32xf32> to vector<48x32xf32>
    %400 = arith.addf %398, %399 : vector<48x32xf32>
    %401 = arith.truncf %400 : vector<48x32xf32> to vector<48x32xbf16>
    %cst_203 = arith.constant dense<0.000000e+00> : vector<48x128xf32>
    %402 = tpu.matmul %401, %321, %cst_203 {dimension_numbers = #tpu.dot_dimension_numbers<[1], [0], [0], [1], [0, 0, 1, 1], [], []>} : vector<48x32xbf16>, vector<32x128xbf16>, vector<48x128xf32> -> vector<48x128xf32>
    %403 = vector.broadcast %323 : vector<1x128xf32> to vector<48x128xf32>
    %404 = arith.addf %402, %403 : vector<48x128xf32>
    %405 = arith.mulf %404, %404 : vector<48x128xf32>
    %406 = arith.mulf %404, %405 : vector<48x128xf32>
    %cst_204 = arith.constant 4.471500e-02 : f32
    %407 = vector.broadcast %cst_204 : f32 to vector<48x128xf32>
    %408 = arith.mulf %407, %406 : vector<48x128xf32>
    %409 = arith.addf %404, %408 : vector<48x128xf32>
    %cst_205 = arith.constant 0.797884583 : f32
    %410 = vector.broadcast %cst_205 : f32 to vector<48x128xf32>
    %411 = arith.mulf %410, %409 : vector<48x128xf32>
    %412 = math.tanh %411 : vector<48x128xf32>
    %cst_206 = arith.constant 1.000000e+00 : f32
    %413 = vector.broadcast %cst_206 : f32 to vector<48x128xf32>
    %414 = arith.addf %413, %412 : vector<48x128xf32>
    %cst_207 = arith.constant 5.000000e-01 : f32
    %415 = vector.broadcast %cst_207 : f32 to vector<48x128xf32>
    %416 = arith.mulf %415, %414 : vector<48x128xf32>
    %417 = arith.mulf %404, %416 : vector<48x128xf32>
    %418 = arith.truncf %417 : vector<48x128xf32> to vector<48x128xbf16>
    %cst_208 = arith.constant dense<0.000000e+00> : vector<48x32xf32>
    %419 = tpu.matmul %418, %325, %cst_208 {dimension_numbers = #tpu.dot_dimension_numbers<[1], [0], [0], [1], [0, 0, 1, 1], [], []>} : vector<48x128xbf16>, vector<128x32xbf16>, vector<48x32xf32> -> vector<48x32xf32>
    %420 = vector.broadcast %327 : vector<1x32xf32> to vector<48x32xf32>
    %421 = arith.addf %419, %420 : vector<48x32xf32>
    %422 = arith.addf %378, %421 : vector<48x32xf32>
    %423 = arith.truncf %422 : vector<48x32xf32> to vector<48x32xbf16>
    %c0_209 = arith.constant 0 : index
    %c0_210 = arith.constant 0 : index
    %424 = vector.load %arg37[%c0_209, %c0_210] : memref<32x128xbf16, #tpu.memory_space<vmem>>, vector<32x128xbf16>
    %cst_211 = arith.constant dense<0.000000e+00> : vector<48x128xf32>
    %425 = tpu.matmul %423, %424, %cst_211 {dimension_numbers = #tpu.dot_dimension_numbers<[1], [0], [0], [1], [0, 0, 1, 1], [], []>} : vector<48x32xbf16>, vector<32x128xbf16>, vector<48x128xf32> -> vector<48x128xf32>
    %c0_212 = arith.constant 0 : index
    %c0_213 = arith.constant 0 : index
    %426 = vector.load %arg38[%c0_212, %c0_213] : memref<1x128xf32, #tpu.memory_space<vmem>>, vector<1x128xf32>
    %427 = vector.broadcast %426 : vector<1x128xf32> to vector<48x128xf32>
    %428 = arith.addf %425, %427 : vector<48x128xf32>
    %c0_214 = arith.constant 0 : index
    %c0_215 = arith.constant 0 : index
    %429 = vector.load %arg39[%c0_214, %c0_215] : memref<48x128xf32, #tpu.memory_space<vmem>>, vector<48x128xf32>
    tpu.vector_store %arg39[%c0_214, %c0_215], %428 {strides = array<i32>} : memref<48x128xf32, #tpu.memory_space<vmem>>, vector<48x128xf32>,
    return
  }
  func.func @transform_0(%arg0: i32) -> (i32, i32) {
    %c0_i32 = arith.constant 0 : i32
    %c0_i32_0 = arith.constant 0 : i32
    %c0_i32_1 = arith.constant 0 : i32
    return %c0_i32, %c0_i32_0 : i32, i32
  }
  func.func @transform_1(%arg0: i32) -> (i32, i32) {
    %c0_i32 = arith.constant 0 : i32
    %c0_i32_0 = arith.constant 0 : i32
    %c0_i32_1 = arith.constant 0 : i32
    return %c0_i32, %c0_i32_0 : i32, i32
  }
  func.func @transform_2(%arg0: i32) -> (i32, i32) {
    %c0_i32 = arith.constant 0 : i32
    %c0_i32_0 = arith.constant 0 : i32
    %c0_i32_1 = arith.constant 0 : i32
    return %c0_i32, %c0_i32_0 : i32, i32
  }
  func.func @transform_3(%arg0: i32) -> (i32, i32) {
    %c0_i32 = arith.constant 0 : i32
    %c0_i32_0 = arith.constant 0 : i32
    %c0_i32_1 = arith.constant 0 : i32
    return %c0_i32, %c0_i32_0 : i32, i32
  }
  func.func @transform_4(%arg0: i32) -> (i32, i32) {
    %c0_i32 = arith.constant 0 : i32
    %c0_i32_0 = arith.constant 0 : i32
    %c0_i32_1 = arith.constant 0 : i32
    return %c0_i32, %c0_i32_0 : i32, i32
  }
  func.func @transform_5(%arg0: i32) -> (i32, i32) {
    %c0_i32 = arith.constant 0 : i32
    %c0_i32_0 = arith.constant 0 : i32
    %c0_i32_1 = arith.constant 0 : i32
    return %c0_i32, %c0_i32_0 : i32, i32
  }
  func.func @transform_6(%arg0: i32) -> (i32, i32) {
    %c0_i32 = arith.constant 0 : i32
    %c0_i32_0 = arith.constant 0 : i32
    %c0_i32_1 = arith.constant 0 : i32
    return %c0_i32, %c0_i32_0 : i32, i32
  }
  func.func @transform_7(%arg0: i32) -> (i32, i32, i32) {
    %c0_i32 = arith.constant 0 : i32
    %c0_i32_0 = arith.constant 0 : i32
    %c0_i32_1 = arith.constant 0 : i32
    %c0_i32_2 = arith.constant 0 : i32
    return %c0_i32, %c0_i32_0, %c0_i32_1 : i32, i32, i32
  }
  func.func @transform_8(%arg0: i32) -> (i32, i32, i32) {
    %c0_i32 = arith.constant 0 : i32
    %c0_i32_0 = arith.constant 0 : i32
    %c0_i32_1 = arith.constant 0 : i32
    %c0_i32_2 = arith.constant 0 : i32
    return %c0_i32, %c0_i32_0, %c0_i32_1 : i32, i32, i32
  }
  func.func @transform_9(%arg0: i32) -> (i32, i32, i32) {
    %c0_i32 = arith.constant 0 : i32
    %c0_i32_0 = arith.constant 0 : i32
    %c0_i32_1 = arith.constant 0 : i32
    %c0_i32_2 = arith.constant 0 : i32
    return %c0_i32, %c0_i32_0, %c0_i32_1 : i32, i32, i32
  }
  func.func @transform_10(%arg0: i32) -> (i32, i32, i32) {
    %c0_i32 = arith.constant 0 : i32
    %c0_i32_0 = arith.constant 0 : i32
    %c0_i32_1 = arith.constant 0 : i32
    %c0_i32_2 = arith.constant 0 : i32
    return %c0_i32, %c0_i32_0, %c0_i32_1 : i32, i32, i32
  }
  func.func @transform_11(%arg0: i32) -> (i32, i32, i32) {
    %c0_i32 = arith.constant 0 : i32
    %c0_i32_0 = arith.constant 0 : i32
    %c0_i32_1 = arith.constant 0 : i32
    %c0_i32_2 = arith.constant 0 : i32
    return %c0_i32, %c0_i32_0, %c0_i32_1 : i32, i32, i32
  }
  func.func @transform_12(%arg0: i32) -> (i32, i32, i32) {
    %c0_i32 = arith.constant 0 : i32
    %c0_i32_0 = arith.constant 0 : i32
    %c0_i32_1 = arith.constant 0 : i32
    %c0_i32_2 = arith.constant 0 : i32
    return %c0_i32, %c0_i32_0, %c0_i32_1 : i32, i32, i32
  }
  func.func @transform_13(%arg0: i32) -> (i32, i32, i32) {
    %c0_i32 = arith.constant 0 : i32
    %c0_i32_0 = arith.constant 0 : i32
    %c0_i32_1 = arith.constant 0 : i32
    %c0_i32_2 = arith.constant 0 : i32
    return %c0_i32, %c0_i32_0, %c0_i32_1 : i32, i32, i32
  }
  func.func @transform_14(%arg0: i32) -> (i32, i32, i32) {
    %c0_i32 = arith.constant 0 : i32
    %c0_i32_0 = arith.constant 0 : i32
    %c0_i32_1 = arith.constant 0 : i32
    %c0_i32_2 = arith.constant 0 : i32
    return %c0_i32, %c0_i32_0, %c0_i32_1 : i32, i32, i32
  }
  func.func @transform_15(%arg0: i32) -> (i32, i32, i32) {
    %c0_i32 = arith.constant 0 : i32
    %c0_i32_0 = arith.constant 0 : i32
    %c0_i32_1 = arith.constant 0 : i32
    %c0_i32_2 = arith.constant 0 : i32
    return %c0_i32, %c0_i32_0, %c0_i32_1 : i32, i32, i32
  }
  func.func @transform_16(%arg0: i32) -> (i32, i32, i32) {
    %c0_i32 = arith.constant 0 : i32
    %c0_i32_0 = arith.constant 0 : i32
    %c0_i32_1 = arith.constant 0 : i32
    %c0_i32_2 = arith.constant 0 : i32
    return %c0_i32, %c0_i32_0, %c0_i32_1 : i32, i32, i32
  }
  func.func @transform_17(%arg0: i32) -> (i32, i32, i32) {
    %c0_i32 = arith.constant 0 : i32
    %c0_i32_0 = arith.constant 0 : i32
    %c0_i32_1 = arith.constant 0 : i32
    %c0_i32_2 = arith.constant 0 : i32
    return %c0_i32, %c0_i32_0, %c0_i32_1 : i32, i32, i32
  }
  func.func @transform_18(%arg0: i32) -> (i32, i32, i32) {
    %c0_i32 = arith.constant 0 : i32
    %c0_i32_0 = arith.constant 0 : i32
    %c0_i32_1 = arith.constant 0 : i32
    %c0_i32_2 = arith.constant 0 : i32
    return %c0_i32, %c0_i32_0, %c0_i32_1 : i32, i32, i32
  }
  func.func @transform_19(%arg0: i32) -> (i32, i32) {
    %c0_i32 = arith.constant 0 : i32
    %c0_i32_0 = arith.constant 0 : i32
    %c0_i32_1 = arith.constant 0 : i32
    return %c0_i32, %c0_i32_0 : i32, i32
  }
  func.func @transform_20(%arg0: i32) -> (i32, i32) {
    %c0_i32 = arith.constant 0 : i32
    %c0_i32_0 = arith.constant 0 : i32
    %c0_i32_1 = arith.constant 0 : i32
    return %c0_i32, %c0_i32_0 : i32, i32
  }
  func.func @transform_21(%arg0: i32) -> (i32, i32) {
    %c0_i32 = arith.constant 0 : i32
    %c0_i32_0 = arith.constant 0 : i32
    %c0_i32_1 = arith.constant 0 : i32
    return %c0_i32, %c0_i32_0 : i32, i32
  }
  func.func @transform_22(%arg0: i32) -> (i32, i32) {
    %c0_i32 = arith.constant 0 : i32
    %c0_i32_0 = arith.constant 0 : i32
    %c0_i32_1 = arith.constant 0 : i32
    return %c0_i32, %c0_i32_0 : i32, i32
  }
  func.func @transform_23(%arg0: i32) -> (i32, i32) {
    %c0_i32 = arith.constant 0 : i32
    %c0_i32_0 = arith.constant 0 : i32
    %c0_i32_1 = arith.constant 0 : i32
    return %c0_i32, %c0_i32_0 : i32, i32
  }
  func.func @transform_24(%arg0: i32) -> (i32, i32, i32) {
    %c0_i32 = arith.constant 0 : i32
    %c0_i32_0 = arith.constant 0 : i32
    %c0_i32_1 = arith.constant 0 : i32
    %c0_i32_2 = arith.constant 0 : i32
    return %c0_i32, %c0_i32_0, %c0_i32_1 : i32, i32, i32
  }
  func.func @transform_25(%arg0: i32) -> (i32, i32, i32) {
    %c0_i32 = arith.constant 0 : i32
    %c0_i32_0 = arith.constant 0 : i32
    %c0_i32_1 = arith.constant 0 : i32
    %c0_i32_2 = arith.constant 0 : i32
    return %c0_i32, %c0_i32_0, %c0_i32_1 : i32, i32, i32
  }
  func.func @transform_26(%arg0: i32) -> (i32, i32, i32) {
    %c0_i32 = arith.constant 0 : i32
    %c0_i32_0 = arith.constant 0 : i32
    %c0_i32_1 = arith.constant 0 : i32
    %c0_i32_2 = arith.constant 0 : i32
    return %c0_i32, %c0_i32_0, %c0_i32_1 : i32, i32, i32
  }
  func.func @transform_27(%arg0: i32) -> (i32, i32, i32) {
    %c0_i32 = arith.constant 0 : i32
    %c0_i32_0 = arith.constant 0 : i32
    %c0_i32_1 = arith.constant 0 : i32
    %c0_i32_2 = arith.constant 0 : i32
    return %c0_i32, %c0_i32_0, %c0_i32_1 : i32, i32, i32
  }
  func.func @transform_28(%arg0: i32) -> (i32, i32, i32) {
    %c0_i32 = arith.constant 0 : i32
    %c0_i32_0 = arith.constant 0 : i32
    %c0_i32_1 = arith.constant 0 : i32
    %c0_i32_2 = arith.constant 0 : i32
    return %c0_i32, %c0_i32_0, %c0_i32_1 : i32, i32, i32
  }
  func.func @transform_29(%arg0: i32) -> (i32, i32, i32) {
    %c0_i32 = arith.constant 0 : i32
    %c0_i32_0 = arith.constant 0 : i32
    %c0_i32_1 = arith.constant 0 : i32
    %c0_i32_2 = arith.constant 0 : i32
    return %c0_i32, %c0_i32_0, %c0_i32_1 : i32, i32, i32
  }
  func.func @transform_30(%arg0: i32) -> (i32, i32, i32) {
    %c0_i32 = arith.constant 0 : i32
    %c0_i32_0 = arith.constant 0 : i32
    %c0_i32_1 = arith.constant 0 : i32
    %c0_i32_2 = arith.constant 0 : i32
    return %c0_i32, %c0_i32_0, %c0_i32_1 : i32, i32, i32
  }
  func.func @transform_31(%arg0: i32) -> (i32, i32, i32) {
    %c0_i32 = arith.constant 0 : i32
    %c0_i32_0 = arith.constant 0 : i32
    %c0_i32_1 = arith.constant 0 : i32
    %c0_i32_2 = arith.constant 0 : i32
    return %c0_i32, %c0_i32_0, %c0_i32_1 : i32, i32, i32
  }
  func.func @transform_32(%arg0: i32) -> (i32, i32, i32) {
    %c0_i32 = arith.constant 0 : i32
    %c0_i32_0 = arith.constant 0 : i32
    %c0_i32_1 = arith.constant 0 : i32
    %c0_i32_2 = arith.constant 0 : i32
    return %c0_i32, %c0_i32_0, %c0_i32_1 : i32, i32, i32
  }
  func.func @transform_33(%arg0: i32) -> (i32, i32, i32) {
    %c0_i32 = arith.constant 0 : i32
    %c0_i32_0 = arith.constant 0 : i32
    %c0_i32_1 = arith.constant 0 : i32
    %c0_i32_2 = arith.constant 0 : i32
    return %c0_i32, %c0_i32_0, %c0_i32_1 : i32, i32, i32
  }
  func.func @transform_34(%arg0: i32) -> (i32, i32, i32) {
    %c0_i32 = arith.constant 0 : i32
    %c0_i32_0 = arith.constant 0 : i32
    %c0_i32_1 = arith.constant 0 : i32
    %c0_i32_2 = arith.constant 0 : i32
    return %c0_i32, %c0_i32_0, %c0_i32_1 : i32, i32, i32
  }
  func.func @transform_35(%arg0: i32) -> (i32, i32, i32) {
    %c0_i32 = arith.constant 0 : i32
    %c0_i32_0 = arith.constant 0 : i32
    %c0_i32_1 = arith.constant 0 : i32
    %c0_i32_2 = arith.constant 0 : i32
    return %c0_i32, %c0_i32_0, %c0_i32_1 : i32, i32, i32
  }
  func.func @transform_36(%arg0: i32) -> (i32, i32) {
    %c0_i32 = arith.constant 0 : i32
    %c0_i32_0 = arith.constant 0 : i32
    %c0_i32_1 = arith.constant 0 : i32
    return %c0_i32, %c0_i32_0 : i32, i32
  }
  func.func @transform_37(%arg0: i32) -> (i32, i32) {
    %c0_i32 = arith.constant 0 : i32
    %c0_i32_0 = arith.constant 0 : i32
    %c0_i32_1 = arith.constant 0 : i32
    return %c0_i32, %c0_i32_0 : i32, i32
  }
  func.func @transform_38(%arg0: i32) -> (i32, i32) {
    %c0_i32 = arith.constant 0 : i32
    %c0_i32_0 = arith.constant 0 : i32
    %c0_i32_1 = arith.constant 0 : i32
    return %c0_i32, %c0_i32_0 : i32, i32
  }
}

</mosaic_0001>

<bundles_post_ra>
// kernel: mae_vit_forward.1
= control target key start
LH: loop header
LB: loop body
LE: loop exit
PB: predicated region body
PF: predicated region fallthrough
CT: control target
= control target key end

     0   :  { %s3411_s3 = smov 3   ;;  %v3412_v0 = vmov 0   ;;  %s3413_s10 = smov 1   ;;  %vm177_vm0 = vcmask 130048   ;;  %v3414_v10 = vmov 0.0   ;;  %vm3415_vm1 = vmmov 0   ;;  %s4106_s0 = inlined_call_operand.smem [shape: u32[39], index: -1, kind: input, shape index: {}] }
   0x1   :  { %s2658_s6 = sld [smem:[%s4106_s0 + %s3411_s3]]   ;;  %3245 = vset.pattern.permute.xlu0 %v3412_v0  ;;  %3246 = vset.pattern.permute.xlu1 %v3412_v0  ;;  %s3416_s14 = smov 4   ;;  %v235_v13 = vlaneseq  ;;  %vm252_vm4 = vcmask 261120  }
   0x2   :  { %s1_s9 = sld [smem:[%s4106_s0]]   ;;  %2940 = vmatprep.subr.bf16.mxu1 %v3414_v10  ;;  %2944 = vmatprep.mubr.msk.bf16.mxu1 %vm3415_vm1, %v3414_v10  ;;  %s3417_s18 = smov 5  }
   0x3   :  { %s2656_s13 = sld [smem:[%s4106_s0 + %s3413_s10]]   ;;  %v3479_v17 = vand.u32 127, %v235_v13  ;;  %s3418_s22 = smov 9  }
   0x4   :  { %s2659_s17 = sld [smem:[%s4106_s0 + %s3416_s14]]   ;;  %s3419_s26 = smov 7  }
   0x5   :  { %s2660_s21 = sld [smem:[%s4106_s0 + %s3417_s18]]   ;;  %s3420_s30 = smov 8  }
   0x6   :  { %s3508_s25 = sld [smem:[%s4106_s0 + %s3418_s22]]   ;;  %s3421_s4 = smov 10  }
   0x7   :  { %v3262_v1 = vld [vmem:[%s2658_s6] sm:$0xff]   ;;  %s3517_s29 = sld [smem:[%s4106_s0 + %s3419_s26]]   ;;  %s3422_s8 = smov 96  }
   0x8   :  { %v159_v2 = vld [vmem:[%s1_s9] sm:$0xff]  ;;  %v160_v3 = vld [vmem:[%s1_s9 + $0x8] sm:$0xff]  ;;  %v161_v4 = vld [vmem:[%s1_s9 + $0x10] sm:$0xff]  ;;  %2934 = vmatprep.subr.bf16.mxu0 %v3262_v1  ;;  %s3522_s3 = sld [smem:[%s4106_s0 + %s3420_s30]]   ;;  %s3425_s14 = smov 11  }
   0x9   :  { %v163_v5 = vpack.c.bf16 %v160_v3, %v159_v2  ;;  %v162_v6 = vld [vmem:[%s1_s9 + $0x18] sm:$0xff]  ;;  %v233_v7 = vld [vmem:[%s2656_s13] sm:$0xff]  ;;  %2935 = vmatpush3.bf16.msra.mxu0 %v3262_v1  ;;  %v234_v9 = vld [vmem:[%s2656_s13 + $0x8] sm:$0xff]  ;;  %s3532_s7 = sld [smem:[%s4106_s0 + %s3421_s4]]   ;;  %s3423_s9 = smov 6  }
   0xa   :  { %v164_v8 = vpack.c.bf16 %v162_v6, %v161_v4  ;;  %238 = vperm.xlu0 %3245, %v233_v7   ;;  %2948 = vmatprep.subr.bf16.mxu0 %v3414_v10  ;;  %v169_v14 = vld [vmem:[%s2659_s17 + $0x10] sm:$0xff]  ;;  %v170_v16 = vld [vmem:[%s2659_s17 + $0x18] sm:$0xff]  ;;  %v168_v19 = vld [vmem:[%s2659_s17 + $0x8] sm:$0xff]  ;;  %s2661_s12 = sld [smem:[%s4106_s0 + %s3423_s9]]   ;;  %s3424_s13 = smov 64  }
   0xb   :  { %2936 = vmatprep.mubr.msk.bf16.mxu0 %vm177_vm0, %v163_v5  ;;  %v167_v23 = vld [vmem:[%s2659_s17] sm:$0xff]  ;;  %v251_v36 = vld [vmem:[%s2660_s21 + $0x8] sm:$0xff]  ;;  %s3562_s17 = sld [smem:[%s4106_s0 + %s3425_s14]]   ;;  %s3426_s18 = smov 12  }
   0xc   :  { %2937 = vmatmul.mubr.msk.bf16.vlgmr.msra.gmra.mxu0 %vm177_vm0, %v164_v8  ;;  %v250_v32 = vld [vmem:[%s2660_s21] sm:$0xff]  ;;  %v3263_v52 = vld [vmem:[%s3508_s25 + $0x8] sm:$0xff]   ;;  %s3574_s21 = sld [smem:[%s4106_s0 + %s3426_s18]]   ;;  %s3427_s22 = smov 15  }
   0xd   :  { %2952 = vmatprep.mubr.msk.bf16.mxu0 %vm3415_vm1, %v3414_v10  ;;  %2949 = vmatpush3.bf16.msra.mxu0 %v3263_v52  ;;  %v3264_v53 = vld [vmem:[%s3508_s25] sm:$0xff]   ;;  %s3594_s26 = sld [smem:[%s4106_s0 + %s3427_s22]]   ;;  %s3428_s27 = smov 13  }
   0xe   :  { %241 = vperm.xlu0 %3245, %v234_v9   ;;  %2950 = vmatprep.subr.bf16.mxu0 %v3414_v10  ;;  %v2698_v62 = vld [vmem:[%s3517_s29] ss:$0 sm:$0xff]  ;;  %s3603_s1 = sld [smem:[%s4106_s0 + %s3428_s27]]   ;;  %s3429_s2 = smov 14  }
   0xf   :  { %v2699_v2 = vld [vmem:[%s3522_s3] ss:$0 sm:$0xff]  ;;  %s3608_s6 = sld [smem:[%s4106_s0 + %s3429_s2]]   ;;  %s3430_s9 = smov 17  }
  0x10   :  { %v2700_v8 = vld [vmem:[%s3532_s7] ss:$0 sm:$0xff]  ;;  %s3431_s14 = smov 16   ;;  %s3432_s19 = smov 18  }
  0x11   :  { %2951 = vmatpush3.bf16.msra.mxu0 %v3264_v53  ;;  %s3639_s18 = sld [smem:[%s4106_s0 + %s3431_s14]]   ;;  %s3435_s27 = smov 20  }
  0x12   :  { %2962 = vmatprep.subr.bf16.mxu0 %v3414_v10  ;;  %s3647_s23 = sld [smem:[%s4106_s0 + %s3432_s19]]   ;;  %s3436_s2 = smov 21  }
  0x13   :  { %s3438_s14 = smov 26   ;;  %s3439_s19 = smov 24  }
  0x14   :  { %s3445_s11 = smov 32   ;;  %s3446_s16 = smov 30  }
  0x15   :  { %s2687_s15 = sld [smem:[%s4106_s0 + %s3445_s11]]   ;;  %s3447_s22 = smov 31  }
  0x16   :  { %s2685_s20 = sld [smem:[%s4106_s0 + %s3446_s16]]   ;;  %s3449_s24 = smov 36  }
  0x17   :  { %s3450_s28 = smov 33   ;;  %s3451_s4 = smov 35  }
  0x85   :  { %v239_v11 = vpop.permute.xlu0 %238 }
  0x86   :  { %vm243_vm2 = vcmp.eq.s32.totalorder %v3479_v17, %v239_v11 }
  0x87   :  { %v245_v28 = vsel %vm243_vm2, 1.0, %v3414_v10 }
  0x89   :  { %v242_v22 = vpop.permute.xlu0 %241 }
  0x8a   :  { %vm244_vm3 = vcmp.eq.s32.totalorder %v3479_v17, %v242_v22 }
  0x8b   :  { %v246_v30 = vsel %vm244_vm3, 1.0, %v3414_v10 }
  0x8c   :  { %v247_v31 = vpack.c.bf16 %v246_v30, %v245_v28 }
  0xcc   :  { %v2938_v12 = vpop.f32.mrf.mxu0 }
  0xcd   :  { %v227_v20 = vadd.f32 %v2938_v12, %v169_v14 }
  0xce   :  { %v218_v15 = vpop.f32.mrf.mxu0 }
  0xcf   :  { %v219_v27 = vadd.f32 %v218_v15, %v167_v23  ;;  %v3547_v23 = vld [vmem:[%s2661_s12 + $0x8] sm:$0xff] }
  0xd0   :  { %v2939_v18 = vpop.f32.mrf.mxu0 }
  0xd1   :  { %v230_v21 = vadd.f32 %v2939_v18, %v170_v16 }
  0xd2   :  { %v221_v24 = vpop.f32.mrf.mxu0 }
  0xd3   :  { %v222_v25 = vadd.f32 %v221_v24, %v168_v19  ;;  %v249_v26 = vpack.c.bf16 %v230_v21, %v227_v20  ;;  %v3544_v19 = vld [vmem:[%s2661_s12] sm:$0xff]  ;;  %s3618_s12 = sld [smem:[%s4106_s0 + %s3430_s9]]   ;;  %s3437_s9 = smov 22  }
  0xd5   :  { %2941 = vmatpush3.bf16.msra.mxu1 %v249_v26  ;;  %v248_v29 = vpack.c.bf16 %v222_v25, %v219_v27 }
  0xd6   :  { %2942 = vmatprep.subr.bf16.mxu1 %v3414_v10 }
  0xd9   :  { %2943 = vmatpush3.bf16.msra.mxu1 %v248_v29 }
  0xda   :  { %2956 = vmatprep.subr.bf16.mxu1 %v3414_v10 }
  0xdc   :  { %2945 = vmatmul.mubr.msk.bf16.vlgmr.msra.gmra.mxu1 %vm252_vm4, %v247_v31 }
  0xdd   :  { %2958 = vmatprep.mubr.msk.bf16.mxu1 %vm3415_vm1, %v3414_v10 }
 0x19c   :  { %v290_v33 = vpop.f32.mrf.mxu1 }
 0x19d   :  { %v3493_v34 = vadd.f32 %v290_v33, %v250_v32 }
 0x19e   :  { %v2946_v35 = vpop.f32.mrf.mxu1 }
 0x19f   :  { %v335_v37 = vsel %vm252_vm4, %v3493_v34, 0.0 }
 0x1a0   :  { %336 = vadd.xlane.f32.xlu1 %v335_v37  ;;  %v293_v38 = vpop.f32.mrf.mxu1 }
 0x1a1   :  { %v3497_v39 = vadd.f32 %v293_v38, %v251_v36 }
 0x1a2   :  { %v2947_v40 = vpop.f32.mrf.mxu1 }
 0x1a3   :  { %v338_v41 = vsel %vm252_vm4, %v3497_v39, 0.0 }
 0x1a4   :  { %339 = vadd.xlane.f32.xlu1 %v338_v41 }
 0x229   :  { %v337_v42 = vpop.xlane.xlu1 %336 }
 0x22a   :  { %v342_v43 = vmul.f32 0.03125, %v337_v42 }
 0x22c   :  { %v344_v44 = vsub.f32 %v3493_v34, %v342_v43 }
 0x22d   :  { %v340_v45 = vpop.xlane.xlu1 %339 }
 0x22e   :  { %v343_v46 = vmul.f32 0.03125, %v340_v45  ;;  %v346_v47 = vmul.f32 %v344_v44, %v344_v44 }
 0x230   :  { %v345_v48 = vsub.f32 %v3497_v39, %v343_v46  ;;  %v348_v49 = vsel %vm252_vm4, %v346_v47, 0.0 }
 0x231   :  { %349 = vadd.xlane.f32.xlu0 %v348_v49  ;;  %v3265_v49 = vld [vmem:[%s3562_s17 + $0x8] sm:$0xff]  }
 0x232   :  { %v347_v50 = vmul.f32 %v345_v48, %v345_v48 }
 0x234   :  { %v351_v51 = vsel %vm252_vm4, %v347_v50, 0.0  ;;  %v3266_v50 = vld [vmem:[%s3562_s17] sm:$0xff]  }
 0x235   :  { %352 = vadd.xlane.f32.xlu1 %v351_v51 }
 0x2ba   :  { %v350_v54 = vpop.xlane.xlu0 %349 }
 0x2bb   :  { %v354_v55 = vmul.f32 0.03125, %v350_v54 }
 0x2bd   :  { %v356_v56 = vadd.f32 1e-05, %v354_v55 }
 0x2be   :  { %v353_v57 = vpop.xlane.xlu1 %352 }
 0x2bf   :  { %3307 = vrsqrt.f32 %v356_v56  ;;  %v355_v58 = vmul.f32 0.03125, %v353_v57  ;;  %v2709_v56 = vld [vmem:[%s3574_s21] ss:$0 sm:$0xff] }
 0x2c1   :  { %v357_v59 = vadd.f32 1e-05, %v355_v58 }
 0x2c3   :  { %3309 = vrsqrt.f32 %v357_v59 }
 0x2cc   :  { %v3308_v60 = vpop.eup %3307 }
 0x2cd   :  { %v360_v61 = vmul.f32 %v3308_v60, %v344_v44 }
 0x2cf   :  { %v368_v1 = vmul.f32 %v2698_v62, %v360_v61 }
 0x2d0   :  { %v3310_v63 = vpop.eup %3309 }
 0x2d1   :  { %v361_v0 = vmul.f32 %v3310_v63, %v345_v48  ;;  %v376_v4 = vadd.f32 %v2699_v2, %v368_v1 }
 0x2d3   :  { %v369_v3 = vmul.f32 %v2698_v62, %v361_v0 }
 0x2d5   :  { %v377_v5 = vadd.f32 %v2699_v2, %v369_v3 }
 0x2d7   :  { %v378_v6 = vpack.c.bf16 %v377_v5, %v376_v4 }
 0x2d9   :  { %2953 = vmatmul.mubr.msk.bf16.vlgmr.msra.gmra.mxu0 %vm252_vm4, %v378_v6 }
 0x2da   :  { %2964 = vmatprep.mubr.msk.bf16.mxu0 %vm3415_vm1, %v3414_v10 }
 0x399   :  { %v434_v7 = vpop.f32.mrf.mxu0 }
 0x39a   :  { %v435_v12 = vadd.f32 %v2700_v8, %v434_v7 }
 0x39b   :  { %v2954_v9 = vpop.f32.mrf.mxu0 }
 0x39d   :  { %v437_v11 = vpop.f32.mrf.mxu0 }
 0x39e   :  { %v438_v13 = vadd.f32 %v2700_v8, %v437_v11 }
 0x39f   :  { %v2955_v14 = vpop.f32.mrf.mxu0 }
 0x3a0   :  { %v441_v15 = vpack.c.bf16 %v438_v13, %v435_v12  ;;  %v3267_v12 = vld [vmem:[%s3594_s26 + $0x8] sm:$0xff]   ;;  %v3268_v13 = vld [vmem:[%s3594_s26] sm:$0xff]  }
 0x3a2   :  { %443 = vrot.lane.b32.xlu1 %v441_v15, %s3422_s8 }
 0x414   :  { %v444_v16 = vpop.permute.xlu1 %443 }
 0x415   :  { %v449_v18 = vsel %vm252_vm4, %v444_v16, 0 }
 0x416   :  { %2957 = vmatpush3.bf16.xpose.msra.mxu1 %v449_v18 }
 0x417   :  { %2968 = vmatprep.subr.bf16.mxu1 %v3414_v10 }
 0x41d   :  { %2959 = vmatmul.mubr.msk.bf16.vlgmr.msra.gmra.mxu1 %vm252_vm4, %v441_v15 }
 0x41e   :  { %2972 = vmatprep.mubr.msk.bf16.mxu1 %vm3415_vm1, %v3414_v10  ;;  %2969 = vmatpush3.bf16.msra.mxu1 %v3265_v49 }
 0x41f   :  { %2970 = vmatprep.subr.bf16.mxu1 %v3414_v10 }
 0x422   :  { %2971 = vmatpush3.bf16.msra.mxu1 %v3266_v50 }
 0x423   :  { %2984 = vmatprep.subr.bf16.mxu1 %v3414_v10 }
 0x4dd   :  { %v485_v20 = vpop.f32.mrf.mxu1 }
 0x4de   :  { %v486_v21 = vadd.f32 %v485_v20, %v3544_v19 }
 0x4df   :  { %v2960_v22 = vpop.f32.mrf.mxu1 }
 0x4e0   :  { %v492_v24 = vsel %vm177_vm0, %v486_v21, -inf }
 0x4e1   :  { %493 = vmax.xlane.f32.xlu1 %v492_v24  ;;  %v488_v25 = vpop.f32.mrf.mxu1 }
 0x4e2   :  { %v489_v26 = vadd.f32 %v488_v25, %v3547_v23  ;;  %v2710_v25 = vld [vmem:[%s3603_s1] ss:$0 sm:$0xff] }
 0x4e3   :  { %v2961_v27 = vpop.f32.mrf.mxu1 }
 0x4e4   :  { %v495_v28 = vsel %vm177_vm0, %v489_v26, -inf }
 0x4e5   :  { %496 = vmax.xlane.f32.xlu0 %v495_v28 }
 0x56a   :  { %v494_v29 = vpop.xlane.xlu1 %493 }
 0x56b   :  { %v498_v30 = vsub.f32 %v486_v21, %v494_v29  ;;  %v2711_v29 = vld [vmem:[%s3608_s6] ss:$0 sm:$0xff] }
 0x56d   :  { %v500_v31 = vmul.f32 1.442695, %v498_v30 }
 0x56e   :  { %v497_v32 = vpop.xlane.xlu0 %496 }
 0x56f   :  { %3311 = vpow2.f32 %v500_v31  ;;  %v499_v33 = vsub.f32 %v489_v26, %v497_v32 }
 0x571   :  { %v502_v35 = vmul.f32 1.442695, %v499_v33 }
 0x573   :  { %3313 = vpow2.f32 %v502_v35  ;;  %v3269_v35 = vld [vmem:[%s3618_s12 + $0x38] sm:$0xff]  }
 0x57c   :  { %v3312_v36 = vpop.eup %3311 }
 0x57d   :  { %v504_v37 = vsel %vm177_vm0, %v3312_v36, 0.0 }
 0x57e   :  { %505 = vadd.xlane.f32.xlu0 %v504_v37  ;;  %v3271_v37 = vld [vmem:[%s3618_s12 + $0x28] sm:$0xff]  }
 0x580   :  { %v3314_v38 = vpop.eup %3313 }
 0x581   :  { %v507_v40 = vsel %vm177_vm0, %v3314_v38, 0.0 }
 0x582   :  { %508 = vadd.xlane.f32.xlu0 %v507_v40  ;;  %v3273_v40 = vld [vmem:[%s3618_s12 + $0x18] sm:$0xff]  }
 0x598   :  { %515 = vrot.lane.b32.xlu0 %v441_v15, %s3424_s13 }
 0x607   :  { %v506_v41 = vpop.xlane.xlu0 %505 }
 0x608   :  { %3315 = vrcp.f32 %v506_v41  ;;  %v3274_v41 = vld [vmem:[%s3618_s12 + $0x10] sm:$0xff]  }
 0x60b   :  { %v509_v42 = vpop.xlane.xlu0 %508 }
 0x60c   :  { %3317 = vrcp.f32 %v509_v42  ;;  %v3275_v42 = vld [vmem:[%s3618_s12 + $0x8] sm:$0xff]  }
 0x60f   :  { %v516_v43 = vpop.permute.xlu0 %515 }
 0x610   :  { %2963 = vmatpush3.bf16.msra.mxu0 %v516_v43  ;;  %v3276_v43 = vld [vmem:[%s3618_s12] sm:$0xff]  }
 0x611   :  { %2976 = vmatprep.subr.bf16.mxu0 %v3414_v10 }
 0x615   :  { %v3316_v44 = vpop.eup %3315 }
 0x616   :  { %v512_v46 = vmul.f32 %v3316_v44, %v3312_v36  ;;  %v3270_v36 = vld [vmem:[%s3618_s12 + $0x30] sm:$0xff]   ;;  %v2712_v44 = vld [vmem:[%s3639_s18] ss:$0 sm:$0xff] }
 0x619   :  { %v3318_v45 = vpop.eup %3317 }
 0x61a   :  { %v513_v47 = vmul.f32 %v3318_v45, %v3314_v38  ;;  %v3272_v38 = vld [vmem:[%s3618_s12 + $0x20] sm:$0xff]  }
 0x61c   :  { %v514_v48 = vpack.c.bf16 %v513_v47, %v512_v46 }
 0x61e   :  { %2965 = vmatmul.mubr.msk.bf16.vlgmr.msra.gmra.mxu0 %vm177_vm0, %v514_v48 }
 0x61f   :  { %2980 = vmatprep.mubr.msk.bf16.mxu0 %vm3415_vm1, %v3414_v10  ;;  %2977 = vmatpush3.bf16.msra.mxu0 %v3267_v12 }
 0x620   :  { %2978 = vmatprep.subr.bf16.mxu0 %v3414_v10 }
 0x623   :  { %2979 = vmatpush3.bf16.msra.mxu0 %v3268_v13 }
 0x624   :  { %3004 = vmatprep.subr.bf16.mxu0 %v3414_v10 }
 0x6de   :  { %v555_v51 = vpop.f32.mrf.mxu0 }
 0x6e0   :  { %v2966_v52 = vpop.f32.mrf.mxu0 }
 0x6e2   :  { %v558_v53 = vpop.f32.mrf.mxu0 }
 0x6e3   :  { %v562_v54 = vpack.c.bf16 %v558_v53, %v555_v51 }
 0x6e4   :  { %v2967_v55 = vpop.f32.mrf.mxu0 }
 0x6e5   :  { %2973 = vmatmul.mubr.msk.bf16.vlgmr.msra.gmra.mxu1 %vm252_vm4, %v562_v54 }
 0x6e6   :  { %3000 = vmatprep.mubr.msk.bf16.mxu1 %vm3415_vm1, %v3414_v10  ;;  %2985 = vmatpush3.bf16.msra.mxu1 %v3269_v35 }
 0x6e7   :  { %2986 = vmatprep.subr.bf16.mxu1 %v3414_v10 }
 0x6ea   :  { %2987 = vmatpush3.bf16.msra.mxu1 %v3270_v36 }
 0x6eb   :  { %2988 = vmatprep.subr.bf16.mxu1 %v3414_v10 }
 0x6ee   :  { %2989 = vmatpush3.bf16.msra.mxu1 %v3271_v37 }
 0x6ef   :  { %2990 = vmatprep.subr.bf16.mxu1 %v3414_v10 }
 0x6f2   :  { %2991 = vmatpush3.bf16.msra.mxu1 %v3272_v38 }
 0x6f3   :  { %2992 = vmatprep.subr.bf16.mxu1 %v3414_v10 }
 0x6f6   :  { %2993 = vmatpush3.bf16.msra.mxu1 %v3273_v40 }
 0x6f7   :  { %2994 = vmatprep.subr.bf16.mxu1 %v3414_v10 }
 0x6fa   :  { %2995 = vmatpush3.bf16.msra.mxu1 %v3274_v41  ;;  %v2761_v41 = vld [vmem:[%s3517_s29 + $0x1] ss:$0 sm:$0xff]  ;;  %s2686_s29 = sld [smem:[%s4106_s0 + %s3447_s22]]  }
 0x6fb   :  { %2996 = vmatprep.subr.bf16.mxu1 %v3414_v10 }
 0x6fe   :  { %2997 = vmatpush3.bf16.msra.mxu1 %v3275_v42 }
 0x6ff   :  { %2998 = vmatprep.subr.bf16.mxu1 %v3414_v10 }
 0x702   :  { %2999 = vmatpush3.bf16.msra.mxu1 %v3276_v43 }
 0x703   :  { %3032 = vmatprep.subr.bf16.mxu1 %v3414_v10 }
 0x7a5   :  { %v612_v57 = vpop.f32.mrf.mxu1 }
 0x7a6   :  { %v619_v58 = vadd.f32 %v612_v57, %v3493_v34 }
 0x7a7   :  { %v2974_v59 = vpop.f32.mrf.mxu1 }
 0x7a8   :  { %v3578_v60 = vadd.f32 %v2709_v56, %v619_v58 }
 0x7a9   :  { %v615_v61 = vpop.f32.mrf.mxu1 }
 0x7aa   :  { %v620_v62 = vadd.f32 %v615_v61, %v3497_v39  ;;  %v629_v63 = vsel %vm252_vm4, %v3578_v60, 0.0 }
 0x7ab   :  { %630 = vadd.xlane.f32.xlu1 %v629_v63  ;;  %v2975_v0 = vpop.f32.mrf.mxu1 }
 0x7ac   :  { %v3583_v1 = vadd.f32 %v2709_v56, %v620_v62 }
 0x7ae   :  { %v632_v2 = vsel %vm252_vm4, %v3583_v1, 0.0 }
 0x7af   :  { %633 = vadd.xlane.f32.xlu1 %v632_v2 }
 0x834   :  { %v631_v3 = vpop.xlane.xlu1 %630 }
 0x835   :  { %v635_v4 = vmul.f32 0.03125, %v631_v3 }
 0x837   :  { %v637_v34 = vsub.f32 %v3578_v60, %v635_v4 }
 0x838   :  { %v634_v5 = vpop.xlane.xlu1 %633 }
 0x839   :  { %v636_v6 = vmul.f32 0.03125, %v634_v5  ;;  %v639_v7 = vmul.f32 %v637_v34, %v637_v34 }
 0x83b   :  { %v638_v39 = vsub.f32 %v3583_v1, %v636_v6  ;;  %v641_v8 = vsel %vm252_vm4, %v639_v7, 0.0  ;;  %v2716_v7 = vld [vmem:[%s3647_s23] ss:$0 sm:$0xff] }
 0x83c   :  { %642 = vadd.xlane.f32.xlu0 %v641_v8 }
 0x83d   :  { %v640_v9 = vmul.f32 %v638_v39, %v638_v39 }
 0x83f   :  { %v644_v11 = vsel %vm252_vm4, %v640_v9, 0.0 }
 0x840   :  { %645 = vadd.xlane.f32.xlu1 %v644_v11 }
 0x8c5   :  { %v643_v14 = vpop.xlane.xlu0 %642 }
 0x8c6   :  { %v647_v15 = vmul.f32 0.03125, %v643_v14 }
 0x8c8   :  { %v649_v16 = vadd.f32 1e-05, %v647_v15 }
 0x8c9   :  { %v646_v18 = vpop.xlane.xlu1 %645 }
 0x8ca   :  { %3319 = vrsqrt.f32 %v649_v16  ;;  %v648_v20 = vmul.f32 0.03125, %v646_v18 }
 0x8cc   :  { %v650_v21 = vadd.f32 1e-05, %v648_v20 }
 0x8ce   :  { %3321 = vrsqrt.f32 %v650_v21 }
 0x8d7   :  { %v3320_v22 = vpop.eup %3319 }
 0x8d8   :  { %v653_v24 = vmul.f32 %v3320_v22, %v637_v34 }
 0x8da   :  { %v661_v28 = vmul.f32 %v2710_v25, %v653_v24 }
 0x8db   :  { %v3322_v26 = vpop.eup %3321 }
 0x8dc   :  { %v654_v27 = vmul.f32 %v3322_v26, %v638_v39  ;;  %v669_v31 = vadd.f32 %v2711_v29, %v661_v28 }
 0x8de   :  { %v662_v30 = vmul.f32 %v2710_v25, %v654_v27 }
 0x8e0   :  { %v670_v32 = vadd.f32 %v2711_v29, %v662_v30  ;;  %v3277_v29 = vld [vmem:[%s3508_s25 + $0x18] sm:$0xff]   ;;  %v3278_v30 = vld [vmem:[%s3508_s25 + $0x10] sm:$0xff]   ;;  %s3433_s25 = smov 2  }
 0x8e2   :  { %v671_v33 = vpack.c.bf16 %v670_v32, %v669_v31 }
 0x8e4   :  { %2981 = vmatmul.mubr.msk.bf16.vlgmr.msra.gmra.mxu0 %vm252_vm4, %v671_v33 }
 0x8e5   :  { %3008 = vmatprep.mubr.msk.bf16.mxu0 %vm3415_vm1, %v3414_v10  ;;  %3005 = vmatpush3.bf16.msra.mxu0 %v3277_v29 }
 0x8e6   :  { %3006 = vmatprep.subr.bf16.mxu0 %v3414_v10 }
 0x8e9   :  { %3007 = vmatpush3.bf16.msra.mxu0 %v3278_v30 }
 0x8ea   :  { %3012 = vmatprep.subr.bf16.mxu0 %v3414_v10 }
 0x9a4   :  { %v727_v45 = vpop.f32.mrf.mxu0 }
 0x9a5   :  { %v728_v46 = vadd.f32 %v2712_v44, %v727_v45  ;;  %v2762_v45 = vld [vmem:[%s3522_s3 + $0x1] ss:$0 sm:$0xff]  ;;  %s3448_s3 = smov 34  }
 0x9a6   :  { %v2982_v47 = vpop.f32.mrf.mxu0 }
 0x9a7   :  { %v734_v48 = vmul.f32 %v728_v46, %v728_v46 }
 0x9a8   :  { %v730_v49 = vpop.f32.mrf.mxu0 }
 0x9a9   :  { %v736_v50 = vmul.f32 %v734_v48, %v728_v46  ;;  %v731_v51 = vadd.f32 %v2712_v44, %v730_v49 }
 0x9aa   :  { %v2983_v52 = vpop.f32.mrf.mxu0 }
 0x9ab   :  { %v738_v53 = vmul.f32 0.044715, %v736_v50  ;;  %v735_v54 = vmul.f32 %v731_v51, %v731_v51 }
 0x9ad   :  { %v740_v55 = vadd.f32 %v738_v53, %v728_v46  ;;  %v737_v56 = vmul.f32 %v735_v54, %v731_v51 }
 0x9af   :  { %v742_v57 = vmul.f32 0.7978846, %v740_v55  ;;  %v739_v58 = vmul.f32 0.044715, %v737_v56 }
 0x9b1   :  { %3323 = vtanh.f32 %v742_v57  ;;  %v741_v59 = vadd.f32 %v739_v58, %v731_v51 }
 0x9b3   :  { %v743_v61 = vmul.f32 0.7978846, %v741_v59 }
 0x9b5   :  { %3325 = vtanh.f32 %v743_v61 }
 0x9be   :  { %v3324_v62 = vpop.eup %3323 }
 0x9bf   :  { %v746_v63 = vadd.f32 1.0, %v3324_v62 }
 0x9c1   :  { %v748_v2 = vmul.f32 0.5, %v746_v63 }
 0x9c2   :  { %v3326_v0 = vpop.eup %3325 }
 0x9c3   :  { %v747_v3 = vadd.f32 1.0, %v3326_v0  ;;  %v750_v34 = vmul.f32 %v748_v2, %v728_v46 }
 0x9c5   :  { %v749_v4 = vmul.f32 0.5, %v747_v3 }
 0x9c7   :  { %v751_v5 = vmul.f32 %v749_v4, %v731_v51  ;;  %v2763_v51 = vld [vmem:[%s3532_s7 + $0x1] ss:$0 sm:$0xff]  ;;  %s2657_s7 = sld [smem:[%s4106_s0 + %s3433_s25]]   ;;  %s3440_s25 = smov 25  }
 0x9c9   :  { %v752_v6 = vpack.c.bf16 %v751_v5, %v750_v34 }
 0x9cb   :  { %3001 = vmatmul.mubr.bf16.vlgmr.msra.gmra.mxu1 %v752_v6 }
 0x9cc   :  { %3036 = vmatprep.mubr.msk.bf16.mxu1 %vm3415_vm1, %v3414_v10 }
 0xa8b   :  { %v841_v39 = vpop.f32.mrf.mxu1 }
 0xa8c   :  { %v842_v8 = vadd.f32 %v2716_v7, %v841_v39 }
 0xa8d   :  { %v3002_v9 = vpop.f32.mrf.mxu1 }
 0xa8e   :  { %v3651_v11 = vadd.f32 %v842_v8, %v3578_v60 }
 0xa8f   :  { %v844_v12 = vpop.f32.mrf.mxu1 }
 0xa90   :  { %v845_v13 = vadd.f32 %v2716_v7, %v844_v12  ;;  %v898_v14 = vsel %vm252_vm4, %v3651_v11, 0.0 }
 0xa91   :  { %899 = vadd.xlane.f32.xlu1 %v898_v14  ;;  %v3003_v15 = vpop.f32.mrf.mxu1 }
 0xa92   :  { %v3656_v16 = vadd.f32 %v845_v13, %v3583_v1 }
 0xa94   :  { %v901_v18 = vsel %vm252_vm4, %v3656_v16, 0.0 }
 0xa95   :  { %902 = vadd.xlane.f32.xlu1 %v901_v18 }
 0xb1a   :  { %v900_v20 = vpop.xlane.xlu1 %899 }
 0xb1b   :  { %v904_v21 = vmul.f32 0.03125, %v900_v20 }
 0xb1d   :  { %v906_v60 = vsub.f32 %v3651_v11, %v904_v21 }
 0xb1e   :  { %v903_v22 = vpop.xlane.xlu1 %902 }
 0xb1f   :  { %v905_v24 = vmul.f32 0.03125, %v903_v22  ;;  %v908_v25 = vmul.f32 %v906_v60, %v906_v60 }
 0xb21   :  { %v907_v26 = vsub.f32 %v3656_v16, %v905_v24  ;;  %v910_v27 = vsel %vm252_vm4, %v908_v25, 0.0  ;;  %v3279_v25 = vld [vmem:[%s3562_s17 + $0x18] sm:$0xff]  }
 0xb22   :  { %911 = vadd.xlane.f32.xlu1 %v910_v27 }
 0xb23   :  { %v909_v28 = vmul.f32 %v907_v26, %v907_v26 }
 0xb25   :  { %v913_v1 = vsel %vm252_vm4, %v909_v28, 0.0 }
 0xb26   :  { %914 = vadd.xlane.f32.xlu1 %v913_v1 }
 0xbab   :  { %v912_v31 = vpop.xlane.xlu1 %911 }
 0xbac   :  { %v916_v32 = vmul.f32 0.03125, %v912_v31  ;;  %v2772_v31 = vld [vmem:[%s3574_s21 + $0x1] ss:$0 sm:$0xff]  ;;  %s2689_s21 = sld [smem:[%s4106_s0 + %s3448_s3]]  }
 0xbae   :  { %v918_v33 = vadd.f32 1e-05, %v916_v32 }
 0xbaf   :  { %v915_v35 = vpop.xlane.xlu1 %914 }
 0xbb0   :  { %3327 = vrsqrt.f32 %v918_v33  ;;  %v917_v36 = vmul.f32 0.03125, %v915_v35 }
 0xbb2   :  { %v919_v37 = vadd.f32 1e-05, %v917_v36 }
 0xbb4   :  { %3329 = vrsqrt.f32 %v919_v37 }
 0xbbd   :  { %v3328_v38 = vpop.eup %3327 }
 0xbbe   :  { %v922_v40 = vmul.f32 %v3328_v38, %v906_v60 }
 0xbc0   :  { %v930_v44 = vmul.f32 %v2761_v41, %v922_v40 }
 0xbc1   :  { %v3330_v42 = vpop.eup %3329 }
 0xbc2   :  { %v923_v43 = vmul.f32 %v3330_v42, %v907_v26  ;;  %v938_v47 = vadd.f32 %v2762_v45, %v930_v44  ;;  %v3280_v26 = vld [vmem:[%s3562_s17 + $0x10] sm:$0xff]   ;;  %s3434_s17 = smov 19  }
 0xbc4   :  { %v931_v46 = vmul.f32 %v2761_v41, %v923_v43 }
 0xbc6   :  { %v939_v48 = vadd.f32 %v2762_v45, %v931_v46 }
 0xbc8   :  { %v940_v49 = vpack.c.bf16 %v939_v48, %v938_v47 }
 0xbca   :  { %3009 = vmatmul.mubr.msk.bf16.vlgmr.msra.gmra.mxu0 %vm252_vm4, %v940_v49 }
 0xbcb   :  { %3014 = vmatprep.mubr.msk.bf16.mxu0 %vm3415_vm1, %v3414_v10 }
 0xc8a   :  { %v996_v50 = vpop.f32.mrf.mxu0 }
 0xc8b   :  { %v997_v54 = vadd.f32 %v2763_v51, %v996_v50 }
 0xc8c   :  { %v3010_v52 = vpop.f32.mrf.mxu0 }
 0xc8d   :  { %v3281_v52 = vld [vmem:[%s3594_s26 + $0x18] sm:$0xff]  }
 0xc8e   :  { %v999_v53 = vpop.f32.mrf.mxu0  ;;  %3033 = vmatpush3.bf16.msra.mxu1 %v3281_v52 }
 0xc8f   :  { %v1000_v55 = vadd.f32 %v2763_v51, %v999_v53  ;;  %v3282_v53 = vld [vmem:[%s3594_s26 + $0x10] sm:$0xff]   ;;  %3034 = vmatprep.subr.bf16.mxu1 %v3414_v10  ;;  %s2674_s26 = sld [smem:[%s4106_s0 + %s3434_s17]]   ;;  %s3441_s17 = smov 27  }
 0xc90   :  { %v3011_v56 = vpop.f32.mrf.mxu0 }
 0xc91   :  { %v1003_v57 = vpack.c.bf16 %v1000_v55, %v997_v54 }
 0xc92   :  { %3035 = vmatpush3.bf16.msra.mxu1 %v3282_v53 }
 0xc93   :  { %1005 = vrot.lane.b32.xlu1 %v1003_v57, %s3422_s8  ;;  %3060 = vmatprep.subr.bf16.mxu1 %v3414_v10 }
 0xd05   :  { %v1006_v58 = vpop.permute.xlu1 %1005 }
 0xd06   :  { %v1011_v59 = vsel %vm252_vm4, %v1006_v58, 0 }
 0xd07   :  { %3013 = vmatpush3.bf16.xpose.msra.mxu0 %v1011_v59 }
 0xd08   :  { %3018 = vmatprep.subr.bf16.mxu0 %v3414_v10 }
 0xd0e   :  { %3015 = vmatmul.mubr.msk.bf16.vlgmr.msra.gmra.mxu0 %vm252_vm4, %v1003_v57 }
 0xd0f   :  { %3020 = vmatprep.mubr.msk.bf16.mxu0 %vm3415_vm1, %v3414_v10 }
 0xdce   :  { %v1047_v61 = vpop.f32.mrf.mxu0 }
 0xdcf   :  { %v1048_v62 = vadd.f32 %v1047_v61, %v3544_v19 }
 0xdd0   :  { %v3016_v63 = vpop.f32.mrf.mxu0 }
 0xdd1   :  { %v1054_v0 = vsel %vm177_vm0, %v1048_v62, -inf  ;;  %v2773_v63 = vld [vmem:[%s3603_s1 + $0x1] ss:$0 sm:$0xff]  ;;  %s2675_s1 = sld [smem:[%s4106_s0 + %s3435_s27]]  }
 0xdd2   :  { %1055 = vmax.xlane.f32.xlu0 %v1054_v0  ;;  %v1050_v2 = vpop.f32.mrf.mxu0  ;;  %s4072_s27 = sld [smem:[%s4106_s0 + %s3449_s24]]  }
 0xdd3   :  { %v1051_v3 = vadd.f32 %v1050_v2, %v3547_v23 }
 0xdd4   :  { %v3017_v4 = vpop.f32.mrf.mxu0 }
 0xdd5   :  { %v1057_v34 = vsel %vm177_vm0, %v1051_v3, -inf  ;;  %v2774_v4 = vld [vmem:[%s3608_s6 + $0x1] ss:$0 sm:$0xff]  ;;  %s2676_s6 = sld [smem:[%s4106_s0 + %s3436_s2]]  }
 0xdd6   :  { %1058 = vmax.xlane.f32.xlu0 %v1057_v34  ;;  %s2688_s2 = sld [smem:[%s4106_s0 + %s3450_s28]]  }
 0xe5b   :  { %v1056_v5 = vpop.xlane.xlu0 %1055 }
 0xe5c   :  { %v1060_v6 = vsub.f32 %v1048_v62, %v1056_v5 }
 0xe5e   :  { %v1062_v7 = vmul.f32 1.442695, %v1060_v6 }
 0xe5f   :  { %v1059_v39 = vpop.xlane.xlu0 %1058 }
 0xe60   :  { %3331 = vpow2.f32 %v1062_v7  ;;  %v1061_v8 = vsub.f32 %v1051_v3, %v1059_v39  ;;  %v3283_v39 = vld [vmem:[%s3618_s12 + $0x78] sm:$0xff]  }
 0xe62   :  { %v1064_v9 = vmul.f32 1.442695, %v1061_v8  ;;  %v3284_v8 = vld [vmem:[%s3618_s12 + $0x70] sm:$0xff]  }
 0xe64   :  { %3333 = vpow2.f32 %v1064_v9  ;;  %v3285_v9 = vld [vmem:[%s3618_s12 + $0x68] sm:$0xff]  }
 0xe6d   :  { %v3332_v19 = vpop.eup %3331 }
 0xe6e   :  { %v1066_v12 = vsel %vm177_vm0, %v3332_v19, 0.0 }
 0xe6f   :  { %1067 = vadd.xlane.f32.xlu1 %v1066_v12  ;;  %v3287_v12 = vld [vmem:[%s3618_s12 + $0x58] sm:$0xff]  }
 0xe71   :  { %v3334_v13 = vpop.eup %3333 }
 0xe72   :  { %v1069_v14 = vsel %vm177_vm0, %v3334_v13, 0.0 }
 0xe73   :  { %1070 = vadd.xlane.f32.xlu0 %v1069_v14  ;;  %v3289_v14 = vld [vmem:[%s3618_s12 + $0x48] sm:$0xff]  }
 0xe89   :  { %1077 = vrot.lane.b32.xlu0 %v1003_v57, %s3424_s13 }
 0xef8   :  { %v1068_v23 = vpop.xlane.xlu1 %1067 }
 0xef9   :  { %3335 = vrcp.f32 %v1068_v23  ;;  %v3290_v23 = vld [vmem:[%s3618_s12 + $0x40] sm:$0xff]  }
 0xefc   :  { %v1071_v15 = vpop.xlane.xlu0 %1070 }
 0xefd   :  { %3337 = vrcp.f32 %v1071_v15  ;;  %v2775_v15 = vld [vmem:[%s3639_s18 + $0x1] ss:$0 sm:$0xff]  ;;  %s2681_s18 = sld [smem:[%s4106_s0 + %s3438_s14]]   ;;  %s3453_s14 = smov 38  }
 0xf00   :  { %v1078_v18 = vpop.permute.xlu0 %1077 }
 0xf01   :  { %3019 = vmatpush3.bf16.msra.mxu0 %v1078_v18 }
 0xf02   :  { %3024 = vmatprep.subr.bf16.mxu0 %v3414_v10 }
 0xf06   :  { %v3336_v20 = vpop.eup %3335 }
 0xf07   :  { %v1074_v60 = vmul.f32 %v3336_v20, %v3332_v19  ;;  %v3286_v19 = vld [vmem:[%s3618_s12 + $0x60] sm:$0xff]  }
 0xf0a   :  { %v3338_v21 = vpop.eup %3337 }
 0xf0b   :  { %v1075_v22 = vmul.f32 %v3338_v21, %v3334_v13  ;;  %v3288_v13 = vld [vmem:[%s3618_s12 + $0x50] sm:$0xff]   ;;  %s3791_s12 = sld [smem:[%s4106_s0 + %s3437_s9]]   ;;  %s3452_s9 = smov 37  }
 0xf0d   :  { %v1076_v24 = vpack.c.bf16 %v1075_v22, %v1074_v60 }
 0xf0f   :  { %3021 = vmatmul.mubr.msk.bf16.vlgmr.msra.gmra.mxu0 %vm177_vm0, %v1076_v24 }
 0xf10   :  { %3028 = vmatprep.mubr.msk.bf16.mxu0 %vm3415_vm1, %v3414_v10  ;;  %3025 = vmatpush3.bf16.msra.mxu0 %v3279_v25 }
 0xf11   :  { %3026 = vmatprep.subr.bf16.mxu0 %v3414_v10 }
 0xf14   :  { %3027 = vmatpush3.bf16.msra.mxu0 %v3280_v26 }
 0xf15   :  { %3040 = vmatprep.subr.bf16.mxu0 %v3414_v10 }
 0xfcf   :  { %v1117_v27 = vpop.f32.mrf.mxu0 }
 0xfd1   :  { %v3022_v28 = vpop.f32.mrf.mxu0 }
 0xfd3   :  { %v1120_v1 = vpop.f32.mrf.mxu0 }
 0xfd4   :  { %v1124_v29 = vpack.c.bf16 %v1120_v1, %v1117_v27 }
 0xfd5   :  { %v3023_v30 = vpop.f32.mrf.mxu0 }
 0xfd6   :  { %3029 = vmatmul.mubr.msk.bf16.vlgmr.msra.gmra.mxu0 %vm252_vm4, %v1124_v29 }
 0xfd7   :  { %3056 = vmatprep.mubr.msk.bf16.mxu0 %vm3415_vm1, %v3414_v10  ;;  %3041 = vmatpush3.bf16.msra.mxu0 %v3283_v39 }
 0xfd8   :  { %3042 = vmatprep.subr.bf16.mxu0 %v3414_v10 }
 0xfdb   :  { %3043 = vmatpush3.bf16.msra.mxu0 %v3284_v8 }
 0xfdc   :  { %3044 = vmatprep.subr.bf16.mxu0 %v3414_v10 }
 0xfdf   :  { %3045 = vmatpush3.bf16.msra.mxu0 %v3285_v9  ;;  %v1460_v9 = vld [vmem:[%s2657_s7 + $0x20] sm:$0xff] }
 0xfe0   :  { %3046 = vmatprep.subr.bf16.mxu0 %v3414_v10  ;;  %vm1499_vm10 = vcmp.eq.s32.totalorder %v1460_v9, 4294967295 }
 0xfe3   :  { %3047 = vmatpush3.bf16.msra.mxu0 %v3286_v19 }
 0xfe4   :  { %3048 = vmatprep.subr.bf16.mxu0 %v3414_v10 }
 0xfe7   :  { %3049 = vmatpush3.bf16.msra.mxu0 %v3287_v12 }
 0xfe8   :  { %3050 = vmatprep.subr.bf16.mxu0 %v3414_v10 }
 0xfeb   :  { %3051 = vmatpush3.bf16.msra.mxu0 %v3288_v13 }
 0xfec   :  { %3052 = vmatprep.subr.bf16.mxu0 %v3414_v10 }
 0xfef   :  { %3053 = vmatpush3.bf16.msra.mxu0 %v3289_v14  ;;  %v1505_v14 = vsel %vm1499_vm10, 1.0, %v3414_v10 }
 0xff0   :  { %3054 = vmatprep.subr.bf16.mxu0 %v3414_v10 }
 0xff3   :  { %3055 = vmatpush3.bf16.msra.mxu0 %v3290_v23 }
 0xff4   :  { %3090 = vmatprep.subr.bf16.mxu0 %v3414_v10 }
0x1096   :  { %v1174_v32 = vpop.f32.mrf.mxu0 }
0x1097   :  { %v1181_v33 = vadd.f32 %v1174_v32, %v3651_v11 }
0x1098   :  { %v3030_v35 = vpop.f32.mrf.mxu0 }
0x1099   :  { %v3700_v36 = vadd.f32 %v2772_v31, %v1181_v33 }
0x109a   :  { %v1177_v37 = vpop.f32.mrf.mxu0 }
0x109b   :  { %v1182_v38 = vadd.f32 %v1177_v37, %v3656_v16  ;;  %v1191_v40 = vsel %vm252_vm4, %v3700_v36, 0.0 }
0x109c   :  { %1192 = vadd.xlane.f32.xlu0 %v1191_v40  ;;  %v3031_v41 = vpop.f32.mrf.mxu0 }
0x109d   :  { %v3705_v42 = vadd.f32 %v2772_v31, %v1182_v38 }
0x109f   :  { %v1194_v43 = vsel %vm252_vm4, %v3705_v42, 0.0 }
0x10a0   :  { %1195 = vadd.xlane.f32.xlu1 %v1194_v43 }
0x1125   :  { %v1193_v11 = vpop.xlane.xlu0 %1192 }
0x1126   :  { %v1197_v44 = vmul.f32 0.03125, %v1193_v11 }
0x1128   :  { %v1199_v45 = vsub.f32 %v3700_v36, %v1197_v44 }
0x1129   :  { %v1196_v46 = vpop.xlane.xlu1 %1195 }
0x112a   :  { %v1198_v47 = vmul.f32 0.03125, %v1196_v46  ;;  %v1201_v16 = vmul.f32 %v1199_v45, %v1199_v45  ;;  %v2779_v46 = vld [vmem:[%s3647_s23 + $0x1] ss:$0 sm:$0xff]  ;;  %s2679_s23 = sld [smem:[%s4106_s0 + %s3439_s19]]  }
0x112c   :  { %v1200_v48 = vsub.f32 %v3705_v42, %v1198_v47  ;;  %v1203_v49 = vsel %vm252_vm4, %v1201_v16, 0.0 }
0x112d   :  { %1204 = vadd.xlane.f32.xlu1 %v1203_v49 }
0x112e   :  { %v1202_v50 = vmul.f32 %v1200_v48, %v1200_v48 }
0x1130   :  { %v1206_v51 = vsel %vm252_vm4, %v1202_v50, 0.0 }
0x1131   :  { %1207 = vadd.xlane.f32.xlu1 %v1206_v51 }
0x11b6   :  { %v1205_v54 = vpop.xlane.xlu1 %1204 }
0x11b7   :  { %v1209_v55 = vmul.f32 0.03125, %v1205_v54 }
0x11b9   :  { %v1211_v56 = vadd.f32 1e-05, %v1209_v55 }
0x11ba   :  { %v1208_v57 = vpop.xlane.xlu1 %1207 }
0x11bb   :  { %3339 = vrsqrt.f32 %v1211_v56  ;;  %v1210_v58 = vmul.f32 0.03125, %v1208_v57 }
0x11bd   :  { %v1212_v59 = vadd.f32 1e-05, %v1210_v58 }
0x11bf   :  { %3341 = vrsqrt.f32 %v1212_v59 }
0x11c8   :  { %v3340_v61 = vpop.eup %3339 }
0x11c9   :  { %v1215_v62 = vmul.f32 %v3340_v61, %v1199_v45 }
0x11cb   :  { %v1223_v3 = vmul.f32 %v2773_v63, %v1215_v62 }
0x11cc   :  { %v3342_v0 = vpop.eup %3341 }
0x11cd   :  { %v1216_v2 = vmul.f32 %v3342_v0, %v1200_v48  ;;  %v1231_v5 = vadd.f32 %v2774_v4, %v1223_v3  ;;  %v1458_v3 = vld [vmem:[%s2657_s7 + $0x10] sm:$0xff] }
0x11ce   :  { %vm1497_vm5 = vcmp.eq.s32.totalorder %v1458_v3, 4294967295 }
0x11cf   :  { %v1224_v34 = vmul.f32 %v2773_v63, %v1216_v2 }
0x11d1   :  { %v1232_v6 = vadd.f32 %v2774_v4, %v1224_v34  ;;  %v1459_v4 = vld [vmem:[%s2657_s7 + $0x18] sm:$0xff]  ;;  %v1457_v34 = vld [vmem:[%s2657_s7 + $0x8] sm:$0xff] }
0x11d2   :  { %vm1498_vm6 = vcmp.eq.s32.totalorder %v1459_v4, 4294967295  ;;  %vm1496_vm8 = vcmp.eq.s32.totalorder %v1457_v34, 4294967295 }
0x11d3   :  { %v1233_v7 = vpack.c.bf16 %v1232_v6, %v1231_v5  ;;  %v1503_v5 = vsel %vm1497_vm5, 1.0, %v3414_v10  ;;  %v1504_v6 = vsel %vm1498_vm6, 1.0, %v3414_v10  ;;  %v1502_v8 = vsel %vm1496_vm8, 1.0, %v3414_v10 }
0x11d4   :  { %v3252_v19 = vpack.i.bf16 %v1504_v6, %v1503_v5 }
0x11d5   :  { %3037 = vmatmul.mubr.msk.bf16.vlgmr.msra.gmra.mxu1 %vm252_vm4, %v1233_v7  ;;  %v1461_v7 = vld [vmem:[%s2657_s7 + $0x28] sm:$0xff] }
0x11d6   :  { %3062 = vmatprep.mubr.msk.bf16.mxu1 %vm3415_vm1, %v3414_v10  ;;  %vm1500_vm9 = vcmp.eq.s32.totalorder %v1461_v7, 4294967295 }
0x11d7   :  { %v1506_v13 = vsel %vm1500_vm9, 1.0, %v3414_v10 }
0x11d8   :  { %v3257_v23 = vpack.i.bf16 %v1506_v13, %v1505_v14 }
0x1295   :  { %v1289_v18 = vpop.f32.mrf.mxu1 }
0x1296   :  { %v1290_v20 = vadd.f32 %v2775_v15, %v1289_v18 }
0x1297   :  { %v3038_v21 = vpop.f32.mrf.mxu1 }
0x1298   :  { %v1296_v60 = vmul.f32 %v1290_v20, %v1290_v20 }
0x1299   :  { %v1292_v22 = vpop.f32.mrf.mxu1 }
0x129a   :  { %v1298_v24 = vmul.f32 %v1296_v60, %v1290_v20  ;;  %v1293_v25 = vadd.f32 %v2775_v15, %v1292_v22 }
0x129b   :  { %v3039_v26 = vpop.f32.mrf.mxu1 }
0x129c   :  { %v1300_v27 = vmul.f32 0.044715, %v1298_v24  ;;  %v1297_v28 = vmul.f32 %v1293_v25, %v1293_v25  ;;  %v2788_v26 = vld [vmem:[%s2674_s26] ss:$0 sm:$0xff]  ;;  %s2682_s26 = sld [smem:[%s4106_s0 + %s3441_s17]]  }
0x129e   :  { %v1302_v1 = vadd.f32 %v1300_v27, %v1290_v20  ;;  %v1299_v29 = vmul.f32 %v1297_v28, %v1293_v25 }
0x12a0   :  { %v1304_v30 = vmul.f32 0.7978846, %v1302_v1  ;;  %v1301_v31 = vmul.f32 0.044715, %v1299_v29 }
0x12a2   :  { %3343 = vtanh.f32 %v1304_v30  ;;  %v1303_v32 = vadd.f32 %v1301_v31, %v1293_v25  ;;  %v2789_v31 = vld [vmem:[%s2675_s1] ss:$0 sm:$0xff]  ;;  %s3443_s1 = smov 28  }
0x12a3   :  { %s3938_s5 = sld [smem:[%s4106_s0 + %s3443_s1]]  }
0x12a4   :  { %v1305_v33 = vmul.f32 0.7978846, %v1303_v32 }
0x12a6   :  { %3345 = vtanh.f32 %v1305_v33 }
0x12af   :  { %v3344_v35 = vpop.eup %3343 }
0x12b0   :  { %v1308_v37 = vadd.f32 1.0, %v3344_v35 }
0x12b2   :  { %v1310_v40 = vmul.f32 0.5, %v1308_v37 }
0x12b3   :  { %v3346_v38 = vpop.eup %3345 }
0x12b4   :  { %v1309_v41 = vadd.f32 1.0, %v3346_v38  ;;  %v1312_v11 = vmul.f32 %v1310_v40, %v1290_v20 }
0x12b6   :  { %v1311_v43 = vmul.f32 0.5, %v1309_v41 }
0x12b8   :  { %v1313_v44 = vmul.f32 %v1311_v43, %v1293_v25 }
0x12ba   :  { %v1314_v45 = vpack.c.bf16 %v1313_v44, %v1312_v11 }
0x12bc   :  { %3057 = vmatmul.mubr.bf16.vlgmr.msra.gmra.mxu0 %v1314_v45 }
0x12bd   :  { %3096 = vmatprep.mubr.msk.bf16.mxu0 %vm3415_vm1, %v3414_v10 }
0x137c   :  { %v1403_v47 = vpop.f32.mrf.mxu0 }
0x137d   :  { %v1404_v16 = vadd.f32 %v2779_v46, %v1403_v47 }
0x137e   :  { %v3058_v48 = vpop.f32.mrf.mxu0 }
0x137f   :  { %v1410_v49 = vadd.f32 %v1404_v16, %v3700_v36 }
0x1380   :  { %v1406_v50 = vpop.f32.mrf.mxu0 }
0x1381   :  { %v1407_v51 = vadd.f32 %v2779_v46, %v1406_v50  ;;  %v1414_v52 = vsel %vm252_vm4, %v1410_v49, 0.0 }
0x1382   :  { %1415 = vadd.xlane.f32.xlu1 %v1414_v52  ;;  %v3059_v53 = vpop.f32.mrf.mxu0  ;;  %v2790_v52 = vld [vmem:[%s2676_s6] ss:$0 sm:$0xff]  ;;  %s2690_s6 = sld [smem:[%s4106_s0 + %s3451_s4]]  }
0x1383   :  { %v1411_v54 = vadd.f32 %v1407_v51, %v3705_v42  ;;  %v1456_v42 = vld [vmem:[%s2657_s7] sm:$0xff]  ;;  %s2680_s7 = sld [smem:[%s4106_s0 + %s3440_s25]]  }
0x1384   :  { %vm1495_vm7 = vcmp.eq.s32.totalorder %v1456_v42, 4294967295 }
0x1385   :  { %v1417_v55 = vsel %vm252_vm4, %v1411_v54, 0.0  ;;  %v1501_v39 = vsel %vm1495_vm7, 1.0, %v3414_v10 }
0x1386   :  { %1418 = vadd.xlane.f32.xlu1 %v1417_v55  ;;  %v3247_v12 = vpack.i.bf16 %v1502_v8, %v1501_v39  ;;  %v1619_v39 = vld [vmem:[%s3791_s12 + $0x10] sm:$0xff] }
0x140b   :  { %v1416_v56 = vpop.xlane.xlu1 %1415 }
0x140c   :  { %v1420_v57 = vmul.f32 0.03125, %v1416_v56 }
0x140e   :  { %v1422_v58 = vsub.f32 %v1410_v49, %v1420_v57  ;;  %v1617_v57 = vld [vmem:[%s3791_s12] sm:$0xff] }
0x140f   :  { %v1419_v59 = vpop.xlane.xlu1 %1418 }
0x1410   :  { %v1421_v61 = vmul.f32 0.03125, %v1419_v59  ;;  %v1424_v62 = vmul.f32 %v1422_v58, %v1422_v58 }
0x1412   :  { %v1423_v63 = vsub.f32 %v1411_v54, %v1421_v61  ;;  %v1426_v36 = vsel %vm252_vm4, %v1424_v62, 0.0 }
0x1413   :  { %1427 = vadd.xlane.f32.xlu1 %v1426_v36 }
0x1414   :  { %v1425_v0 = vmul.f32 %v1423_v63, %v1423_v63 }
0x1416   :  { %v1429_v2 = vsel %vm252_vm4, %v1425_v0, 0.0  ;;  %v1618_v0 = vld [vmem:[%s3791_s12 + $0x8] sm:$0xff] }
0x1417   :  { %1430 = vadd.xlane.f32.xlu0 %v1429_v2 }
0x1424   :  { %1463 = vperm.xlu1 %3246, %v1456_v42  }
0x1428   :  { %1469 = vperm.xlu1 %3246, %v1458_v3  }
0x142c   :  { %1472 = vperm.xlu1 %3246, %v1459_v4  }
0x142d   :  { %1466 = vperm.xlu0 %3245, %v1457_v34  }
0x1430   :  { %1478 = vperm.xlu1 %3246, %v1461_v7  }
0x1431   :  { %1475 = vperm.xlu0 %3245, %v1460_v9  }
0x1434   :  { %3253 = vperm.xlu1 %3246, %v3252_v19  }
0x1435   :  { %3248 = vperm.xlu0 %3245, %v3247_v12  }
0x1439   :  { %3258 = vperm.xlu0 %3245, %v3257_v23  }
0x149c   :  { %v1428_v15 = vpop.xlane.xlu1 %1427 }
0x149d   :  { %v1432_v18 = vmul.f32 0.03125, %v1428_v15  ;;  %v1620_v15 = vld [vmem:[%s3791_s12 + $0x18] sm:$0xff] }
0x149f   :  { %v1434_v20 = vadd.f32 1e-05, %v1432_v18 }
0x14a0   :  { %v1431_v21 = vpop.xlane.xlu0 %1430  ;;  %v1464_v27 = vpop.permute.xlu1 %1463 }
0x14a1   :  { %3347 = vrsqrt.f32 %v1434_v20  ;;  %v1433_v60 = vmul.f32 0.03125, %v1431_v21  ;;  %vm1480_vm11 = vcmp.eq.s32.totalorder %v3479_v17, %v1464_v27 }
0x14a2   :  { %v1486_v38 = vsel %vm1480_vm11, 1.0, %v3414_v10 }
0x14a3   :  { %v1435_v22 = vadd.f32 1e-05, %v1433_v60 }
0x14a4   :  { %v1470_v33 = vpop.permute.xlu1 %1469 }
0x14a5   :  { %3349 = vrsqrt.f32 %v1435_v22  ;;  %vm1482_vm13 = vcmp.eq.s32.totalorder %v3479_v17, %v1470_v33 }
0x14a6   :  { %v1488_v44 = vsel %vm1482_vm13, 1.0, %v3414_v10 }
0x14a8   :  { %v1467_v1 = vpop.permute.xlu0 %1466  ;;  %v1473_v11 = vpop.permute.xlu1 %1472 }
0x14a9   :  { %vm1481_vm12 = vcmp.eq.s32.totalorder %v3479_v17, %v1467_v1  ;;  %vm1483_vm14 = vcmp.eq.s32.totalorder %v3479_v17, %v1473_v11 }
0x14aa   :  { %v1487_v40 = vsel %vm1481_vm12, 1.0, %v3414_v10  ;;  %v1489_v45 = vsel %vm1483_vm14, 1.0, %v3414_v10 }
0x14ab   :  { %v1492_v43 = vpack.c.bf16 %v1487_v40, %v1486_v38  ;;  %v1493_v16 = vpack.c.bf16 %v1489_v45, %v1488_v44 }
0x14ac   :  { %v1476_v46 = vpop.permute.xlu0 %1475  ;;  %v1479_v47 = vpop.permute.xlu1 %1478 }
0x14ad   :  { %vm1484_vm15 = vcmp.eq.s32.totalorder %v3479_v17, %v1476_v46  ;;  %vm1485_vm2 = vcmp.eq.s32.totalorder %v3479_v17, %v1479_v47 }
0x14ae   :  { %v3348_v24 = vpop.eup %3347  ;;  %v1490_v48 = vsel %vm1484_vm15, 1.0, %v3414_v10  ;;  %v1491_v49 = vsel %vm1485_vm2, 1.0, %v3414_v10 }
0x14af   :  { %v1438_v25 = vmul.f32 %v3348_v24, %v1422_v58  ;;  %v1494_v50 = vpack.c.bf16 %v1491_v49, %v1490_v48 }
0x14b0   :  { %v3249_v17 = vpop.permute.xlu0 %3248  ;;  %v3254_v55 = vpop.permute.xlu1 %3253 }
0x14b1   :  { %v1446_v30 = vmul.f32 %v2788_v26, %v1438_v25  ;;  %v3250_v51 = vunpack.i.l.bf16 %v3249_v17  ;;  %v3251_v53 = vunpack.i.h.bf16 %v3249_v17  ;;  %v3255_v61 = vunpack.i.l.bf16 %v3254_v55 }
0x14b2   :  { %v3350_v28 = vpop.eup %3349  ;;  %v3256_v4 = vunpack.i.h.bf16 %v3254_v55 }
0x14b3   :  { %v1439_v29 = vmul.f32 %v3350_v28, %v1423_v63  ;;  %v1454_v35 = vadd.f32 %v2789_v31, %v1446_v30  ;;  %v1545_v54 = vmul.f32 %v3250_v51, %v2790_v52  ;;  %v1546_v63 = vmul.f32 %v3251_v53, %v2790_v52 }
0x14b4   :  { %v1547_v5 = vmul.f32 %v3255_v61, %v2790_v52  ;;  %v3259_v6 = vpop.permute.xlu0 %3258  ;;  %v1548_v14 = vmul.f32 %v3256_v4, %v2790_v52 }
0x14b5   :  { %v1447_v32 = vmul.f32 %v2788_v26, %v1439_v29  ;;  %v3260_v12 = vunpack.i.l.bf16 %v3259_v6  ;;  %v3261_v60 = vunpack.i.h.bf16 %v3259_v6  ;;  %v1621_v26 = vld [vmem:[%s3791_s12 + $0x20] sm:$0xff]  ;;  %v3291_v6 = vld [vmem:[%s2681_s18 + $0x8] sm:$0xff]  }
0x14b7   :  { %v1455_v37 = vadd.f32 %v2789_v31, %v1447_v32  ;;  %v1549_v24 = vmul.f32 %v3260_v12, %v2790_v52  ;;  %v1550_v30 = vmul.f32 %v3261_v60, %v2790_v52  ;;  %v1622_v32 = vld [vmem:[%s3791_s12 + $0x28] sm:$0xff]  ;;  %s2692_s12 = sld [smem:[%s4106_s0 + %s3452_s9]]  }
0x14b9   :  { %v1507_v41 = vpack.c.bf16 %v1455_v37, %v1454_v35 }
0x14bb   :  { %3061 = vmatpush3.bf16.msra.mxu1 %v1507_v41 }
0x14bc   :  { %3074 = vmatprep.subr.bf16.mxu1 %v3414_v10 }
0x14be   :  { %3063 = vmatmul.mubr.msk.bf16.vlgmr.msra.gmra.mxu1 %vm177_vm0, %v1492_v43 }
0x14bf   :  { %3066 = vmatprep.mubr.msk.bf16.mxu1 %vm3415_vm1, %v3414_v10  ;;  %3075 = vmatpush3.bf16.msra.mxu1 %v3291_v6 }
0x14c0   :  { %3076 = vmatprep.subr.bf16.mxu1 %v3414_v10 }
0x14c6   :  { %3067 = vmatmul.mubr.msk.bf16.gmra.mxu1 %vm177_vm0, %v1493_v16 }
0x14c7   :  { %3070 = vmatprep.mubr.msk.bf16.mxu1 %vm3415_vm1, %v3414_v10 }
0x14ce   :  { %3071 = vmatmul.mubr.msk.bf16.gmra.mxu1 %vm177_vm0, %v1494_v50  ;;  %vm1947_vm0 = vcmask 392192  }
0x14cf   :  { %3078 = vmatprep.mubr.msk.bf16.mxu1 %vm3415_vm1, %v3414_v10 }
0x157e   :  { %v1594_v56 = vpop.f32.mrf.mxu1 }
0x157f   :  { %v1595_v58 = vadd.f32 %v1594_v56, %v1545_v54 }
0x1580   :  { %v3064_v59 = vpop.f32.mrf.mxu1 }
0x1581   :  { %v3794_v62 = vadd.f32 %v1617_v57, %v1595_v58 }
0x1582   :  { %v1597_v36 = vpop.f32.mrf.mxu1 }
0x1583   :  { %v1598_v2 = vadd.f32 %v1597_v36, %v1546_v63  ;;  %v1671_v42 = vsel %vm252_vm4, %v3794_v62, 0.0 }
0x1584   :  { %1672 = vadd.xlane.f32.xlu1 %v1671_v42  ;;  %v3065_v3 = vpop.f32.mrf.mxu1 }
0x1585   :  { %v3799_v34 = vadd.f32 %v1618_v0, %v1598_v2 }
0x1586   :  { %v1602_v7 = vpop.f32.mrf.mxu1 }
0x1587   :  { %v1603_v8 = vadd.f32 %v1602_v7, %v1547_v5  ;;  %v1674_v9 = vsel %vm252_vm4, %v3799_v34, 0.0  ;;  %v3292_v7 = vld [vmem:[%s2681_s18] sm:$0xff]   ;;  %s2693_s18 = sld [smem:[%s4106_s0 + %s3453_s14]]  }
0x1588   :  { %1675 = vadd.xlane.f32.xlu0 %v1674_v9  ;;  %v3068_v19 = vpop.f32.mrf.mxu1  ;;  %3077 = vmatpush3.bf16.msra.mxu1 %v3292_v7 }
0x1589   :  { %v3804_v13 = vadd.f32 %v1619_v39, %v1603_v8  ;;  %3108 = vmatprep.subr.bf16.mxu1 %v3414_v10 }
0x158a   :  { %v1605_v23 = vpop.f32.mrf.mxu1 }
0x158b   :  { %v1606_v18 = vadd.f32 %v1605_v23, %v1548_v14  ;;  %v1677_v20 = vsel %vm252_vm4, %v3804_v13, 0.0 }
0x158c   :  { %1678 = vadd.xlane.f32.xlu0 %v1677_v20  ;;  %v3069_v21 = vpop.f32.mrf.mxu1 }
0x158d   :  { %v3809_v22 = vadd.f32 %v1620_v15, %v1606_v18 }
0x158e   :  { %v1610_v25 = vpop.f32.mrf.mxu1 }
0x158f   :  { %v1611_v27 = vadd.f32 %v1610_v25, %v1549_v24  ;;  %v1680_v28 = vsel %vm252_vm4, %v3809_v22, 0.0 }
0x1590   :  { %1681 = vadd.xlane.f32.xlu1 %v1680_v28  ;;  %v3072_v1 = vpop.f32.mrf.mxu1 }
0x1591   :  { %v3814_v29 = vadd.f32 %v1621_v26, %v1611_v27  ;;  %v2794_v1 = vld [vmem:[%s2679_s23] ss:$0 sm:$0xff] }
0x1592   :  { %v1613_v31 = vpop.f32.mrf.mxu1 }
0x1593   :  { %v1614_v33 = vadd.f32 %v1613_v31, %v1550_v30  ;;  %v1683_v35 = vsel %vm252_vm4, %v3814_v29, 0.0 }
0x1594   :  { %1684 = vadd.xlane.f32.xlu0 %v1683_v35  ;;  %v3073_v37 = vpop.f32.mrf.mxu1 }
0x1595   :  { %v3819_v38 = vadd.f32 %v1622_v32, %v1614_v33 }
0x1597   :  { %v1686_v40 = vsel %vm252_vm4, %v3819_v38, 0.0 }
0x1598   :  { %1687 = vadd.xlane.f32.xlu1 %v1686_v40  ;;  %v2795_v40 = vld [vmem:[%s2680_s7] ss:$0 sm:$0xff] }
0x160d   :  { %v1673_v41 = vpop.xlane.xlu1 %1672 }
0x160e   :  { %v1689_v43 = vmul.f32 0.03125, %v1673_v41 }
0x1610   :  { %v3824_v11 = vsub.f32 %v3794_v62, %v1689_v43 }
0x1611   :  { %v1676_v44 = vpop.xlane.xlu0 %1675 }
0x1612   :  { %v1690_v45 = vmul.f32 0.03125, %v1676_v44  ;;  %v1701_v46 = vmul.f32 %v3824_v11, %v3824_v11 }
0x1614   :  { %v3829_v47 = vsub.f32 %v3799_v34, %v1690_v45  ;;  %v1707_v16 = vsel %vm252_vm4, %v1701_v46, 0.0 }
0x1615   :  { %v1679_v48 = vpop.xlane.xlu0 %1678  ;;  %1708 = vadd.xlane.f32.xlu0 %v1707_v16 }
0x1616   :  { %v1691_v49 = vmul.f32 0.03125, %v1679_v48  ;;  %v1702_v50 = vmul.f32 %v3829_v47, %v3829_v47 }
0x1618   :  { %v3835_v17 = vsub.f32 %v3804_v13, %v1691_v49  ;;  %v1710_v51 = vsel %vm252_vm4, %v1702_v50, 0.0 }
0x1619   :  { %v1682_v52 = vpop.xlane.xlu1 %1681  ;;  %1711 = vadd.xlane.f32.xlu1 %v1710_v51 }
0x161a   :  { %v1692_v53 = vmul.f32 0.03125, %v1682_v52  ;;  %v1703_v54 = vmul.f32 %v3835_v17, %v3835_v17 }
0x161c   :  { %v3841_v55 = vsub.f32 %v3809_v22, %v1692_v53  ;;  %v1713_v56 = vsel %vm252_vm4, %v1703_v54, 0.0 }
0x161d   :  { %1714 = vadd.xlane.f32.xlu0 %v1713_v56  ;;  %v1685_v57 = vpop.xlane.xlu0 %1684 }
0x161e   :  { %v1693_v58 = vmul.f32 0.03125, %v1685_v57  ;;  %v1704_v59 = vmul.f32 %v3841_v55, %v3841_v55 }
0x1620   :  { %v3847_v61 = vsub.f32 %v3814_v29, %v1693_v58  ;;  %v1716_v63 = vsel %vm252_vm4, %v1704_v59, 0.0 }
0x1621   :  { %1717 = vadd.xlane.f32.xlu1 %v1716_v63  ;;  %v1688_v36 = vpop.xlane.xlu1 %1687 }
0x1622   :  { %v1694_v0 = vmul.f32 0.03125, %v1688_v36  ;;  %v1705_v2 = vmul.f32 %v3847_v61, %v3847_v61 }
0x1624   :  { %v3853_v42 = vsub.f32 %v3819_v38, %v1694_v0  ;;  %v1719_v3 = vsel %vm252_vm4, %v1705_v2, 0.0 }
0x1625   :  { %1720 = vadd.xlane.f32.xlu0 %v1719_v3 }
0x1626   :  { %v1706_v4 = vmul.f32 %v3853_v42, %v3853_v42 }
0x1628   :  { %v1722_v5 = vsel %vm252_vm4, %v1706_v4, 0.0  ;;  %v2796_v4 = vld [vmem:[%s2682_s26] ss:$0 sm:$0xff] }
0x1629   :  { %1723 = vadd.xlane.f32.xlu1 %v1722_v5 }
0x169e   :  { %v1709_v39 = vpop.xlane.xlu0 %1708 }
0x169f   :  { %v1725_v8 = vmul.f32 0.03125, %v1709_v39 }
0x16a1   :  { %v1731_v9 = vadd.f32 1e-05, %v1725_v8 }
0x16a2   :  { %v1712_v19 = vpop.xlane.xlu1 %1711 }
0x16a3   :  { %3351 = vrsqrt.f32 %v1731_v9  ;;  %v1726_v12 = vmul.f32 0.03125, %v1712_v19 }
0x16a5   :  { %v1732_v14 = vadd.f32 1e-05, %v1726_v12 }
0x16a6   :  { %v1715_v23 = vpop.xlane.xlu0 %1714 }
0x16a7   :  { %3353 = vrsqrt.f32 %v1732_v14  ;;  %v1727_v15 = vmul.f32 0.03125, %v1715_v23 }
0x16a9   :  { %v1733_v18 = vadd.f32 1e-05, %v1727_v15 }
0x16aa   :  { %v1718_v20 = vpop.xlane.xlu1 %1717 }
0x16ab   :  { %3355 = vrsqrt.f32 %v1733_v18  ;;  %v1728_v21 = vmul.f32 0.03125, %v1718_v20 }
0x16ad   :  { %v1734_v60 = vadd.f32 1e-05, %v1728_v21 }
0x16ae   :  { %v1721_v24 = vpop.xlane.xlu0 %1720 }
0x16af   :  { %3357 = vrsqrt.f32 %v1734_v60  ;;  %v1729_v25 = vmul.f32 0.03125, %v1721_v24 }
0x16b0   :  { %v3352_v26 = vpop.eup %3351 }
0x16b1   :  { %v1743_v27 = vmul.f32 %v3352_v26, %v3824_v11  ;;  %v1735_v28 = vadd.f32 1e-05, %v1729_v25 }
0x16b2   :  { %v1724_v30 = vpop.xlane.xlu1 %1723 }
0x16b3   :  { %3359 = vrsqrt.f32 %v1735_v28  ;;  %v1730_v31 = vmul.f32 0.03125, %v1724_v30  ;;  %v1755_v33 = vmul.f32 %v2794_v1, %v1743_v27 }
0x16b4   :  { %v3354_v32 = vpop.eup %3353 }
0x16b5   :  { %v1744_v35 = vmul.f32 %v3354_v32, %v3829_v47  ;;  %v1736_v37 = vadd.f32 1e-05, %v1730_v31  ;;  %v1767_v44 = vadd.f32 %v2795_v40, %v1755_v33 }
0x16b7   :  { %v1756_v41 = vmul.f32 %v2794_v1, %v1744_v35  ;;  %3361 = vrsqrt.f32 %v1736_v37 }
0x16b8   :  { %v3356_v43 = vpop.eup %3355 }
0x16b9   :  { %v1768_v45 = vadd.f32 %v2795_v40, %v1756_v41  ;;  %v1745_v46 = vmul.f32 %v3356_v43, %v3835_v17 }
0x16bb   :  { %v1773_v16 = vpack.c.bf16 %v1768_v45, %v1767_v44  ;;  %v1757_v49 = vmul.f32 %v2794_v1, %v1745_v46 }
0x16bc   :  { %v3358_v11 = vpop.eup %3357 }
0x16bd   :  { %3079 = vmatmul.mubr.msk.bf16.vlgmr.msra.gmra.mxu1 %vm252_vm4, %v1773_v16  ;;  %v1746_v48 = vmul.f32 %v3358_v11, %v3841_v55  ;;  %v1769_v51 = vadd.f32 %v2795_v40, %v1757_v49 }
0x16be   :  { %3082 = vmatprep.mubr.msk.bf16.mxu1 %vm3415_vm1, %v3414_v10 }
0x16bf   :  { %v1758_v47 = vmul.f32 %v2794_v1, %v1746_v48 }
0x16c0   :  { %v3360_v50 = vpop.eup %3359 }
0x16c1   :  { %v1770_v52 = vadd.f32 %v2795_v40, %v1758_v47  ;;  %v1747_v53 = vmul.f32 %v3360_v50, %v3847_v61 }
0x16c3   :  { %v1774_v54 = vpack.c.bf16 %v1770_v52, %v1769_v51  ;;  %v1759_v57 = vmul.f32 %v2794_v1, %v1747_v53 }
0x16c4   :  { %v3362_v56 = vpop.eup %3361 }
0x16c5   :  { %3083 = vmatmul.mubr.msk.bf16.gmra.mxu1 %vm252_vm4, %v1774_v54  ;;  %v1748_v17 = vmul.f32 %v3362_v56, %v3853_v42  ;;  %v1771_v58 = vadd.f32 %v2795_v40, %v1759_v57 }
0x16c6   :  { %3086 = vmatprep.mubr.msk.bf16.mxu1 %vm3415_vm1, %v3414_v10 }
0x16c7   :  { %v1760_v55 = vmul.f32 %v2794_v1, %v1748_v17 }
0x16c9   :  { %v1772_v59 = vadd.f32 %v2795_v40, %v1760_v55 }
0x16cb   :  { %v1775_v63 = vpack.c.bf16 %v1772_v59, %v1771_v58 }
0x16cd   :  { %3087 = vmatmul.mubr.msk.bf16.gmra.mxu1 %vm252_vm4, %v1775_v63 }
0x16ce   :  { %3114 = vmatprep.mubr.msk.bf16.mxu1 %vm3415_vm1, %v3414_v10 }
0x177d   :  { %v1837_v61 = vpop.f32.mrf.mxu1 }
0x177e   :  { %v1838_v12 = vadd.f32 %v2796_v4, %v1837_v61 }
0x177f   :  { %v3080_v36 = vpop.f32.mrf.mxu1 }
0x1781   :  { %v1840_v0 = vpop.f32.mrf.mxu1 }
0x1782   :  { %v1841_v8 = vadd.f32 %v2796_v4, %v1840_v0 }
0x1783   :  { %v3081_v2 = vpop.f32.mrf.mxu1 }
0x1784   :  { %v3892_v23 = vpack.c.bf16 %v1841_v8, %v1838_v12 }
0x1785   :  { %v1845_v42 = vpop.f32.mrf.mxu1 }
0x1786   :  { %v1846_v6 = vadd.f32 %v2796_v4, %v1845_v42 }
0x1787   :  { %v3084_v3 = vpop.f32.mrf.mxu1 }
0x1789   :  { %v1848_v5 = vpop.f32.mrf.mxu1 }
0x178a   :  { %v1849_v7 = vadd.f32 %v2796_v4, %v1848_v5 }
0x178b   :  { %v3085_v39 = vpop.f32.mrf.mxu1 }
0x178c   :  { %v3888_v9 = vpack.c.bf16 %v1849_v7, %v1846_v6 }
0x178d   :  { %v1853_v19 = vpop.f32.mrf.mxu1 }
0x178e   :  { %1868 = vrot.lane.b32.xlu1 %v3888_v9, %s3422_s8  ;;  %v1854_v18 = vadd.f32 %v2796_v4, %v1853_v19 }
0x178f   :  { %v3088_v14 = vpop.f32.mrf.mxu1 }
0x1791   :  { %v1856_v15 = vpop.f32.mrf.mxu1 }
0x1792   :  { %v1857_v20 = vadd.f32 %v2796_v4, %v1856_v15  ;;  %1866 = vrot.lane.b32.xlu1 %v3892_v23, %s3422_s8 }
0x1793   :  { %v3089_v21 = vpop.f32.mrf.mxu1 }
0x1794   :  { %v1862_v60 = vpack.c.bf16 %v1857_v20, %v1854_v18 }
0x1796   :  { %1870 = vrot.lane.b32.xlu0 %v1862_v60, %s3422_s8  ;;  %s3442_s8 = smov 23  }
0x1797   :  { %s2678_s30 = sld [smem:[%s4106_s0 + %s3442_s8]]  }
0x179d   :  { %v1629_v30 = vld [vmem:[%s2678_s30] sm:$0xff]  ;;  %v1630_v35 = vld [vmem:[%s2678_s30 + $0x8] sm:$0xff]  ;;  %v1631_v44 = vld [vmem:[%s2678_s30 + $0x10] sm:$0xff] }
0x179e   :  { %v1632_v48 = vld [vmem:[%s2678_s30 + $0x18] sm:$0xff]  ;;  %v1633_v52 = vld [vmem:[%s2678_s30 + $0x20] sm:$0xff]  ;;  %v1634_v57 = vld [vmem:[%s2678_s30 + $0x28] sm:$0xff] }
0x1800   :  { %v1869_v26 = vpop.permute.xlu1 %1868 }
0x1801   :  { %v1885_v27 = vsel %vm252_vm4, %v1869_v26, 0 }
0x1804   :  { %v1867_v28 = vpop.permute.xlu1 %1866 }
0x1805   :  { %v1882_v1 = vsel %vm252_vm4, %v1867_v28, 0 }
0x1808   :  { %v1871_v24 = vpop.permute.xlu0 %1870 }
0x1809   :  { %v1888_v25 = vsel %vm252_vm4, %v1871_v24, 0 }
0x180a   :  { %3091 = vmatpush3.bf16.xpose.msra.mxu0 %v1888_v25 }
0x180b   :  { %3092 = vmatprep.subr.bf16.mxu0 %v3414_v10 }
0x1812   :  { %3093 = vmatpush3.bf16.xpose.msra.mxu0 %v1885_v27 }
0x1813   :  { %3094 = vmatprep.subr.bf16.mxu0 %v3414_v10 }
0x181a   :  { %3095 = vmatpush3.bf16.xpose.msra.mxu0 %v1882_v1 }
0x181b   :  { %3126 = vmatprep.subr.bf16.mxu0 %v3414_v10 }
0x1821   :  { %3097 = vmatmul.mubr.msk.bf16.vlgmr.msra.gmra.mxu0 %vm252_vm4, %v3892_v23 }
0x1822   :  { %3100 = vmatprep.mubr.msk.bf16.mxu0 %vm3415_vm1, %v3414_v10 }
0x1829   :  { %3101 = vmatmul.mubr.msk.bf16.gmra.mxu0 %vm252_vm4, %v3888_v9 }
0x182a   :  { %3104 = vmatprep.mubr.msk.bf16.mxu0 %vm3415_vm1, %v3414_v10 }
0x1831   :  { %3105 = vmatmul.mubr.msk.bf16.gmra.mxu0 %vm252_vm4, %v1862_v60 }
0x1832   :  { %3130 = vmatprep.mubr.msk.bf16.mxu0 %vm3415_vm1, %v3414_v10 }
0x18e1   :  { %v1924_v31 = vpop.f32.mrf.mxu0 }
0x18e2   :  { %v1925_v32 = vadd.f32 %v1924_v31, %v1629_v30 }
0x18e3   :  { %v3098_v33 = vpop.f32.mrf.mxu0 }
0x18e4   :  { %v1948_v37 = vsel %vm1947_vm0, %v1925_v32, -inf }
0x18e5   :  { %1949 = vmax.xlane.f32.xlu0 %v1948_v37  ;;  %v1927_v40 = vpop.f32.mrf.mxu0 }
0x18e6   :  { %v1928_v41 = vadd.f32 %v1927_v40, %v1630_v35  ;;  %v3293_v40 = vld [vmem:[%s3938_s5 + $0x8] sm:$0xff]  }
0x18e7   :  { %v3099_v43 = vpop.f32.mrf.mxu0  ;;  %3127 = vmatpush3.bf16.msra.mxu0 %v3293_v40 }
0x18e8   :  { %v1951_v45 = vsel %vm1947_vm0, %v1928_v41, -inf  ;;  %3128 = vmatprep.subr.bf16.mxu0 %v3414_v10 }
0x18e9   :  { %1952 = vmax.xlane.f32.xlu1 %v1951_v45  ;;  %v1932_v46 = vpop.f32.mrf.mxu0 }
0x18ea   :  { %v1933_v16 = vadd.f32 %v1932_v46, %v1631_v44 }
0x18eb   :  { %v3102_v11 = vpop.f32.mrf.mxu0 }
0x18ec   :  { %v1954_v49 = vsel %vm1947_vm0, %v1933_v16, -inf }
0x18ed   :  { %1955 = vmax.xlane.f32.xlu0 %v1954_v49  ;;  %v1935_v47 = vpop.f32.mrf.mxu0 }
0x18ee   :  { %v1936_v50 = vadd.f32 %v1935_v47, %v1632_v48 }
0x18ef   :  { %v3103_v51 = vpop.f32.mrf.mxu0 }
0x18f0   :  { %v1957_v53 = vsel %vm1947_vm0, %v1936_v50, -inf }
0x18f1   :  { %1958 = vmax.xlane.f32.xlu0 %v1957_v53  ;;  %v1940_v54 = vpop.f32.mrf.mxu0 }
0x18f2   :  { %v1941_v56 = vadd.f32 %v1940_v54, %v1633_v52 }
0x18f3   :  { %v3106_v17 = vpop.f32.mrf.mxu0 }
0x18f4   :  { %v1960_v55 = vsel %vm1947_vm0, %v1941_v56, -inf }
0x18f5   :  { %1961 = vmax.xlane.f32.xlu1 %v1960_v55  ;;  %v1943_v58 = vpop.f32.mrf.mxu0 }
0x18f6   :  { %v1944_v59 = vadd.f32 %v1943_v58, %v1634_v57 }
0x18f7   :  { %v3107_v63 = vpop.f32.mrf.mxu0 }
0x18f8   :  { %v1963_v61 = vsel %vm1947_vm0, %v1944_v59, -inf  ;;  %v3294_v63 = vld [vmem:[%s3938_s5] sm:$0xff]  }
0x18f9   :  { %1964 = vmax.xlane.f32.xlu0 %v1963_v61  ;;  %3129 = vmatpush3.bf16.msra.mxu0 %v3294_v63 }
0x18fa   :  { %3158 = vmatprep.subr.bf16.mxu0 %v3414_v10 }
0x1906   :  { %2021 = vrot.lane.b32.xlu1 %v1862_v60, %s3424_s13 }
0x196e   :  { %v1950_v36 = vpop.xlane.xlu0 %1949 }
0x196f   :  { %v1966_v0 = vsub.f32 %v1925_v32, %v1950_v36 }
0x1971   :  { %v1972_v2 = vmul.f32 1.442695, %v1966_v0 }
0x1972   :  { %v1953_v42 = vpop.xlane.xlu1 %1952 }
0x1973   :  { %3363 = vpow2.f32 %v1972_v2  ;;  %v1967_v3 = vsub.f32 %v1928_v41, %v1953_v42 }
0x1975   :  { %v1974_v4 = vmul.f32 1.442695, %v1967_v3 }
0x1976   :  { %v1956_v5 = vpop.xlane.xlu0 %1955 }
0x1977   :  { %3365 = vpow2.f32 %v1974_v4  ;;  %v1968_v6 = vsub.f32 %v1933_v16, %v1956_v5 }
0x1979   :  { %v1976_v7 = vmul.f32 1.442695, %v1968_v6 }
0x197a   :  { %v1959_v39 = vpop.xlane.xlu0 %1958 }
0x197b   :  { %3367 = vpow2.f32 %v1976_v7  ;;  %v1969_v8 = vsub.f32 %v1936_v50, %v1959_v39 }
0x197d   :  { %v1978_v19 = vmul.f32 1.442695, %v1969_v8 }
0x197e   :  { %v1962_v12 = vpop.xlane.xlu1 %1961 }
0x197f   :  { %3369 = vpow2.f32 %v1978_v19  ;;  %v1970_v14 = vsub.f32 %v1941_v56, %v1962_v12 }
0x1980   :  { %v3364_v15 = vpop.eup %3363 }
0x1981   :  { %v1980_v18 = vmul.f32 1.442695, %v1970_v14  ;;  %v1984_v20 = vsel %vm1947_vm0, %v3364_v15, 0.0 }
0x1982   :  { %1985 = vadd.xlane.f32.xlu1 %v1984_v20  ;;  %v2022_v21 = vpop.permute.xlu1 %2021  ;;  %v1965_v60 = vpop.xlane.xlu0 %1964 }
0x1983   :  { %3371 = vpow2.f32 %v1980_v18  ;;  %v1971_v24 = vsub.f32 %v1944_v59, %v1965_v60  ;;  %3109 = vmatpush3.bf16.msra.mxu1 %v2022_v21 }
0x1984   :  { %v3366_v25 = vpop.eup %3365  ;;  %3110 = vmatprep.subr.bf16.mxu1 %v3414_v10 }
0x1985   :  { %v1982_v26 = vmul.f32 1.442695, %v1971_v24  ;;  %v1987_v27 = vsel %vm1947_vm0, %v3366_v25, 0.0 }
0x1986   :  { %1988 = vadd.xlane.f32.xlu0 %v1987_v27 }
0x1987   :  { %3373 = vpow2.f32 %v1982_v26 }
0x1988   :  { %v3368_v28 = vpop.eup %3367 }
0x1989   :  { %v1990_v1 = vsel %vm1947_vm0, %v3368_v28, 0.0 }
0x198a   :  { %1991 = vadd.xlane.f32.xlu1 %v1990_v1 }
0x198c   :  { %v3370_v30 = vpop.eup %3369 }
0x198d   :  { %v1993_v31 = vsel %vm1947_vm0, %v3370_v30, 0.0 }
0x198e   :  { %1994 = vadd.xlane.f32.xlu0 %v1993_v31 }
0x1990   :  { %v3372_v32 = vpop.eup %3371 }
0x1991   :  { %v1996_v33 = vsel %vm1947_vm0, %v3372_v32, 0.0 }
0x1992   :  { %1997 = vadd.xlane.f32.xlu1 %v1996_v33 }
0x1994   :  { %v3374_v35 = vpop.eup %3373 }
0x1995   :  { %v1999_v37 = vsel %vm1947_vm0, %v3374_v35, 0.0 }
0x1996   :  { %2000 = vadd.xlane.f32.xlu0 %v1999_v37 }
0x19a3   :  { %2017 = vrot.lane.b32.xlu1 %v3892_v23, %s3424_s13 }
0x19ac   :  { %2019 = vrot.lane.b32.xlu0 %v3888_v9, %s3424_s13  ;;  %s3444_s13 = smov 29  }
0x19ad   :  { %s2684_s10 = sld [smem:[%s4106_s0 + %s3444_s13]]  }
0x1a0b   :  { %v1986_v43 = vpop.xlane.xlu1 %1985 }
0x1a0f   :  { %v1989_v41 = vpop.xlane.xlu0 %1988 }
0x1a10   :  { %3375 = vrcp.f32 %v1989_v41 }
0x1a11   :  { %3377 = vrcp.f32 %v1986_v43 }
0x1a13   :  { %v1992_v23 = vpop.xlane.xlu1 %1991 }
0x1a17   :  { %v1995_v44 = vpop.xlane.xlu0 %1994 }
0x1a18   :  { %3379 = vrcp.f32 %v1995_v44 }
0x1a19   :  { %3381 = vrcp.f32 %v1992_v23 }
0x1a1b   :  { %v1998_v45 = vpop.xlane.xlu1 %1997 }
0x1a1d   :  { %v3376_v46 = vpop.eup %3375 }
0x1a1e   :  { %v3378_v11 = vpop.eup %3377  ;;  %v2009_v48 = vmul.f32 %v3376_v46, %v3366_v25 }
0x1a1f   :  { %v2001_v9 = vpop.xlane.xlu0 %2000  ;;  %v2008_v49 = vmul.f32 %v3378_v11, %v3364_v15  ;;  %v2018_v47 = vpop.permute.xlu1 %2017  ;;  %v2813_v15 = vld [vmem:[%s2684_s10] ss:$0 sm:$0xff] }
0x1a20   :  { %3383 = vrcp.f32 %v2001_v9 }
0x1a21   :  { %3385 = vrcp.f32 %v1998_v45  ;;  %v2014_v50 = vpack.c.bf16 %v2009_v48, %v2008_v49 }
0x1a23   :  { %v2020_v16 = vpop.permute.xlu0 %2019 }
0x1a24   :  { %3111 = vmatpush3.bf16.msra.mxu1 %v2020_v16 }
0x1a25   :  { %3112 = vmatprep.subr.bf16.mxu1 %v3414_v10  ;;  %v3380_v51 = vpop.eup %3379 }
0x1a26   :  { %v3382_v52 = vpop.eup %3381  ;;  %v2011_v53 = vmul.f32 %v3380_v51, %v3370_v30 }
0x1a27   :  { %v2010_v54 = vmul.f32 %v3382_v52, %v3368_v28 }
0x1a28   :  { %3113 = vmatpush3.bf16.msra.mxu1 %v2018_v47 }
0x1a29   :  { %3142 = vmatprep.subr.bf16.mxu1 %v3414_v10  ;;  %v2015_v56 = vpack.c.bf16 %v2011_v53, %v2010_v54 }
0x1a2b   :  { %3115 = vmatmul.mubr.msk.bf16.vlgmr.msra.gmra.mxu1 %vm1947_vm0, %v2014_v50 }
0x1a2c   :  { %3118 = vmatprep.mubr.msk.bf16.mxu1 %vm3415_vm1, %v3414_v10 }
0x1a2d   :  { %v3384_v17 = vpop.eup %3383 }
0x1a2e   :  { %v3386_v57 = vpop.eup %3385  ;;  %v2013_v55 = vmul.f32 %v3384_v17, %v3374_v35 }
0x1a2f   :  { %v2012_v58 = vmul.f32 %v3386_v57, %v3372_v32 }
0x1a31   :  { %v2016_v59 = vpack.c.bf16 %v2013_v55, %v2012_v58 }
0x1a33   :  { %3119 = vmatmul.mubr.msk.bf16.gmra.mxu1 %vm1947_vm0, %v2015_v56 }
0x1a34   :  { %3122 = vmatprep.mubr.msk.bf16.mxu1 %vm3415_vm1, %v3414_v10 }
0x1a3b   :  { %3123 = vmatmul.mubr.msk.bf16.gmra.mxu1 %vm1947_vm0, %v2016_v59 }
0x1a3c   :  { %3146 = vmatprep.mubr.msk.bf16.mxu1 %vm3415_vm1, %v3414_v10 }
0x1aeb   :  { %v2069_v61 = vpop.f32.mrf.mxu1 }
0x1aed   :  { %v3116_v36 = vpop.f32.mrf.mxu1 }
0x1aef   :  { %v2072_v0 = vpop.f32.mrf.mxu1 }
0x1af0   :  { %v2092_v2 = vpack.c.bf16 %v2072_v0, %v2069_v61 }
0x1af1   :  { %v3117_v42 = vpop.f32.mrf.mxu1 }
0x1af2   :  { %3131 = vmatmul.mubr.msk.bf16.vlgmr.msra.gmra.mxu0 %vm252_vm4, %v2092_v2 }
0x1af3   :  { %v2077_v3 = vpop.f32.mrf.mxu1  ;;  %3134 = vmatprep.mubr.msk.bf16.mxu0 %vm3415_vm1, %v3414_v10 }
0x1af5   :  { %v3120_v4 = vpop.f32.mrf.mxu1 }
0x1af7   :  { %v2080_v5 = vpop.f32.mrf.mxu1 }
0x1af8   :  { %v2093_v6 = vpack.c.bf16 %v2080_v5, %v2077_v3 }
0x1af9   :  { %v3121_v7 = vpop.f32.mrf.mxu1 }
0x1afa   :  { %3135 = vmatmul.mubr.msk.bf16.gmra.mxu0 %vm252_vm4, %v2093_v6 }
0x1afb   :  { %v2085_v39 = vpop.f32.mrf.mxu1  ;;  %3138 = vmatprep.mubr.msk.bf16.mxu0 %vm3415_vm1, %v3414_v10 }
0x1afd   :  { %v3124_v8 = vpop.f32.mrf.mxu1 }
0x1aff   :  { %v2088_v19 = vpop.f32.mrf.mxu1 }
0x1b00   :  { %v2094_v12 = vpack.c.bf16 %v2088_v19, %v2085_v39 }
0x1b01   :  { %v3125_v14 = vpop.f32.mrf.mxu1 }
0x1b02   :  { %3139 = vmatmul.mubr.msk.bf16.gmra.mxu0 %vm252_vm4, %v2094_v12  ;;  %v3295_v12 = vld [vmem:[%s2687_s15 + $0x8] sm:$0xff]   ;;  %v3296_v14 = vld [vmem:[%s2687_s15] sm:$0xff]  }
0x1b03   :  { %3174 = vmatprep.mubr.msk.bf16.mxu0 %vm3415_vm1, %v3414_v10  ;;  %3143 = vmatpush3.bf16.msra.mxu1 %v3295_v12  ;;  %v3305_v12 = vld [vmem:[%s4072_s27 + $0x8] sm:$0xff]  }
0x1b04   :  { %3144 = vmatprep.subr.bf16.mxu1 %v3414_v10 }
0x1b07   :  { %3145 = vmatpush3.bf16.msra.mxu1 %v3296_v14  ;;  %v2816_v14 = vld [vmem:[%s2688_s2] ss:$0 sm:$0xff] }
0x1b08   :  { %3186 = vmatprep.subr.bf16.mxu1 %v3414_v10 }
0x1bb2   :  { %v2150_v18 = vpop.f32.mrf.mxu0 }
0x1bb3   :  { %v2173_v20 = vadd.f32 %v2150_v18, %v3794_v62 }
0x1bb4   :  { %v3132_v21 = vpop.f32.mrf.mxu0 }
0x1bb5   :  { %v3968_v60 = vadd.f32 %v2813_v15, %v2173_v20 }
0x1bb6   :  { %v2153_v24 = vpop.f32.mrf.mxu0 }
0x1bb7   :  { %v2174_v25 = vadd.f32 %v2153_v24, %v3799_v34  ;;  %v2191_v26 = vsel %vm252_vm4, %v3968_v60, 0.0 }
0x1bb8   :  { %2192 = vadd.xlane.f32.xlu1 %v2191_v26  ;;  %v3133_v27 = vpop.f32.mrf.mxu0 }
0x1bb9   :  { %v3973_v28 = vadd.f32 %v2813_v15, %v2174_v25 }
0x1bba   :  { %v2158_v1 = vpop.f32.mrf.mxu0 }
0x1bbb   :  { %v2175_v30 = vadd.f32 %v2158_v1, %v3804_v13  ;;  %v2194_v31 = vsel %vm252_vm4, %v3973_v28, 0.0 }
0x1bbc   :  { %2195 = vadd.xlane.f32.xlu0 %v2194_v31  ;;  %v3136_v62 = vpop.f32.mrf.mxu0 }
0x1bbd   :  { %v3978_v32 = vadd.f32 %v2813_v15, %v2175_v30 }
0x1bbe   :  { %v2161_v33 = vpop.f32.mrf.mxu0 }
0x1bbf   :  { %v2176_v34 = vadd.f32 %v2161_v33, %v3809_v22  ;;  %v2197_v35 = vsel %vm252_vm4, %v3978_v32, 0.0 }
0x1bc0   :  { %2198 = vadd.xlane.f32.xlu0 %v2197_v35  ;;  %v3137_v37 = vpop.f32.mrf.mxu0 }
0x1bc1   :  { %v3983_v40 = vadd.f32 %v2813_v15, %v2176_v34 }
0x1bc2   :  { %v2166_v41 = vpop.f32.mrf.mxu0 }
0x1bc3   :  { %v2177_v13 = vadd.f32 %v2166_v41, %v3814_v29  ;;  %v2200_v43 = vsel %vm252_vm4, %v3983_v40, 0.0 }
0x1bc4   :  { %2201 = vadd.xlane.f32.xlu1 %v2200_v43  ;;  %v3140_v44 = vpop.f32.mrf.mxu0 }
0x1bc5   :  { %v3988_v23 = vadd.f32 %v2813_v15, %v2177_v13  ;;  %v2814_v13 = vld [vmem:[%s2685_s20] ss:$0 sm:$0xff] }
0x1bc6   :  { %v2169_v9 = vpop.f32.mrf.mxu0 }
0x1bc7   :  { %v2178_v22 = vadd.f32 %v2169_v9, %v3819_v38  ;;  %v2203_v45 = vsel %vm252_vm4, %v3988_v23, 0.0 }
0x1bc8   :  { %2204 = vadd.xlane.f32.xlu0 %v2203_v45  ;;  %v3141_v46 = vpop.f32.mrf.mxu0 }
0x1bc9   :  { %v3993_v16 = vadd.f32 %v2813_v15, %v2178_v22 }
0x1bcb   :  { %v2206_v29 = vsel %vm252_vm4, %v3993_v16, 0.0 }
0x1bcc   :  { %2207 = vadd.xlane.f32.xlu1 %v2206_v29  ;;  %v2815_v29 = vld [vmem:[%s2686_s29] ss:$0 sm:$0xff] }
0x1c41   :  { %v2193_v11 = vpop.xlane.xlu1 %2192 }
0x1c42   :  { %v2209_v48 = vmul.f32 0.03125, %v2193_v11 }
0x1c44   :  { %v3998_v49 = vsub.f32 %v3968_v60, %v2209_v48 }
0x1c45   :  { %v2196_v47 = vpop.xlane.xlu0 %2195 }
0x1c46   :  { %v2210_v50 = vmul.f32 0.03125, %v2196_v47  ;;  %v2221_v38 = vmul.f32 %v3998_v49, %v3998_v49 }
0x1c48   :  { %v4003_v51 = vsub.f32 %v3973_v28, %v2210_v50  ;;  %v2227_v52 = vsel %vm252_vm4, %v2221_v38, 0.0 }
0x1c49   :  { %v2199_v53 = vpop.xlane.xlu0 %2198  ;;  %2228 = vadd.xlane.f32.xlu0 %v2227_v52 }
0x1c4a   :  { %v2211_v54 = vmul.f32 0.03125, %v2199_v53  ;;  %v2222_v56 = vmul.f32 %v4003_v51, %v4003_v51 }
0x1c4c   :  { %v4009_v17 = vsub.f32 %v3978_v32, %v2211_v54  ;;  %v2230_v57 = vsel %vm252_vm4, %v2222_v56, 0.0 }
0x1c4d   :  { %v2202_v55 = vpop.xlane.xlu1 %2201  ;;  %2231 = vadd.xlane.f32.xlu1 %v2230_v57 }
0x1c4e   :  { %v2212_v58 = vmul.f32 0.03125, %v2202_v55  ;;  %v2223_v59 = vmul.f32 %v4009_v17, %v4009_v17 }
0x1c50   :  { %v4015_v63 = vsub.f32 %v3983_v40, %v2212_v58  ;;  %v2233_v61 = vsel %vm252_vm4, %v2223_v59, 0.0 }
0x1c51   :  { %2234 = vadd.xlane.f32.xlu0 %v2233_v61  ;;  %v2205_v36 = vpop.xlane.xlu0 %2204 }
0x1c52   :  { %v2213_v0 = vmul.f32 0.03125, %v2205_v36  ;;  %v2224_v2 = vmul.f32 %v4015_v63, %v4015_v63 }
0x1c54   :  { %v4021_v42 = vsub.f32 %v3988_v23, %v2213_v0  ;;  %v2236_v3 = vsel %vm252_vm4, %v2224_v2, 0.0 }
0x1c55   :  { %2237 = vadd.xlane.f32.xlu1 %v2236_v3  ;;  %v2208_v4 = vpop.xlane.xlu1 %2207 }
0x1c56   :  { %v2214_v5 = vmul.f32 0.03125, %v2208_v4  ;;  %v2225_v6 = vmul.f32 %v4021_v42, %v4021_v42  ;;  %v3298_v4 = vld [vmem:[%s2689_s21 + $0x30] sm:$0xff]  }
0x1c58   :  { %v4027_v7 = vsub.f32 %v3993_v16, %v2214_v5  ;;  %v2239_v39 = vsel %vm252_vm4, %v2225_v6, 0.0  ;;  %v3299_v5 = vld [vmem:[%s2689_s21 + $0x28] sm:$0xff]   ;;  %v3300_v6 = vld [vmem:[%s2689_s21 + $0x20] sm:$0xff]  }
0x1c59   :  { %2240 = vadd.xlane.f32.xlu0 %v2239_v39  ;;  %v3302_v39 = vld [vmem:[%s2689_s21 + $0x10] sm:$0xff]  }
0x1c5a   :  { %v2226_v8 = vmul.f32 %v4027_v7, %v4027_v7 }
0x1c5c   :  { %v2242_v19 = vsel %vm252_vm4, %v2226_v8, 0.0  ;;  %v3303_v8 = vld [vmem:[%s2689_s21 + $0x8] sm:$0xff]  }
0x1c5d   :  { %2243 = vadd.xlane.f32.xlu1 %v2242_v19  ;;  %v3304_v19 = vld [vmem:[%s2689_s21] sm:$0xff]  }
0x1cd2   :  { %v2229_v15 = vpop.xlane.xlu0 %2228 }
0x1cd3   :  { %v2245_v18 = vmul.f32 0.03125, %v2229_v15 }
0x1cd5   :  { %v2251_v20 = vadd.f32 1e-05, %v2245_v18 }
0x1cd6   :  { %v2232_v21 = vpop.xlane.xlu1 %2231 }
0x1cd7   :  { %3387 = vrsqrt.f32 %v2251_v20  ;;  %v2246_v24 = vmul.f32 0.03125, %v2232_v21 }
0x1cd9   :  { %v2252_v25 = vadd.f32 1e-05, %v2246_v24 }
0x1cda   :  { %v2235_v26 = vpop.xlane.xlu0 %2234 }
0x1cdb   :  { %3389 = vrsqrt.f32 %v2252_v25  ;;  %v2247_v27 = vmul.f32 0.03125, %v2235_v26 }
0x1cdd   :  { %v2253_v1 = vadd.f32 1e-05, %v2247_v27 }
0x1cde   :  { %v2238_v30 = vpop.xlane.xlu1 %2237 }
0x1cdf   :  { %3391 = vrsqrt.f32 %v2253_v1  ;;  %v2248_v31 = vmul.f32 0.03125, %v2238_v30 }
0x1ce1   :  { %v2254_v62 = vadd.f32 1e-05, %v2248_v31 }
0x1ce2   :  { %v2241_v33 = vpop.xlane.xlu0 %2240 }
0x1ce3   :  { %3393 = vrsqrt.f32 %v2254_v62  ;;  %v2249_v34 = vmul.f32 0.03125, %v2241_v33 }
0x1ce4   :  { %v3388_v35 = vpop.eup %3387 }
0x1ce5   :  { %v2263_v37 = vmul.f32 %v3388_v35, %v3998_v49  ;;  %v2255_v41 = vadd.f32 1e-05, %v2249_v34 }
0x1ce6   :  { %v2244_v43 = vpop.xlane.xlu1 %2243 }
0x1ce7   :  { %3395 = vrsqrt.f32 %v2255_v41  ;;  %v2250_v44 = vmul.f32 0.03125, %v2244_v43  ;;  %v2275_v22 = vmul.f32 %v2814_v13, %v2263_v37 }
0x1ce8   :  { %v3390_v9 = vpop.eup %3389 }
0x1ce9   :  { %v2264_v45 = vmul.f32 %v3390_v9, %v4003_v51  ;;  %v2256_v46 = vadd.f32 1e-05, %v2250_v44  ;;  %v2287_v47 = vadd.f32 %v2815_v29, %v2275_v22 }
0x1ceb   :  { %v2276_v11 = vmul.f32 %v2814_v13, %v2264_v45  ;;  %3397 = vrsqrt.f32 %v2256_v46 }
0x1cec   :  { %v3392_v48 = vpop.eup %3391 }
0x1ced   :  { %v2288_v50 = vadd.f32 %v2815_v29, %v2276_v11  ;;  %v2265_v38 = vmul.f32 %v3392_v48, %v4009_v17 }
0x1cef   :  { %v2293_v52 = vpack.c.bf16 %v2288_v50, %v2287_v47  ;;  %v2277_v54 = vmul.f32 %v2814_v13, %v2265_v38 }
0x1cf0   :  { %v3394_v49 = vpop.eup %3393 }
0x1cf1   :  { %3147 = vmatmul.mubr.msk.bf16.vlgmr.msra.gmra.mxu1 %vm252_vm4, %v2293_v52  ;;  %v2266_v53 = vmul.f32 %v3394_v49, %v4015_v63  ;;  %v2289_v57 = vadd.f32 %v2815_v29, %v2277_v54 }
0x1cf2   :  { %3150 = vmatprep.mubr.msk.bf16.mxu1 %vm3415_vm1, %v3414_v10  ;;  %3187 = vmatpush3.bf16.msra.mxu1 %v3305_v12 }
0x1cf3   :  { %v2278_v51 = vmul.f32 %v2814_v13, %v2266_v53  ;;  %3188 = vmatprep.subr.bf16.mxu1 %v3414_v10 }
0x1cf4   :  { %v3396_v56 = vpop.eup %3395 }
0x1cf5   :  { %v2290_v55 = vadd.f32 %v2815_v29, %v2278_v51  ;;  %v2267_v58 = vmul.f32 %v3396_v56, %v4021_v42  ;;  %v3297_v42 = vld [vmem:[%s2689_s21 + $0x38] sm:$0xff]  }
0x1cf6   :  { %3159 = vmatpush3.bf16.msra.mxu0 %v3297_v42 }
0x1cf7   :  { %v2294_v59 = vpack.c.bf16 %v2290_v55, %v2289_v57  ;;  %v2279_v36 = vmul.f32 %v2814_v13, %v2267_v58  ;;  %3160 = vmatprep.subr.bf16.mxu0 %v3414_v10 }
0x1cf8   :  { %v3398_v61 = vpop.eup %3397 }
0x1cf9   :  { %3151 = vmatmul.mubr.msk.bf16.gmra.mxu1 %vm252_vm4, %v2294_v59  ;;  %v2268_v17 = vmul.f32 %v3398_v61, %v4027_v7  ;;  %v2291_v0 = vadd.f32 %v2815_v29, %v2279_v36  ;;  %v3301_v7 = vld [vmem:[%s2689_s21 + $0x18] sm:$0xff]  }
0x1cfa   :  { %3154 = vmatprep.mubr.msk.bf16.mxu1 %vm3415_vm1, %v3414_v10  ;;  %3161 = vmatpush3.bf16.msra.mxu0 %v3298_v4 }
0x1cfb   :  { %v2280_v63 = vmul.f32 %v2814_v13, %v2268_v17  ;;  %3162 = vmatprep.subr.bf16.mxu0 %v3414_v10 }
0x1cfd   :  { %v2292_v2 = vadd.f32 %v2815_v29, %v2280_v63 }
0x1cfe   :  { %3163 = vmatpush3.bf16.msra.mxu0 %v3299_v5 }
0x1cff   :  { %v2295_v3 = vpack.c.bf16 %v2292_v2, %v2291_v0  ;;  %3164 = vmatprep.subr.bf16.mxu0 %v3414_v10 }
0x1d01   :  { %3155 = vmatmul.mubr.msk.bf16.gmra.mxu1 %vm252_vm4, %v2295_v3 }
0x1d02   :  { %3190 = vmatprep.mubr.msk.bf16.mxu1 %vm3415_vm1, %v3414_v10  ;;  %3165 = vmatpush3.bf16.msra.mxu0 %v3300_v6 }
0x1d03   :  { %3166 = vmatprep.subr.bf16.mxu0 %v3414_v10 }
0x1d06   :  { %3167 = vmatpush3.bf16.msra.mxu0 %v3301_v7 }
0x1d07   :  { %3168 = vmatprep.subr.bf16.mxu0 %v3414_v10 }
0x1d0a   :  { %3169 = vmatpush3.bf16.msra.mxu0 %v3302_v39 }
0x1d0b   :  { %3170 = vmatprep.subr.bf16.mxu0 %v3414_v10 }
0x1d0e   :  { %3171 = vmatpush3.bf16.msra.mxu0 %v3303_v8 }
0x1d0f   :  { %3172 = vmatprep.subr.bf16.mxu0 %v3414_v10 }
0x1d12   :  { %3173 = vmatpush3.bf16.msra.mxu0 %v3304_v19 }
0x1db1   :  { %v2357_v15 = vpop.f32.mrf.mxu1 }
0x1db2   :  { %v2358_v18 = vadd.f32 %v2816_v14, %v2357_v15 }
0x1db3   :  { %v3148_v20 = vpop.f32.mrf.mxu1 }
0x1db4   :  { %v2380_v21 = vmul.f32 %v2358_v18, %v2358_v18 }
0x1db5   :  { %v2360_v24 = vpop.f32.mrf.mxu1 }
0x1db6   :  { %v2386_v25 = vmul.f32 %v2380_v21, %v2358_v18  ;;  %v2361_v26 = vadd.f32 %v2816_v14, %v2360_v24 }
0x1db7   :  { %v3149_v27 = vpop.f32.mrf.mxu1 }
0x1db8   :  { %v2392_v1 = vmul.f32 0.044715, %v2386_v25  ;;  %v2381_v30 = vmul.f32 %v2361_v26, %v2361_v26 }
0x1db9   :  { %v2365_v31 = vpop.f32.mrf.mxu1 }
0x1dba   :  { %v2398_v62 = vadd.f32 %v2392_v1, %v2358_v18  ;;  %v2387_v33 = vmul.f32 %v2381_v30, %v2361_v26  ;;  %v2366_v34 = vadd.f32 %v2816_v14, %v2365_v31 }
0x1dbb   :  { %v3152_v35 = vpop.f32.mrf.mxu1 }
0x1dbc   :  { %v2404_v37 = vmul.f32 0.7978846, %v2398_v62  ;;  %v2393_v41 = vmul.f32 0.044715, %v2387_v33  ;;  %v2382_v13 = vmul.f32 %v2366_v34, %v2366_v34 }
0x1dbd   :  { %v2368_v43 = vpop.f32.mrf.mxu1 }
0x1dbe   :  { %3399 = vtanh.f32 %v2404_v37  ;;  %v2399_v44 = vadd.f32 %v2393_v41, %v2361_v26  ;;  %v2388_v9 = vmul.f32 %v2382_v13, %v2366_v34  ;;  %v2369_v22 = vadd.f32 %v2816_v14, %v2368_v43 }
0x1dbf   :  { %v3153_v45 = vpop.f32.mrf.mxu1 }
0x1dc0   :  { %v2405_v46 = vmul.f32 0.7978846, %v2399_v44  ;;  %v2394_v29 = vmul.f32 0.044715, %v2388_v9  ;;  %v2383_v11 = vmul.f32 %v2369_v22, %v2369_v22  ;;  %v3306_v44 = vld [vmem:[%s4072_s27] sm:$0xff]  }
0x1dc1   :  { %v2373_v48 = vpop.f32.mrf.mxu1  ;;  %3189 = vmatpush3.bf16.msra.mxu1 %v3306_v44 }
0x1dc2   :  { %3401 = vtanh.f32 %v2405_v46  ;;  %v2400_v47 = vadd.f32 %v2394_v29, %v2366_v34  ;;  %v2389_v50 = vmul.f32 %v2383_v11, %v2369_v22  ;;  %v2374_v38 = vadd.f32 %v2816_v14, %v2373_v48 }
0x1dc3   :  { %v3156_v52 = vpop.f32.mrf.mxu1 }
0x1dc4   :  { %v2406_v49 = vmul.f32 0.7978846, %v2400_v47  ;;  %v2395_v53 = vmul.f32 0.044715, %v2389_v50  ;;  %v2384_v54 = vmul.f32 %v2374_v38, %v2374_v38 }
0x1dc5   :  { %v2376_v51 = vpop.f32.mrf.mxu1 }
0x1dc6   :  { %3403 = vtanh.f32 %v2406_v49  ;;  %v2401_v56 = vadd.f32 %v2395_v53, %v2369_v22  ;;  %v2390_v57 = vmul.f32 %v2384_v54, %v2374_v38  ;;  %v2377_v55 = vadd.f32 %v2816_v14, %v2376_v51 }
0x1dc7   :  { %v3157_v58 = vpop.f32.mrf.mxu1 }
0x1dc8   :  { %v2407_v59 = vmul.f32 0.7978846, %v2401_v56  ;;  %v2396_v61 = vmul.f32 0.044715, %v2390_v57  ;;  %v2385_v17 = vmul.f32 %v2377_v55, %v2377_v55 }
0x1dca   :  { %3405 = vtanh.f32 %v2407_v59  ;;  %v2402_v36 = vadd.f32 %v2396_v61, %v2374_v38  ;;  %v2391_v63 = vmul.f32 %v2385_v17, %v2377_v55 }
0x1dcb   :  { %v3400_v0 = vpop.eup %3399 }
0x1dcc   :  { %v2416_v2 = vadd.f32 1.0, %v3400_v0  ;;  %v2408_v3 = vmul.f32 0.7978846, %v2402_v36  ;;  %v2397_v42 = vmul.f32 0.044715, %v2391_v63 }
0x1dce   :  { %3407 = vtanh.f32 %v2408_v3  ;;  %v2403_v4 = vadd.f32 %v2397_v42, %v2377_v55  ;;  %v2422_v6 = vmul.f32 0.5, %v2416_v2 }
0x1dcf   :  { %v3402_v5 = vpop.eup %3401 }
0x1dd0   :  { %v2417_v7 = vadd.f32 1.0, %v3402_v5  ;;  %v2409_v39 = vmul.f32 0.7978846, %v2403_v4  ;;  %v2428_v12 = vmul.f32 %v2422_v6, %v2358_v18 }
0x1dd2   :  { %v2423_v8 = vmul.f32 0.5, %v2417_v7  ;;  %3409 = vtanh.f32 %v2409_v39 }
0x1dd3   :  { %v3404_v19 = vpop.eup %3403 }
0x1dd4   :  { %v2429_v14 = vmul.f32 %v2423_v8, %v2361_v26  ;;  %v2418_v15 = vadd.f32 1.0, %v3404_v19 }
0x1dd6   :  { %v2434_v20 = vpack.c.bf16 %v2429_v14, %v2428_v12  ;;  %v2424_v25 = vmul.f32 0.5, %v2418_v15 }
0x1dd7   :  { %v3406_v21 = vpop.eup %3405 }
0x1dd8   :  { %3175 = vmatmul.mubr.bf16.vlgmr.msra.gmra.mxu0 %v2434_v20  ;;  %v2419_v24 = vadd.f32 1.0, %v3406_v21  ;;  %v2430_v30 = vmul.f32 %v2424_v25, %v2366_v34  ;;  %v2822_v34 = vld [vmem:[%s2690_s6] ss:$0 sm:$0xff] }
0x1dd9   :  { %3178 = vmatprep.mubr.msk.bf16.mxu0 %vm3415_vm1, %v3414_v10 }
0x1dda   :  { %v2425_v27 = vmul.f32 0.5, %v2419_v24 }
0x1ddb   :  { %v3408_v1 = vpop.eup %3407 }
0x1ddc   :  { %v2431_v31 = vmul.f32 %v2425_v27, %v2369_v22  ;;  %v2420_v62 = vadd.f32 1.0, %v3408_v1 }
0x1dde   :  { %v2435_v33 = vpack.c.bf16 %v2431_v31, %v2430_v30  ;;  %v2426_v26 = vmul.f32 0.5, %v2420_v62 }
0x1ddf   :  { %v3410_v35 = vpop.eup %3409 }
0x1de0   :  { %3179 = vmatmul.mubr.bf16.gmra.mxu0 %v2435_v33  ;;  %v2421_v18 = vadd.f32 1.0, %v3410_v35  ;;  %v2432_v41 = vmul.f32 %v2426_v26, %v2374_v38 }
0x1de1   :  { %3182 = vmatprep.mubr.msk.bf16.mxu0 %vm3415_vm1, %v3414_v10 }
0x1de2   :  { %v2427_v37 = vmul.f32 0.5, %v2421_v18 }
0x1de4   :  { %v2433_v13 = vmul.f32 %v2427_v37, %v2377_v55 }
0x1de6   :  { %v2436_v43 = vpack.c.bf16 %v2433_v13, %v2432_v41 }
0x1de8   :  { %3183 = vmatmul.mubr.bf16.gmra.mxu0 %v2436_v43 }
0x1e98   :  { %v2525_v9 = vpop.f32.mrf.mxu0 }
0x1e99   :  { %v2526_v45 = vadd.f32 %v2822_v34, %v2525_v9 }
0x1e9a   :  { %v3176_v22 = vpop.f32.mrf.mxu0 }
0x1e9b   :  { %v2548_v48 = vadd.f32 %v2526_v45, %v3968_v60 }
0x1e9c   :  { %v2528_v46 = vpop.f32.mrf.mxu0 }
0x1e9d   :  { %v2529_v29 = vadd.f32 %v2822_v34, %v2528_v46 }
0x1e9e   :  { %v3177_v11 = vpop.f32.mrf.mxu0 }
0x1e9f   :  { %v2549_v47 = vadd.f32 %v2529_v29, %v3973_v28 }
0x1ea0   :  { %v2533_v50 = vpop.f32.mrf.mxu0 }
0x1ea1   :  { %v2554_v38 = vpack.c.bf16 %v2549_v47, %v2548_v48  ;;  %v2534_v49 = vadd.f32 %v2822_v34, %v2533_v50 }
0x1ea2   :  { %v3180_v52 = vpop.f32.mrf.mxu0 }
0x1ea3   :  { %3191 = vmatmul.mubr.msk.bf16.vlgmr.msra.gmra.mxu1 %vm252_vm4, %v2554_v38  ;;  %v2550_v56 = vadd.f32 %v2534_v49, %v3978_v32 }
0x1ea4   :  { %v2536_v53 = vpop.f32.mrf.mxu0  ;;  %3194 = vmatprep.mubr.msk.bf16.mxu1 %vm3415_vm1, %v3414_v10 }
0x1ea5   :  { %v2537_v54 = vadd.f32 %v2822_v34, %v2536_v53 }
0x1ea6   :  { %v3181_v51 = vpop.f32.mrf.mxu0 }
0x1ea7   :  { %v2551_v57 = vadd.f32 %v2537_v54, %v3983_v40 }
0x1ea8   :  { %v2541_v55 = vpop.f32.mrf.mxu0 }
0x1ea9   :  { %v2555_v60 = vpack.c.bf16 %v2551_v57, %v2550_v56  ;;  %v2542_v28 = vadd.f32 %v2822_v34, %v2541_v55 }
0x1eaa   :  { %v3184_v58 = vpop.f32.mrf.mxu0 }
0x1eab   :  { %3195 = vmatmul.mubr.msk.bf16.gmra.mxu1 %vm252_vm4, %v2555_v60  ;;  %v2552_v36 = vadd.f32 %v2542_v28, %v3988_v23 }
0x1eac   :  { %v2544_v59 = vpop.f32.mrf.mxu0  ;;  %3198 = vmatprep.mubr.msk.bf16.mxu1 %vm3415_vm1, %v3414_v10  ;;  %v2831_v10 = vld [vmem:[%s2692_s12] ss:$0 sm:$0xff] }
0x1ead   :  { %v2545_v61 = vadd.f32 %v2822_v34, %v2544_v59 }
0x1eae   :  { %v3185_v17 = vpop.f32.mrf.mxu0 }
0x1eaf   :  { %v2553_v63 = vadd.f32 %v2545_v61, %v3993_v16 }
0x1eb1   :  { %v2556_v0 = vpack.c.bf16 %v2553_v63, %v2552_v36 }
0x1eb3   :  { %3199 = vmatmul.mubr.msk.bf16.gmra.mxu1 %vm252_vm4, %v2556_v0 }
0x1f63   :  { %v2623_v32 = vpop.f32.mrf.mxu1 }
0x1f64   :  { %v2624_v40 = vadd.f32 %v2831_v10, %v2623_v32 }
0x1f65   :  { %v3192_v2 = vpop.f32.mrf.mxu1 }
0x1f66   :  { %2646 = vst [vmem:[%s2693_s18] sm:$0xff] %v2624_v40 }
0x1f67   :  { %v2626_v23 = vpop.f32.mrf.mxu1 }
0x1f68   :  { %v2627_v16 = vadd.f32 %v2831_v10, %v2626_v23 }
0x1f69   :  { %v3193_v3 = vpop.f32.mrf.mxu1 }
0x1f6a   :  { %2647 = vst [vmem:[%s2693_s18 + $0x8] sm:$0xff] %v2627_v16 }
0x1f6b   :  { %v2631_v42 = vpop.f32.mrf.mxu1 }
0x1f6c   :  { %v2632_v4 = vadd.f32 %v2831_v10, %v2631_v42 }
0x1f6d   :  { %v3196_v5 = vpop.f32.mrf.mxu1 }
0x1f6e   :  { %2648 = vst [vmem:[%s2693_s18 + $0x10] sm:$0xff] %v2632_v4 }
0x1f6f   :  { %v2634_v6 = vpop.f32.mrf.mxu1 }
0x1f70   :  { %v2635_v7 = vadd.f32 %v2831_v10, %v2634_v6 }
0x1f71   :  { %v3197_v39 = vpop.f32.mrf.mxu1 }
0x1f72   :  { %2649 = vst [vmem:[%s2693_s18 + $0x18] sm:$0xff] %v2635_v7 }
0x1f73   :  { %v2639_v8 = vpop.f32.mrf.mxu1 }
0x1f74   :  { %v2640_v19 = vadd.f32 %v2831_v10, %v2639_v8 }
0x1f75   :  { %v3200_v12 = vpop.f32.mrf.mxu1 }
0x1f76   :  { %2650 = vst [vmem:[%s2693_s18 + $0x20] sm:$0xff] %v2640_v19 }
0x1f77   :  { %v2642_v14 = vpop.f32.mrf.mxu1 }
0x1f78   :  { %v2643_v15 = vadd.f32 %v2831_v10, %v2642_v14 }
0x1f79   :  { %v3201_v20 = vpop.f32.mrf.mxu1 }
0x1f7a   :  { %2651 = vst [vmem:[%s2693_s18 + $0x28] sm:$0xff] %v2643_v15 }

</bundles_post_ra>
